<compile_context>
chip_gen: v5e
topology: v5e:2x2
jax: 0.10.0
libtpu: 0.0.40
codegen_flags: <defaults>
</compile_context>

<pallas_src>
import functools

import jax
import jax.numpy as jnp
from jax import lax
from jax.experimental import pallas as pl
from jax.experimental.pallas import tpu as pltpu


def _speech_embedder_kernel(*refs, window, num_frames, num_frames_pad,
                            hidden, num_layers):
    x_ref = refs[0]                                        # (W, F_pad, M)
    wx_refs = refs[1:1 + num_layers]                       # (in_dim, 4H) per layer
    wh_refs = refs[1 + num_layers:1 + 2 * num_layers]      # (H, 4H) per layer
    b_refs = refs[1 + 2 * num_layers:1 + 3 * num_layers]   # (1, 4H) per layer
    wp_ref = refs[1 + 3 * num_layers]                      # (H, E)
    bp_ref = refs[2 + 3 * num_layers]                      # (1, E)
    out_ref = refs[3 + 3 * num_layers]                     # (1, E)

    H = hidden
    L = num_layers
    W = window
    Fp = num_frames_pad

    # Hoisted small constants (a few vregs): gate lane mask for the fused
    # sigmoid/tanh select, valid-frame row mask, and per-layer broadcast biases
    # (broadcast_in_dim is not CSE'd, so do it once, not per cell).
    gate_lane = lax.broadcasted_iota(jnp.int32, (Fp, 4 * H), 1)
    is_tanh_gate = gate_lane >= 3 * H               # columns [i, f, o | g]
    row_ok = lax.broadcasted_iota(jnp.int32, (Fp, 1), 0) < num_frames
    row_mask = row_ok.astype(jnp.float32)
    biases = [jnp.broadcast_to(b_refs[l][...], (Fp, 4 * H)) for l in range(L)]

    def lstm_cell(l, x, h, c):
        # Two-dot form, no lane concatenate. Layer weights are re-loaded from
        # VMEM here so their live range is per-cell (no whole-kernel pinning).
        gates = (biases[l]
                 + jnp.dot(x, wx_refs[l][...], preferred_element_type=jnp.float32)
                 + jnp.dot(h, wh_refs[l][...], preferred_element_type=jnp.float32))
        # Full-vreg activations: one sigmoid push + one tanh push + VPU select.
        act = jnp.where(is_tanh_gate, jnp.tanh(gates), jax.nn.sigmoid(gates))
        i = act[:, 0 * H:1 * H]
        f = act[:, 1 * H:2 * H]
        o = act[:, 2 * H:3 * H]
        g = act[:, 3 * H:4 * H]
        c_new = f * c + i * g
        h_new = o * jnp.tanh(c_new)
        return h_new, c_new

    hs = [jnp.zeros((Fp, H), jnp.float32) for _ in range(L)]
    cs = [jnp.zeros((Fp, H), jnp.float32) for _ in range(L)]

    # Wavefront (diagonal) emission: step s covers all cells (l, t) with
    # l + t == s. Layers are visited high-to-low so hs[l-1] still holds its
    # timestep-t value when cell (l, t) reads it (cell (l-1, t+1) overwrites
    # it later in the same wavefront step).
    # TODO(synk): v6e/v7x could fuse the two H-input cells of a wavefront step
    # into one block-diagonal 256-wide MXU pass; skipped at these shapes.
    for s in range(W + L - 1):
        for l in range(L - 1, -1, -1):
            t = s - l
            if 0 <= t < W:
                x_in = x_ref[t] if l == 0 else hs[l - 1]
                hs[l], cs[l] = lstm_cell(l, x_in, hs[l], cs[l])

    h_last = hs[-1]                                  # (Fp, H): last layer, last step

    # Projection + per-frame L2 normalization + mean over the TRUE frames.
    y = jnp.dot(h_last, wp_ref[...], preferred_element_type=jnp.float32) + bp_ref[...]
    sumsq = jnp.sum(y * y, axis=1, keepdims=True)
    inv_norm = lax.rsqrt(jnp.where(row_ok, sumsq, 1.0))   # padded rows -> safe denom
    y = y * inv_norm * row_mask                           # padded rows zeroed out
    out_ref[...] = (jnp.sum(y, axis=0, keepdims=True)
                    * (1.0 / num_frames)).astype(out_ref.dtype)


# ----------------------------------------------------------------------------
# Parameters (PyTorch-default-style init, raw torch layout) + packing into the
# kernel layout (pre-transposed, gate columns reordered to [i, f, o, g]).
# ----------------------------------------------------------------------------
def init_params(key, num_mels, lstm_hidden, lstm_layers, emb_dim):
    """Raw PyTorch-layout params: per layer (w_ih, w_hh, b_ih, b_hh), then (wp, bp)."""
    H = lstm_hidden
    k = 1.0 / float(H) ** 0.5
    keys = jax.random.split(key, 4 * lstm_layers + 2)
    ki = 0
    params = []
    for l in range(lstm_layers):
        in_dim = num_mels if l == 0 else H
        w_ih = jax.random.uniform(keys[ki], (4 * H, in_dim), jnp.float32, -k, k); ki += 1
        w_hh = jax.random.uniform(keys[ki], (4 * H, H), jnp.float32, -k, k); ki += 1
        b_ih = jax.random.uniform(keys[ki], (4 * H,), jnp.float32, -k, k); ki += 1
        b_hh = jax.random.uniform(keys[ki], (4 * H,), jnp.float32, -k, k); ki += 1
        params.extend([w_ih, w_hh, b_ih, b_hh])
    wp = jax.random.uniform(keys[ki], (emb_dim, H), jnp.float32, -k, k); ki += 1
    bp = jax.random.uniform(keys[ki], (emb_dim,), jnp.float32, -k, k)
    params.extend([wp, bp])
    return tuple(params)


def _reorder_gates(w, H):
    # torch gate order [i, f, g, o] (along axis 0) -> kernel order [i, f, o, g]
    return jnp.concatenate([w[0:2 * H], w[3 * H:4 * H], w[2 * H:3 * H]], axis=0)


def pack_params(raw_params, lstm_layers):
    """Per layer: wx (in,4H), wh (H,4H), b (1,4H) with gate columns [i,f,o,g];
    projection pre-transposed to (H,E), bias (1,E). Grouped by kind for the
    kernel's positional unpacking: [wx...], [wh...], [b...], wp, bp."""
    wxs, whs, bs = [], [], []
    for l in range(lstm_layers):
        w_ih, w_hh, b_ih, b_hh = raw_params[4 * l:4 * l + 4]
        H = w_hh.shape[1]
        wxs.append(_reorder_gates(w_ih, H).T.astype(jnp.float32))
        whs.append(_reorder_gates(w_hh, H).T.astype(jnp.float32))
        bs.append(_reorder_gates(b_ih + b_hh, H).reshape(1, -1).astype(jnp.float32))
    wp, bp = raw_params[-2], raw_params[-1]
    return tuple(wxs + whs + bs
                 + [wp.T.astype(jnp.float32), bp.reshape(1, -1).astype(jnp.float32)])


# ----------------------------------------------------------------------------
# Wrapper
# ----------------------------------------------------------------------------
def speech_embedder(mel, packed_params, *, window, stride, lstm_layers=3):
    num_mels, T = mel.shape
    num_frames = (T - window) // stride + 1
    num_frames_pad = max(8, ((num_frames + 7) // 8) * 8)   # full sublane tiles
    hidden = packed_params[-2].shape[0]
    emb_dim = packed_params[-2].shape[1]

    # Pre-unfold once in the wrapper: x_unf[t, f, :] = mel[:, f*stride + t].
    # Padded frames (rows >= num_frames) are zero; the kernel masks them out.
    melT = jnp.transpose(mel).astype(jnp.float32)           # (T, M)
    row_idx = (jnp.arange(window)[:, None]
               + stride * jnp.arange(num_frames)[None, :])  # (W, F)
    x_unf = melT[row_idx]                                    # (W, F, M)
    x_unf = jnp.pad(x_unf, ((0, 0), (0, num_frames_pad - num_frames), (0, 0)))

    kernel = functools.partial(
        _speech_embedder_kernel,
        window=window, num_frames=num_frames, num_frames_pad=num_frames_pad,
        hidden=hidden, num_layers=lstm_layers)

    vmem = pl.BlockSpec(memory_space=pltpu.MemorySpace.VMEM)
    out = pl.pallas_call(
        kernel,
        out_shape=jax.ShapeDtypeStruct((1, emb_dim), jnp.float32),
        in_specs=[vmem] * (1 + len(packed_params)),
        out_specs=vmem,
    )(x_unf, *packed_params)
    return out[0]


# ----------------------------------------------------------------------------
# Pure-JAX reference of the PyTorch forward (uses the raw, unfused params).
# ----------------------------------------------------------------------------
def unfold_mel(mel, window, stride):
    """mel (M, T) -> (F, W, M), matching torch unfold(1, W, S).permute(1, 2, 0)."""
    num_mels, T = mel.shape
    num_frames = (T - window) // stride + 1
    frames = jnp.stack(
        [mel[:, i * stride:i * stride + window] for i in range(num_frames)], axis=1)
    return jnp.transpose(frames, (1, 2, 0))


def reference(mel, raw_params, *, window, stride, lstm_layers):
    x = unfold_mel(mel, window, stride).astype(jnp.float32)   # (F, W, M)
    B, W = x.shape[0], x.shape[1]
    for l in range(lstm_layers):
        w_ih, w_hh, b_ih, b_hh = raw_params[4 * l:4 * l + 4]
        H = w_hh.shape[1]
        b = (b_ih + b_hh)[None, :]
        h = jnp.zeros((B, H), jnp.float32)
        c = jnp.zeros((B, H), jnp.float32)
        outs = []
        for t in range(W):
            gates = x[:, t, :] @ w_ih.T + h @ w_hh.T + b
            i = jax.nn.sigmoid(gates[:, :H])
            f = jax.nn.sigmoid(gates[:, H:2 * H])
            g = jnp.tanh(gates[:, 2 * H:3 * H])
            o = jax.nn.sigmoid(gates[:, 3 * H:])
            c = f * c + i * g
            h = o * jnp.tanh(c)
            outs.append(h)
        x = jnp.stack(outs, axis=1)
    h_last = x[:, -1, :]
    wp, bp = raw_params[-2], raw_params[-1]
    y = h_last @ wp.T + bp
    y = y / jnp.linalg.norm(y, axis=1, keepdims=True)
    return jnp.sum(y, axis=0) / B


if __name__ == "__main__":
    # Small shapes consistent with the module's forward.
    num_mels, emb_dim, lstm_hidden, lstm_layers = 16, 32, 32, 3
    window, stride = 8, 4
    T = 24                                   # -> num_frames = (24-8)//4 + 1 = 5

    key = jax.random.PRNGKey(0)
    pkey, mkey = jax.random.split(key)
    raw_params = init_params(pkey, num_mels, lstm_hidden, lstm_layers, emb_dim)
    packed_params = pack_params(raw_params, lstm_layers)
    mel = jax.random.normal(mkey, (num_mels, T), jnp.float32)

    out = speech_embedder(mel, packed_params, window=window, stride=stride,
                          lstm_layers=lstm_layers)
    out = jax.block_until_ready(out)

    ref = reference(mel, raw_params, window=window, stride=stride,
                    lstm_layers=lstm_layers)
    assert out.shape == (emb_dim,), out.shape
    assert jnp.allclose(out, ref, atol=2e-3, rtol=2e-3), (out, ref)
    print("KERNEL_OK")
</pallas_src>

<mosaic_0001>
module attributes {stable_mosaic.version = 11 : i64} {
  func.func @_speech_embedder_kernel(%arg0: memref<8x8x16xf32, #tpu.memory_space<vmem>>, %arg1: memref<16x128xf32, #tpu.memory_space<vmem>>, %arg2: memref<32x128xf32, #tpu.memory_space<vmem>>, %arg3: memref<32x128xf32, #tpu.memory_space<vmem>>, %arg4: memref<32x128xf32, #tpu.memory_space<vmem>>, %arg5: memref<32x128xf32, #tpu.memory_space<vmem>>, %arg6: memref<32x128xf32, #tpu.memory_space<vmem>>, %arg7: memref<1x128xf32, #tpu.memory_space<vmem>>, %arg8: memref<1x128xf32, #tpu.memory_space<vmem>>, %arg9: memref<1x128xf32, #tpu.memory_space<vmem>>, %arg10: memref<32x32xf32, #tpu.memory_space<vmem>>, %arg11: memref<1x32xf32, #tpu.memory_space<vmem>>, %arg12: memref<1x32xf32, #tpu.memory_space<vmem>>) attributes {dimension_semantics = [], scalar_prefetch = 0 : i64, scratch_operands = 0 : i64, tpu.core_type = #tpu.core_type<tc>} {
    %0 = tpu.iota {dimensions = array<i32: 1>} : vector<8x128xi32>
    %c96_i32 = arith.constant 96 : i32
    %1 = vector.broadcast %c96_i32 : i32 to vector<8x128xi32>
    %2 = arith.cmpi sge, %0, %1 : vector<8x128xi32>
    %3 = tpu.iota {dimensions = array<i32: 0>} : vector<8x1xi32>
    %c5_i32 = arith.constant 5 : i32
    %4 = vector.broadcast %c5_i32 : i32 to vector<8x1xi32>
    %5 = arith.cmpi slt, %3, %4 : vector<8x1xi32>
    %6 = arith.extui %5 : vector<8x1xi1> to vector<8x1xi32>
    %7 = arith.sitofp %6 : vector<8x1xi32> to vector<8x1xf32>
    %c0 = arith.constant 0 : index
    %c0_0 = arith.constant 0 : index
    %8 = vector.load %arg7[%c0, %c0_0] : memref<1x128xf32, #tpu.memory_space<vmem>>, vector<1x128xf32>
    %9 = vector.shape_cast %8 : vector<1x128xf32> to vector<1x128xf32>
    %10 = vector.broadcast %9 : vector<1x128xf32> to vector<8x128xf32>
    %c0_1 = arith.constant 0 : index
    %c0_2 = arith.constant 0 : index
    %11 = vector.load %arg8[%c0_1, %c0_2] : memref<1x128xf32, #tpu.memory_space<vmem>>, vector<1x128xf32>
    %12 = vector.shape_cast %11 : vector<1x128xf32> to vector<1x128xf32>
    %13 = vector.broadcast %12 : vector<1x128xf32> to vector<8x128xf32>
    %c0_3 = arith.constant 0 : index
    %c0_4 = arith.constant 0 : index
    %14 = vector.load %arg9[%c0_3, %c0_4] : memref<1x128xf32, #tpu.memory_space<vmem>>, vector<1x128xf32>
    %15 = vector.shape_cast %14 : vector<1x128xf32> to vector<1x128xf32>
    %16 = vector.broadcast %15 : vector<1x128xf32> to vector<8x128xf32>
    %cst = arith.constant 0.000000e+00 : f32
    %17 = vector.broadcast %cst : f32 to vector<8x32xf32>
    %cst_5 = arith.constant 0.000000e+00 : f32
    %18 = vector.broadcast %cst_5 : f32 to vector<8x32xf32>
    %cst_6 = arith.constant 0.000000e+00 : f32
    %19 = vector.broadcast %cst_6 : f32 to vector<8x32xf32>
    %cst_7 = arith.constant 0.000000e+00 : f32
    %20 = vector.broadcast %cst_7 : f32 to vector<8x32xf32>
    %cst_8 = arith.constant 0.000000e+00 : f32
    %21 = vector.broadcast %cst_8 : f32 to vector<8x32xf32>
    %cst_9 = arith.constant 0.000000e+00 : f32
    %22 = vector.broadcast %cst_9 : f32 to vector<8x32xf32>
    %c0_10 = arith.constant 0 : index
    %c0_11 = arith.constant 0 : index
    %c0_12 = arith.constant 0 : index
    %23 = vector.load %arg0[%c0_10, %c0_11, %c0_12] : memref<8x8x16xf32, #tpu.memory_space<vmem>>, vector<1x8x16xf32>
    %24 = vector.shape_cast %23 : vector<1x8x16xf32> to vector<8x16xf32>
    %c0_13 = arith.constant 0 : index
    %c0_14 = arith.constant 0 : index
    %25 = vector.load %arg1[%c0_13, %c0_14] : memref<16x128xf32, #tpu.memory_space<vmem>>, vector<16x128xf32>
    %cst_15 = arith.constant dense<0.000000e+00> : vector<8x128xf32>
    %26 = tpu.matmul %24, %25, %cst_15 {dimension_numbers = #tpu.dot_dimension_numbers<[1], [0], [0], [1], [0, 0, 1, 1], [], []>} : vector<8x16xf32>, vector<16x128xf32>, vector<8x128xf32> -> vector<8x128xf32>
    %27 = arith.addf %10, %26 : vector<8x128xf32>
    %c0_16 = arith.constant 0 : index
    %c0_17 = arith.constant 0 : index
    %28 = vector.load %arg4[%c0_16, %c0_17] : memref<32x128xf32, #tpu.memory_space<vmem>>, vector<32x128xf32>
    %cst_18 = arith.constant dense<0.000000e+00> : vector<8x128xf32>
    %29 = tpu.matmul %17, %28, %cst_18 {dimension_numbers = #tpu.dot_dimension_numbers<[1], [0], [0], [1], [0, 0, 1, 1], [], []>} : vector<8x32xf32>, vector<32x128xf32>, vector<8x128xf32> -> vector<8x128xf32>
    %30 = arith.addf %27, %29 : vector<8x128xf32>
    %31 = math.tanh %30 : vector<8x128xf32>
    %32 = arith.negf %30 : vector<8x128xf32>
    %33 = math.exp %32 : vector<8x128xf32>
    %cst_19 = arith.constant 1.000000e+00 : f32
    %34 = vector.broadcast %cst_19 : f32 to vector<8x128xf32>
    %35 = arith.addf %34, %33 : vector<8x128xf32>
    %36 = arith.divf %34, %35 : vector<8x128xf32>
    %37 = arith.select %2, %31, %36 : vector<8x128xi1>, vector<8x128xf32>
    %38 = vector.extract_strided_slice %37 {offsets = [0, 0], sizes = [8, 32], strides = [1, 1]} : vector<8x128xf32> to vector<8x32xf32>
    %39 = vector.extract_strided_slice %37 {offsets = [0, 32], sizes = [8, 32], strides = [1, 1]} : vector<8x128xf32> to vector<8x32xf32>
    %40 = vector.extract_strided_slice %37 {offsets = [0, 64], sizes = [8, 32], strides = [1, 1]} : vector<8x128xf32> to vector<8x32xf32>
    %41 = vector.extract_strided_slice %37 {offsets = [0, 96], sizes = [8, 32], strides = [1, 1]} : vector<8x128xf32> to vector<8x32xf32>
    %42 = arith.mulf %39, %20 : vector<8x32xf32>
    %43 = arith.mulf %38, %41 : vector<8x32xf32>
    %44 = arith.addf %42, %43 : vector<8x32xf32>
    %45 = math.tanh %44 : vector<8x32xf32>
    %46 = arith.mulf %40, %45 : vector<8x32xf32>
    %c0_20 = arith.constant 0 : index
    %c0_21 = arith.constant 0 : index
    %47 = vector.load %arg2[%c0_20, %c0_21] : memref<32x128xf32, #tpu.memory_space<vmem>>, vector<32x128xf32>
    %cst_22 = arith.constant dense<0.000000e+00> : vector<8x128xf32>
    %48 = tpu.matmul %46, %47, %cst_22 {dimension_numbers = #tpu.dot_dimension_numbers<[1], [0], [0], [1], [0, 0, 1, 1], [], []>} : vector<8x32xf32>, vector<32x128xf32>, vector<8x128xf32> -> vector<8x128xf32>
    %49 = arith.addf %13, %48 : vector<8x128xf32>
    %c0_23 = arith.constant 0 : index
    %c0_24 = arith.constant 0 : index
    %50 = vector.load %arg5[%c0_23, %c0_24] : memref<32x128xf32, #tpu.memory_space<vmem>>, vector<32x128xf32>
    %cst_25 = arith.constant dense<0.000000e+00> : vector<8x128xf32>
    %51 = tpu.matmul %18, %50, %cst_25 {dimension_numbers = #tpu.dot_dimension_numbers<[1], [0], [0], [1], [0, 0, 1, 1], [], []>} : vector<8x32xf32>, vector<32x128xf32>, vector<8x128xf32> -> vector<8x128xf32>
    %52 = arith.addf %49, %51 : vector<8x128xf32>
    %53 = math.tanh %52 : vector<8x128xf32>
    %54 = arith.negf %52 : vector<8x128xf32>
    %55 = math.exp %54 : vector<8x128xf32>
    %cst_26 = arith.constant 1.000000e+00 : f32
    %56 = vector.broadcast %cst_26 : f32 to vector<8x128xf32>
    %57 = arith.addf %56, %55 : vector<8x128xf32>
    %58 = arith.divf %56, %57 : vector<8x128xf32>
    %59 = arith.select %2, %53, %58 : vector<8x128xi1>, vector<8x128xf32>
    %60 = vector.extract_strided_slice %59 {offsets = [0, 0], sizes = [8, 32], strides = [1, 1]} : vector<8x128xf32> to vector<8x32xf32>
    %61 = vector.extract_strided_slice %59 {offsets = [0, 32], sizes = [8, 32], strides = [1, 1]} : vector<8x128xf32> to vector<8x32xf32>
    %62 = vector.extract_strided_slice %59 {offsets = [0, 64], sizes = [8, 32], strides = [1, 1]} : vector<8x128xf32> to vector<8x32xf32>
    %63 = vector.extract_strided_slice %59 {offsets = [0, 96], sizes = [8, 32], strides = [1, 1]} : vector<8x128xf32> to vector<8x32xf32>
    %64 = arith.mulf %61, %21 : vector<8x32xf32>
    %65 = arith.mulf %60, %63 : vector<8x32xf32>
    %66 = arith.addf %64, %65 : vector<8x32xf32>
    %67 = math.tanh %66 : vector<8x32xf32>
    %68 = arith.mulf %62, %67 : vector<8x32xf32>
    %c1 = arith.constant 1 : index
    %c0_27 = arith.constant 0 : index
    %c0_28 = arith.constant 0 : index
    %69 = vector.load %arg0[%c1, %c0_27, %c0_28] : memref<8x8x16xf32, #tpu.memory_space<vmem>>, vector<1x8x16xf32>
    %70 = vector.shape_cast %69 : vector<1x8x16xf32> to vector<8x16xf32>
    %c0_29 = arith.constant 0 : index
    %c0_30 = arith.constant 0 : index
    %71 = vector.load %arg1[%c0_29, %c0_30] : memref<16x128xf32, #tpu.memory_space<vmem>>, vector<16x128xf32>
    %cst_31 = arith.constant dense<0.000000e+00> : vector<8x128xf32>
    %72 = tpu.matmul %70, %71, %cst_31 {dimension_numbers = #tpu.dot_dimension_numbers<[1], [0], [0], [1], [0, 0, 1, 1], [], []>} : vector<8x16xf32>, vector<16x128xf32>, vector<8x128xf32> -> vector<8x128xf32>
    %73 = arith.addf %10, %72 : vector<8x128xf32>
    %c0_32 = arith.constant 0 : index
    %c0_33 = arith.constant 0 : index
    %74 = vector.load %arg4[%c0_32, %c0_33] : memref<32x128xf32, #tpu.memory_space<vmem>>, vector<32x128xf32>
    %cst_34 = arith.constant dense<0.000000e+00> : vector<8x128xf32>
    %75 = tpu.matmul %46, %74, %cst_34 {dimension_numbers = #tpu.dot_dimension_numbers<[1], [0], [0], [1], [0, 0, 1, 1], [], []>} : vector<8x32xf32>, vector<32x128xf32>, vector<8x128xf32> -> vector<8x128xf32>
    %76 = arith.addf %73, %75 : vector<8x128xf32>
    %77 = math.tanh %76 : vector<8x128xf32>
    %78 = arith.negf %76 : vector<8x128xf32>
    %79 = math.exp %78 : vector<8x128xf32>
    %cst_35 = arith.constant 1.000000e+00 : f32
    %80 = vector.broadcast %cst_35 : f32 to vector<8x128xf32>
    %81 = arith.addf %80, %79 : vector<8x128xf32>
    %82 = arith.divf %80, %81 : vector<8x128xf32>
    %83 = arith.select %2, %77, %82 : vector<8x128xi1>, vector<8x128xf32>
    %84 = vector.extract_strided_slice %83 {offsets = [0, 0], sizes = [8, 32], strides = [1, 1]} : vector<8x128xf32> to vector<8x32xf32>
    %85 = vector.extract_strided_slice %83 {offsets = [0, 32], sizes = [8, 32], strides = [1, 1]} : vector<8x128xf32> to vector<8x32xf32>
    %86 = vector.extract_strided_slice %83 {offsets = [0, 64], sizes = [8, 32], strides = [1, 1]} : vector<8x128xf32> to vector<8x32xf32>
    %87 = vector.extract_strided_slice %83 {offsets = [0, 96], sizes = [8, 32], strides = [1, 1]} : vector<8x128xf32> to vector<8x32xf32>
    %88 = arith.mulf %85, %44 : vector<8x32xf32>
    %89 = arith.mulf %84, %87 : vector<8x32xf32>
    %90 = arith.addf %88, %89 : vector<8x32xf32>
    %91 = math.tanh %90 : vector<8x32xf32>
    %92 = arith.mulf %86, %91 : vector<8x32xf32>
    %c0_36 = arith.constant 0 : index
    %c0_37 = arith.constant 0 : index
    %93 = vector.load %arg3[%c0_36, %c0_37] : memref<32x128xf32, #tpu.memory_space<vmem>>, vector<32x128xf32>
    %cst_38 = arith.constant dense<0.000000e+00> : vector<8x128xf32>
    %94 = tpu.matmul %68, %93, %cst_38 {dimension_numbers = #tpu.dot_dimension_numbers<[1], [0], [0], [1], [0, 0, 1, 1], [], []>} : vector<8x32xf32>, vector<32x128xf32>, vector<8x128xf32> -> vector<8x128xf32>
    %95 = arith.addf %16, %94 : vector<8x128xf32>
    %c0_39 = arith.constant 0 : index
    %c0_40 = arith.constant 0 : index
    %96 = vector.load %arg6[%c0_39, %c0_40] : memref<32x128xf32, #tpu.memory_space<vmem>>, vector<32x128xf32>
    %cst_41 = arith.constant dense<0.000000e+00> : vector<8x128xf32>
    %97 = tpu.matmul %19, %96, %cst_41 {dimension_numbers = #tpu.dot_dimension_numbers<[1], [0], [0], [1], [0, 0, 1, 1], [], []>} : vector<8x32xf32>, vector<32x128xf32>, vector<8x128xf32> -> vector<8x128xf32>
    %98 = arith.addf %95, %97 : vector<8x128xf32>
    %99 = math.tanh %98 : vector<8x128xf32>
    %100 = arith.negf %98 : vector<8x128xf32>
    %101 = math.exp %100 : vector<8x128xf32>
    %cst_42 = arith.constant 1.000000e+00 : f32
    %102 = vector.broadcast %cst_42 : f32 to vector<8x128xf32>
    %103 = arith.addf %102, %101 : vector<8x128xf32>
    %104 = arith.divf %102, %103 : vector<8x128xf32>
    %105 = arith.select %2, %99, %104 : vector<8x128xi1>, vector<8x128xf32>
    %106 = vector.extract_strided_slice %105 {offsets = [0, 0], sizes = [8, 32], strides = [1, 1]} : vector<8x128xf32> to vector<8x32xf32>
    %107 = vector.extract_strided_slice %105 {offsets = [0, 32], sizes = [8, 32], strides = [1, 1]} : vector<8x128xf32> to vector<8x32xf32>
    %108 = vector.extract_strided_slice %105 {offsets = [0, 64], sizes = [8, 32], strides = [1, 1]} : vector<8x128xf32> to vector<8x32xf32>
    %109 = vector.extract_strided_slice %105 {offsets = [0, 96], sizes = [8, 32], strides = [1, 1]} : vector<8x128xf32> to vector<8x32xf32>
    %110 = arith.mulf %107, %22 : vector<8x32xf32>
    %111 = arith.mulf %106, %109 : vector<8x32xf32>
    %112 = arith.addf %110, %111 : vector<8x32xf32>
    %113 = math.tanh %112 : vector<8x32xf32>
    %114 = arith.mulf %108, %113 : vector<8x32xf32>
    %c0_43 = arith.constant 0 : index
    %c0_44 = arith.constant 0 : index
    %115 = vector.load %arg2[%c0_43, %c0_44] : memref<32x128xf32, #tpu.memory_space<vmem>>, vector<32x128xf32>
    %cst_45 = arith.constant dense<0.000000e+00> : vector<8x128xf32>
    %116 = tpu.matmul %92, %115, %cst_45 {dimension_numbers = #tpu.dot_dimension_numbers<[1], [0], [0], [1], [0, 0, 1, 1], [], []>} : vector<8x32xf32>, vector<32x128xf32>, vector<8x128xf32> -> vector<8x128xf32>
    %117 = arith.addf %13, %116 : vector<8x128xf32>
    %c0_46 = arith.constant 0 : index
    %c0_47 = arith.constant 0 : index
    %118 = vector.load %arg5[%c0_46, %c0_47] : memref<32x128xf32, #tpu.memory_space<vmem>>, vector<32x128xf32>
    %cst_48 = arith.constant dense<0.000000e+00> : vector<8x128xf32>
    %119 = tpu.matmul %68, %118, %cst_48 {dimension_numbers = #tpu.dot_dimension_numbers<[1], [0], [0], [1], [0, 0, 1, 1], [], []>} : vector<8x32xf32>, vector<32x128xf32>, vector<8x128xf32> -> vector<8x128xf32>
    %120 = arith.addf %117, %119 : vector<8x128xf32>
    %121 = math.tanh %120 : vector<8x128xf32>
    %122 = arith.negf %120 : vector<8x128xf32>
    %123 = math.exp %122 : vector<8x128xf32>
    %cst_49 = arith.constant 1.000000e+00 : f32
    %124 = vector.broadcast %cst_49 : f32 to vector<8x128xf32>
    %125 = arith.addf %124, %123 : vector<8x128xf32>
    %126 = arith.divf %124, %125 : vector<8x128xf32>
    %127 = arith.select %2, %121, %126 : vector<8x128xi1>, vector<8x128xf32>
    %128 = vector.extract_strided_slice %127 {offsets = [0, 0], sizes = [8, 32], strides = [1, 1]} : vector<8x128xf32> to vector<8x32xf32>
    %129 = vector.extract_strided_slice %127 {offsets = [0, 32], sizes = [8, 32], strides = [1, 1]} : vector<8x128xf32> to vector<8x32xf32>
    %130 = vector.extract_strided_slice %127 {offsets = [0, 64], sizes = [8, 32], strides = [1, 1]} : vector<8x128xf32> to vector<8x32xf32>
    %131 = vector.extract_strided_slice %127 {offsets = [0, 96], sizes = [8, 32], strides = [1, 1]} : vector<8x128xf32> to vector<8x32xf32>
    %132 = arith.mulf %129, %66 : vector<8x32xf32>
    %133 = arith.mulf %128, %131 : vector<8x32xf32>
    %134 = arith.addf %132, %133 : vector<8x32xf32>
    %135 = math.tanh %134 : vector<8x32xf32>
    %136 = arith.mulf %130, %135 : vector<8x32xf32>
    %c2 = arith.constant 2 : index
    %c0_50 = arith.constant 0 : index
    %c0_51 = arith.constant 0 : index
    %137 = vector.load %arg0[%c2, %c0_50, %c0_51] : memref<8x8x16xf32, #tpu.memory_space<vmem>>, vector<1x8x16xf32>
    %138 = vector.shape_cast %137 : vector<1x8x16xf32> to vector<8x16xf32>
    %c0_52 = arith.constant 0 : index
    %c0_53 = arith.constant 0 : index
    %139 = vector.load %arg1[%c0_52, %c0_53] : memref<16x128xf32, #tpu.memory_space<vmem>>, vector<16x128xf32>
    %cst_54 = arith.constant dense<0.000000e+00> : vector<8x128xf32>
    %140 = tpu.matmul %138, %139, %cst_54 {dimension_numbers = #tpu.dot_dimension_numbers<[1], [0], [0], [1], [0, 0, 1, 1], [], []>} : vector<8x16xf32>, vector<16x128xf32>, vector<8x128xf32> -> vector<8x128xf32>
    %141 = arith.addf %10, %140 : vector<8x128xf32>
    %c0_55 = arith.constant 0 : index
    %c0_56 = arith.constant 0 : index
    %142 = vector.load %arg4[%c0_55, %c0_56] : memref<32x128xf32, #tpu.memory_space<vmem>>, vector<32x128xf32>
    %cst_57 = arith.constant dense<0.000000e+00> : vector<8x128xf32>
    %143 = tpu.matmul %92, %142, %cst_57 {dimension_numbers = #tpu.dot_dimension_numbers<[1], [0], [0], [1], [0, 0, 1, 1], [], []>} : vector<8x32xf32>, vector<32x128xf32>, vector<8x128xf32> -> vector<8x128xf32>
    %144 = arith.addf %141, %143 : vector<8x128xf32>
    %145 = math.tanh %144 : vector<8x128xf32>
    %146 = arith.negf %144 : vector<8x128xf32>
    %147 = math.exp %146 : vector<8x128xf32>
    %cst_58 = arith.constant 1.000000e+00 : f32
    %148 = vector.broadcast %cst_58 : f32 to vector<8x128xf32>
    %149 = arith.addf %148, %147 : vector<8x128xf32>
    %150 = arith.divf %148, %149 : vector<8x128xf32>
    %151 = arith.select %2, %145, %150 : vector<8x128xi1>, vector<8x128xf32>
    %152 = vector.extract_strided_slice %151 {offsets = [0, 0], sizes = [8, 32], strides = [1, 1]} : vector<8x128xf32> to vector<8x32xf32>
    %153 = vector.extract_strided_slice %151 {offsets = [0, 32], sizes = [8, 32], strides = [1, 1]} : vector<8x128xf32> to vector<8x32xf32>
    %154 = vector.extract_strided_slice %151 {offsets = [0, 64], sizes = [8, 32], strides = [1, 1]} : vector<8x128xf32> to vector<8x32xf32>
    %155 = vector.extract_strided_slice %151 {offsets = [0, 96], sizes = [8, 32], strides = [1, 1]} : vector<8x128xf32> to vector<8x32xf32>
    %156 = arith.mulf %153, %90 : vector<8x32xf32>
    %157 = arith.mulf %152, %155 : vector<8x32xf32>
    %158 = arith.addf %156, %157 : vector<8x32xf32>
    %159 = math.tanh %158 : vector<8x32xf32>
    %160 = arith.mulf %154, %159 : vector<8x32xf32>
    %c0_59 = arith.constant 0 : index
    %c0_60 = arith.constant 0 : index
    %161 = vector.load %arg3[%c0_59, %c0_60] : memref<32x128xf32, #tpu.memory_space<vmem>>, vector<32x128xf32>
    %cst_61 = arith.constant dense<0.000000e+00> : vector<8x128xf32>
    %162 = tpu.matmul %136, %161, %cst_61 {dimension_numbers = #tpu.dot_dimension_numbers<[1], [0], [0], [1], [0, 0, 1, 1], [], []>} : vector<8x32xf32>, vector<32x128xf32>, vector<8x128xf32> -> vector<8x128xf32>
    %163 = arith.addf %16, %162 : vector<8x128xf32>
    %c0_62 = arith.constant 0 : index
    %c0_63 = arith.constant 0 : index
    %164 = vector.load %arg6[%c0_62, %c0_63] : memref<32x128xf32, #tpu.memory_space<vmem>>, vector<32x128xf32>
    %cst_64 = arith.constant dense<0.000000e+00> : vector<8x128xf32>
    %165 = tpu.matmul %114, %164, %cst_64 {dimension_numbers = #tpu.dot_dimension_numbers<[1], [0], [0], [1], [0, 0, 1, 1], [], []>} : vector<8x32xf32>, vector<32x128xf32>, vector<8x128xf32> -> vector<8x128xf32>
    %166 = arith.addf %163, %165 : vector<8x128xf32>
    %167 = math.tanh %166 : vector<8x128xf32>
    %168 = arith.negf %166 : vector<8x128xf32>
    %169 = math.exp %168 : vector<8x128xf32>
    %cst_65 = arith.constant 1.000000e+00 : f32
    %170 = vector.broadcast %cst_65 : f32 to vector<8x128xf32>
    %171 = arith.addf %170, %169 : vector<8x128xf32>
    %172 = arith.divf %170, %171 : vector<8x128xf32>
    %173 = arith.select %2, %167, %172 : vector<8x128xi1>, vector<8x128xf32>
    %174 = vector.extract_strided_slice %173 {offsets = [0, 0], sizes = [8, 32], strides = [1, 1]} : vector<8x128xf32> to vector<8x32xf32>
    %175 = vector.extract_strided_slice %173 {offsets = [0, 32], sizes = [8, 32], strides = [1, 1]} : vector<8x128xf32> to vector<8x32xf32>
    %176 = vector.extract_strided_slice %173 {offsets = [0, 64], sizes = [8, 32], strides = [1, 1]} : vector<8x128xf32> to vector<8x32xf32>
    %177 = vector.extract_strided_slice %173 {offsets = [0, 96], sizes = [8, 32], strides = [1, 1]} : vector<8x128xf32> to vector<8x32xf32>
    %178 = arith.mulf %175, %112 : vector<8x32xf32>
    %179 = arith.mulf %174, %177 : vector<8x32xf32>
    %180 = arith.addf %178, %179 : vector<8x32xf32>
    %181 = math.tanh %180 : vector<8x32xf32>
    %182 = arith.mulf %176, %181 : vector<8x32xf32>
    %c0_66 = arith.constant 0 : index
    %c0_67 = arith.constant 0 : index
    %183 = vector.load %arg2[%c0_66, %c0_67] : memref<32x128xf32, #tpu.memory_space<vmem>>, vector<32x128xf32>
    %cst_68 = arith.constant dense<0.000000e+00> : vector<8x128xf32>
    %184 = tpu.matmul %160, %183, %cst_68 {dimension_numbers = #tpu.dot_dimension_numbers<[1], [0], [0], [1], [0, 0, 1, 1], [], []>} : vector<8x32xf32>, vector<32x128xf32>, vector<8x128xf32> -> vector<8x128xf32>
    %185 = arith.addf %13, %184 : vector<8x128xf32>
    %c0_69 = arith.constant 0 : index
    %c0_70 = arith.constant 0 : index
    %186 = vector.load %arg5[%c0_69, %c0_70] : memref<32x128xf32, #tpu.memory_space<vmem>>, vector<32x128xf32>
    %cst_71 = arith.constant dense<0.000000e+00> : vector<8x128xf32>
    %187 = tpu.matmul %136, %186, %cst_71 {dimension_numbers = #tpu.dot_dimension_numbers<[1], [0], [0], [1], [0, 0, 1, 1], [], []>} : vector<8x32xf32>, vector<32x128xf32>, vector<8x128xf32> -> vector<8x128xf32>
    %188 = arith.addf %185, %187 : vector<8x128xf32>
    %189 = math.tanh %188 : vector<8x128xf32>
    %190 = arith.negf %188 : vector<8x128xf32>
    %191 = math.exp %190 : vector<8x128xf32>
    %cst_72 = arith.constant 1.000000e+00 : f32
    %192 = vector.broadcast %cst_72 : f32 to vector<8x128xf32>
    %193 = arith.addf %192, %191 : vector<8x128xf32>
    %194 = arith.divf %192, %193 : vector<8x128xf32>
    %195 = arith.select %2, %189, %194 : vector<8x128xi1>, vector<8x128xf32>
    %196 = vector.extract_strided_slice %195 {offsets = [0, 0], sizes = [8, 32], strides = [1, 1]} : vector<8x128xf32> to vector<8x32xf32>
    %197 = vector.extract_strided_slice %195 {offsets = [0, 32], sizes = [8, 32], strides = [1, 1]} : vector<8x128xf32> to vector<8x32xf32>
    %198 = vector.extract_strided_slice %195 {offsets = [0, 64], sizes = [8, 32], strides = [1, 1]} : vector<8x128xf32> to vector<8x32xf32>
    %199 = vector.extract_strided_slice %195 {offsets = [0, 96], sizes = [8, 32], strides = [1, 1]} : vector<8x128xf32> to vector<8x32xf32>
    %200 = arith.mulf %197, %134 : vector<8x32xf32>
    %201 = arith.mulf %196, %199 : vector<8x32xf32>
    %202 = arith.addf %200, %201 : vector<8x32xf32>
    %203 = math.tanh %202 : vector<8x32xf32>
    %204 = arith.mulf %198, %203 : vector<8x32xf32>
    %c3 = arith.constant 3 : index
    %c0_73 = arith.constant 0 : index
    %c0_74 = arith.constant 0 : index
    %205 = vector.load %arg0[%c3, %c0_73, %c0_74] : memref<8x8x16xf32, #tpu.memory_space<vmem>>, vector<1x8x16xf32>
    %206 = vector.shape_cast %205 : vector<1x8x16xf32> to vector<8x16xf32>
    %c0_75 = arith.constant 0 : index
    %c0_76 = arith.constant 0 : index
    %207 = vector.load %arg1[%c0_75, %c0_76] : memref<16x128xf32, #tpu.memory_space<vmem>>, vector<16x128xf32>
    %cst_77 = arith.constant dense<0.000000e+00> : vector<8x128xf32>
    %208 = tpu.matmul %206, %207, %cst_77 {dimension_numbers = #tpu.dot_dimension_numbers<[1], [0], [0], [1], [0, 0, 1, 1], [], []>} : vector<8x16xf32>, vector<16x128xf32>, vector<8x128xf32> -> vector<8x128xf32>
    %209 = arith.addf %10, %208 : vector<8x128xf32>
    %c0_78 = arith.constant 0 : index
    %c0_79 = arith.constant 0 : index
    %210 = vector.load %arg4[%c0_78, %c0_79] : memref<32x128xf32, #tpu.memory_space<vmem>>, vector<32x128xf32>
    %cst_80 = arith.constant dense<0.000000e+00> : vector<8x128xf32>
    %211 = tpu.matmul %160, %210, %cst_80 {dimension_numbers = #tpu.dot_dimension_numbers<[1], [0], [0], [1], [0, 0, 1, 1], [], []>} : vector<8x32xf32>, vector<32x128xf32>, vector<8x128xf32> -> vector<8x128xf32>
    %212 = arith.addf %209, %211 : vector<8x128xf32>
    %213 = math.tanh %212 : vector<8x128xf32>
    %214 = arith.negf %212 : vector<8x128xf32>
    %215 = math.exp %214 : vector<8x128xf32>
    %cst_81 = arith.constant 1.000000e+00 : f32
    %216 = vector.broadcast %cst_81 : f32 to vector<8x128xf32>
    %217 = arith.addf %216, %215 : vector<8x128xf32>
    %218 = arith.divf %216, %217 : vector<8x128xf32>
    %219 = arith.select %2, %213, %218 : vector<8x128xi1>, vector<8x128xf32>
    %220 = vector.extract_strided_slice %219 {offsets = [0, 0], sizes = [8, 32], strides = [1, 1]} : vector<8x128xf32> to vector<8x32xf32>
    %221 = vector.extract_strided_slice %219 {offsets = [0, 32], sizes = [8, 32], strides = [1, 1]} : vector<8x128xf32> to vector<8x32xf32>
    %222 = vector.extract_strided_slice %219 {offsets = [0, 64], sizes = [8, 32], strides = [1, 1]} : vector<8x128xf32> to vector<8x32xf32>
    %223 = vector.extract_strided_slice %219 {offsets = [0, 96], sizes = [8, 32], strides = [1, 1]} : vector<8x128xf32> to vector<8x32xf32>
    %224 = arith.mulf %221, %158 : vector<8x32xf32>
    %225 = arith.mulf %220, %223 : vector<8x32xf32>
    %226 = arith.addf %224, %225 : vector<8x32xf32>
    %227 = math.tanh %226 : vector<8x32xf32>
    %228 = arith.mulf %222, %227 : vector<8x32xf32>
    %c0_82 = arith.constant 0 : index
    %c0_83 = arith.constant 0 : index
    %229 = vector.load %arg3[%c0_82, %c0_83] : memref<32x128xf32, #tpu.memory_space<vmem>>, vector<32x128xf32>
    %cst_84 = arith.constant dense<0.000000e+00> : vector<8x128xf32>
    %230 = tpu.matmul %204, %229, %cst_84 {dimension_numbers = #tpu.dot_dimension_numbers<[1], [0], [0], [1], [0, 0, 1, 1], [], []>} : vector<8x32xf32>, vector<32x128xf32>, vector<8x128xf32> -> vector<8x128xf32>
    %231 = arith.addf %16, %230 : vector<8x128xf32>
    %c0_85 = arith.constant 0 : index
    %c0_86 = arith.constant 0 : index
    %232 = vector.load %arg6[%c0_85, %c0_86] : memref<32x128xf32, #tpu.memory_space<vmem>>, vector<32x128xf32>
    %cst_87 = arith.constant dense<0.000000e+00> : vector<8x128xf32>
    %233 = tpu.matmul %182, %232, %cst_87 {dimension_numbers = #tpu.dot_dimension_numbers<[1], [0], [0], [1], [0, 0, 1, 1], [], []>} : vector<8x32xf32>, vector<32x128xf32>, vector<8x128xf32> -> vector<8x128xf32>
    %234 = arith.addf %231, %233 : vector<8x128xf32>
    %235 = math.tanh %234 : vector<8x128xf32>
    %236 = arith.negf %234 : vector<8x128xf32>
    %237 = math.exp %236 : vector<8x128xf32>
    %cst_88 = arith.constant 1.000000e+00 : f32
    %238 = vector.broadcast %cst_88 : f32 to vector<8x128xf32>
    %239 = arith.addf %238, %237 : vector<8x128xf32>
    %240 = arith.divf %238, %239 : vector<8x128xf32>
    %241 = arith.select %2, %235, %240 : vector<8x128xi1>, vector<8x128xf32>
    %242 = vector.extract_strided_slice %241 {offsets = [0, 0], sizes = [8, 32], strides = [1, 1]} : vector<8x128xf32> to vector<8x32xf32>
    %243 = vector.extract_strided_slice %241 {offsets = [0, 32], sizes = [8, 32], strides = [1, 1]} : vector<8x128xf32> to vector<8x32xf32>
    %244 = vector.extract_strided_slice %241 {offsets = [0, 64], sizes = [8, 32], strides = [1, 1]} : vector<8x128xf32> to vector<8x32xf32>
    %245 = vector.extract_strided_slice %241 {offsets = [0, 96], sizes = [8, 32], strides = [1, 1]} : vector<8x128xf32> to vector<8x32xf32>
    %246 = arith.mulf %243, %180 : vector<8x32xf32>
    %247 = arith.mulf %242, %245 : vector<8x32xf32>
    %248 = arith.addf %246, %247 : vector<8x32xf32>
    %249 = math.tanh %248 : vector<8x32xf32>
    %250 = arith.mulf %244, %249 : vector<8x32xf32>
    %c0_89 = arith.constant 0 : index
    %c0_90 = arith.constant 0 : index
    %251 = vector.load %arg2[%c0_89, %c0_90] : memref<32x128xf32, #tpu.memory_space<vmem>>, vector<32x128xf32>
    %cst_91 = arith.constant dense<0.000000e+00> : vector<8x128xf32>
    %252 = tpu.matmul %228, %251, %cst_91 {dimension_numbers = #tpu.dot_dimension_numbers<[1], [0], [0], [1], [0, 0, 1, 1], [], []>} : vector<8x32xf32>, vector<32x128xf32>, vector<8x128xf32> -> vector<8x128xf32>
    %253 = arith.addf %13, %252 : vector<8x128xf32>
    %c0_92 = arith.constant 0 : index
    %c0_93 = arith.constant 0 : index
    %254 = vector.load %arg5[%c0_92, %c0_93] : memref<32x128xf32, #tpu.memory_space<vmem>>, vector<32x128xf32>
    %cst_94 = arith.constant dense<0.000000e+00> : vector<8x128xf32>
    %255 = tpu.matmul %204, %254, %cst_94 {dimension_numbers = #tpu.dot_dimension_numbers<[1], [0], [0], [1], [0, 0, 1, 1], [], []>} : vector<8x32xf32>, vector<32x128xf32>, vector<8x128xf32> -> vector<8x128xf32>
    %256 = arith.addf %253, %255 : vector<8x128xf32>
    %257 = math.tanh %256 : vector<8x128xf32>
    %258 = arith.negf %256 : vector<8x128xf32>
    %259 = math.exp %258 : vector<8x128xf32>
    %cst_95 = arith.constant 1.000000e+00 : f32
    %260 = vector.broadcast %cst_95 : f32 to vector<8x128xf32>
    %261 = arith.addf %260, %259 : vector<8x128xf32>
    %262 = arith.divf %260, %261 : vector<8x128xf32>
    %263 = arith.select %2, %257, %262 : vector<8x128xi1>, vector<8x128xf32>
    %264 = vector.extract_strided_slice %263 {offsets = [0, 0], sizes = [8, 32], strides = [1, 1]} : vector<8x128xf32> to vector<8x32xf32>
    %265 = vector.extract_strided_slice %263 {offsets = [0, 32], sizes = [8, 32], strides = [1, 1]} : vector<8x128xf32> to vector<8x32xf32>
    %266 = vector.extract_strided_slice %263 {offsets = [0, 64], sizes = [8, 32], strides = [1, 1]} : vector<8x128xf32> to vector<8x32xf32>
    %267 = vector.extract_strided_slice %263 {offsets = [0, 96], sizes = [8, 32], strides = [1, 1]} : vector<8x128xf32> to vector<8x32xf32>
    %268 = arith.mulf %265, %202 : vector<8x32xf32>
    %269 = arith.mulf %264, %267 : vector<8x32xf32>
    %270 = arith.addf %268, %269 : vector<8x32xf32>
    %271 = math.tanh %270 : vector<8x32xf32>
    %272 = arith.mulf %266, %271 : vector<8x32xf32>
    %c4 = arith.constant 4 : index
    %c0_96 = arith.constant 0 : index
    %c0_97 = arith.constant 0 : index
    %273 = vector.load %arg0[%c4, %c0_96, %c0_97] : memref<8x8x16xf32, #tpu.memory_space<vmem>>, vector<1x8x16xf32>
    %274 = vector.shape_cast %273 : vector<1x8x16xf32> to vector<8x16xf32>
    %c0_98 = arith.constant 0 : index
    %c0_99 = arith.constant 0 : index
    %275 = vector.load %arg1[%c0_98, %c0_99] : memref<16x128xf32, #tpu.memory_space<vmem>>, vector<16x128xf32>
    %cst_100 = arith.constant dense<0.000000e+00> : vector<8x128xf32>
    %276 = tpu.matmul %274, %275, %cst_100 {dimension_numbers = #tpu.dot_dimension_numbers<[1], [0], [0], [1], [0, 0, 1, 1], [], []>} : vector<8x16xf32>, vector<16x128xf32>, vector<8x128xf32> -> vector<8x128xf32>
    %277 = arith.addf %10, %276 : vector<8x128xf32>
    %c0_101 = arith.constant 0 : index
    %c0_102 = arith.constant 0 : index
    %278 = vector.load %arg4[%c0_101, %c0_102] : memref<32x128xf32, #tpu.memory_space<vmem>>, vector<32x128xf32>
    %cst_103 = arith.constant dense<0.000000e+00> : vector<8x128xf32>
    %279 = tpu.matmul %228, %278, %cst_103 {dimension_numbers = #tpu.dot_dimension_numbers<[1], [0], [0], [1], [0, 0, 1, 1], [], []>} : vector<8x32xf32>, vector<32x128xf32>, vector<8x128xf32> -> vector<8x128xf32>
    %280 = arith.addf %277, %279 : vector<8x128xf32>
    %281 = math.tanh %280 : vector<8x128xf32>
    %282 = arith.negf %280 : vector<8x128xf32>
    %283 = math.exp %282 : vector<8x128xf32>
    %cst_104 = arith.constant 1.000000e+00 : f32
    %284 = vector.broadcast %cst_104 : f32 to vector<8x128xf32>
    %285 = arith.addf %284, %283 : vector<8x128xf32>
    %286 = arith.divf %284, %285 : vector<8x128xf32>
    %287 = arith.select %2, %281, %286 : vector<8x128xi1>, vector<8x128xf32>
    %288 = vector.extract_strided_slice %287 {offsets = [0, 0], sizes = [8, 32], strides = [1, 1]} : vector<8x128xf32> to vector<8x32xf32>
    %289 = vector.extract_strided_slice %287 {offsets = [0, 32], sizes = [8, 32], strides = [1, 1]} : vector<8x128xf32> to vector<8x32xf32>
    %290 = vector.extract_strided_slice %287 {offsets = [0, 64], sizes = [8, 32], strides = [1, 1]} : vector<8x128xf32> to vector<8x32xf32>
    %291 = vector.extract_strided_slice %287 {offsets = [0, 96], sizes = [8, 32], strides = [1, 1]} : vector<8x128xf32> to vector<8x32xf32>
    %292 = arith.mulf %289, %226 : vector<8x32xf32>
    %293 = arith.mulf %288, %291 : vector<8x32xf32>
    %294 = arith.addf %292, %293 : vector<8x32xf32>
    %295 = math.tanh %294 : vector<8x32xf32>
    %296 = arith.mulf %290, %295 : vector<8x32xf32>
    %c0_105 = arith.constant 0 : index
    %c0_106 = arith.constant 0 : index
    %297 = vector.load %arg3[%c0_105, %c0_106] : memref<32x128xf32, #tpu.memory_space<vmem>>, vector<32x128xf32>
    %cst_107 = arith.constant dense<0.000000e+00> : vector<8x128xf32>
    %298 = tpu.matmul %272, %297, %cst_107 {dimension_numbers = #tpu.dot_dimension_numbers<[1], [0], [0], [1], [0, 0, 1, 1], [], []>} : vector<8x32xf32>, vector<32x128xf32>, vector<8x128xf32> -> vector<8x128xf32>
    %299 = arith.addf %16, %298 : vector<8x128xf32>
    %c0_108 = arith.constant 0 : index
    %c0_109 = arith.constant 0 : index
    %300 = vector.load %arg6[%c0_108, %c0_109] : memref<32x128xf32, #tpu.memory_space<vmem>>, vector<32x128xf32>
    %cst_110 = arith.constant dense<0.000000e+00> : vector<8x128xf32>
    %301 = tpu.matmul %250, %300, %cst_110 {dimension_numbers = #tpu.dot_dimension_numbers<[1], [0], [0], [1], [0, 0, 1, 1], [], []>} : vector<8x32xf32>, vector<32x128xf32>, vector<8x128xf32> -> vector<8x128xf32>
    %302 = arith.addf %299, %301 : vector<8x128xf32>
    %303 = math.tanh %302 : vector<8x128xf32>
    %304 = arith.negf %302 : vector<8x128xf32>
    %305 = math.exp %304 : vector<8x128xf32>
    %cst_111 = arith.constant 1.000000e+00 : f32
    %306 = vector.broadcast %cst_111 : f32 to vector<8x128xf32>
    %307 = arith.addf %306, %305 : vector<8x128xf32>
    %308 = arith.divf %306, %307 : vector<8x128xf32>
    %309 = arith.select %2, %303, %308 : vector<8x128xi1>, vector<8x128xf32>
    %310 = vector.extract_strided_slice %309 {offsets = [0, 0], sizes = [8, 32], strides = [1, 1]} : vector<8x128xf32> to vector<8x32xf32>
    %311 = vector.extract_strided_slice %309 {offsets = [0, 32], sizes = [8, 32], strides = [1, 1]} : vector<8x128xf32> to vector<8x32xf32>
    %312 = vector.extract_strided_slice %309 {offsets = [0, 64], sizes = [8, 32], strides = [1, 1]} : vector<8x128xf32> to vector<8x32xf32>
    %313 = vector.extract_strided_slice %309 {offsets = [0, 96], sizes = [8, 32], strides = [1, 1]} : vector<8x128xf32> to vector<8x32xf32>
    %314 = arith.mulf %311, %248 : vector<8x32xf32>
    %315 = arith.mulf %310, %313 : vector<8x32xf32>
    %316 = arith.addf %314, %315 : vector<8x32xf32>
    %317 = math.tanh %316 : vector<8x32xf32>
    %318 = arith.mulf %312, %317 : vector<8x32xf32>
    %c0_112 = arith.constant 0 : index
    %c0_113 = arith.constant 0 : index
    %319 = vector.load %arg2[%c0_112, %c0_113] : memref<32x128xf32, #tpu.memory_space<vmem>>, vector<32x128xf32>
    %cst_114 = arith.constant dense<0.000000e+00> : vector<8x128xf32>
    %320 = tpu.matmul %296, %319, %cst_114 {dimension_numbers = #tpu.dot_dimension_numbers<[1], [0], [0], [1], [0, 0, 1, 1], [], []>} : vector<8x32xf32>, vector<32x128xf32>, vector<8x128xf32> -> vector<8x128xf32>
    %321 = arith.addf %13, %320 : vector<8x128xf32>
    %c0_115 = arith.constant 0 : index
    %c0_116 = arith.constant 0 : index
    %322 = vector.load %arg5[%c0_115, %c0_116] : memref<32x128xf32, #tpu.memory_space<vmem>>, vector<32x128xf32>
    %cst_117 = arith.constant dense<0.000000e+00> : vector<8x128xf32>
    %323 = tpu.matmul %272, %322, %cst_117 {dimension_numbers = #tpu.dot_dimension_numbers<[1], [0], [0], [1], [0, 0, 1, 1], [], []>} : vector<8x32xf32>, vector<32x128xf32>, vector<8x128xf32> -> vector<8x128xf32>
    %324 = arith.addf %321, %323 : vector<8x128xf32>
    %325 = math.tanh %324 : vector<8x128xf32>
    %326 = arith.negf %324 : vector<8x128xf32>
    %327 = math.exp %326 : vector<8x128xf32>
    %cst_118 = arith.constant 1.000000e+00 : f32
    %328 = vector.broadcast %cst_118 : f32 to vector<8x128xf32>
    %329 = arith.addf %328, %327 : vector<8x128xf32>
    %330 = arith.divf %328, %329 : vector<8x128xf32>
    %331 = arith.select %2, %325, %330 : vector<8x128xi1>, vector<8x128xf32>
    %332 = vector.extract_strided_slice %331 {offsets = [0, 0], sizes = [8, 32], strides = [1, 1]} : vector<8x128xf32> to vector<8x32xf32>
    %333 = vector.extract_strided_slice %331 {offsets = [0, 32], sizes = [8, 32], strides = [1, 1]} : vector<8x128xf32> to vector<8x32xf32>
    %334 = vector.extract_strided_slice %331 {offsets = [0, 64], sizes = [8, 32], strides = [1, 1]} : vector<8x128xf32> to vector<8x32xf32>
    %335 = vector.extract_strided_slice %331 {offsets = [0, 96], sizes = [8, 32], strides = [1, 1]} : vector<8x128xf32> to vector<8x32xf32>
    %336 = arith.mulf %333, %270 : vector<8x32xf32>
    %337 = arith.mulf %332, %335 : vector<8x32xf32>
    %338 = arith.addf %336, %337 : vector<8x32xf32>
    %339 = math.tanh %338 : vector<8x32xf32>
    %340 = arith.mulf %334, %339 : vector<8x32xf32>
    %c5 = arith.constant 5 : index
    %c0_119 = arith.constant 0 : index
    %c0_120 = arith.constant 0 : index
    %341 = vector.load %arg0[%c5, %c0_119, %c0_120] : memref<8x8x16xf32, #tpu.memory_space<vmem>>, vector<1x8x16xf32>
    %342 = vector.shape_cast %341 : vector<1x8x16xf32> to vector<8x16xf32>
    %c0_121 = arith.constant 0 : index
    %c0_122 = arith.constant 0 : index
    %343 = vector.load %arg1[%c0_121, %c0_122] : memref<16x128xf32, #tpu.memory_space<vmem>>, vector<16x128xf32>
    %cst_123 = arith.constant dense<0.000000e+00> : vector<8x128xf32>
    %344 = tpu.matmul %342, %343, %cst_123 {dimension_numbers = #tpu.dot_dimension_numbers<[1], [0], [0], [1], [0, 0, 1, 1], [], []>} : vector<8x16xf32>, vector<16x128xf32>, vector<8x128xf32> -> vector<8x128xf32>
    %345 = arith.addf %10, %344 : vector<8x128xf32>
    %c0_124 = arith.constant 0 : index
    %c0_125 = arith.constant 0 : index
    %346 = vector.load %arg4[%c0_124, %c0_125] : memref<32x128xf32, #tpu.memory_space<vmem>>, vector<32x128xf32>
    %cst_126 = arith.constant dense<0.000000e+00> : vector<8x128xf32>
    %347 = tpu.matmul %296, %346, %cst_126 {dimension_numbers = #tpu.dot_dimension_numbers<[1], [0], [0], [1], [0, 0, 1, 1], [], []>} : vector<8x32xf32>, vector<32x128xf32>, vector<8x128xf32> -> vector<8x128xf32>
    %348 = arith.addf %345, %347 : vector<8x128xf32>
    %349 = math.tanh %348 : vector<8x128xf32>
    %350 = arith.negf %348 : vector<8x128xf32>
    %351 = math.exp %350 : vector<8x128xf32>
    %cst_127 = arith.constant 1.000000e+00 : f32
    %352 = vector.broadcast %cst_127 : f32 to vector<8x128xf32>
    %353 = arith.addf %352, %351 : vector<8x128xf32>
    %354 = arith.divf %352, %353 : vector<8x128xf32>
    %355 = arith.select %2, %349, %354 : vector<8x128xi1>, vector<8x128xf32>
    %356 = vector.extract_strided_slice %355 {offsets = [0, 0], sizes = [8, 32], strides = [1, 1]} : vector<8x128xf32> to vector<8x32xf32>
    %357 = vector.extract_strided_slice %355 {offsets = [0, 32], sizes = [8, 32], strides = [1, 1]} : vector<8x128xf32> to vector<8x32xf32>
    %358 = vector.extract_strided_slice %355 {offsets = [0, 64], sizes = [8, 32], strides = [1, 1]} : vector<8x128xf32> to vector<8x32xf32>
    %359 = vector.extract_strided_slice %355 {offsets = [0, 96], sizes = [8, 32], strides = [1, 1]} : vector<8x128xf32> to vector<8x32xf32>
    %360 = arith.mulf %357, %294 : vector<8x32xf32>
    %361 = arith.mulf %356, %359 : vector<8x32xf32>
    %362 = arith.addf %360, %361 : vector<8x32xf32>
    %363 = math.tanh %362 : vector<8x32xf32>
    %364 = arith.mulf %358, %363 : vector<8x32xf32>
    %c0_128 = arith.constant 0 : index
    %c0_129 = arith.constant 0 : index
    %365 = vector.load %arg3[%c0_128, %c0_129] : memref<32x128xf32, #tpu.memory_space<vmem>>, vector<32x128xf32>
    %cst_130 = arith.constant dense<0.000000e+00> : vector<8x128xf32>
    %366 = tpu.matmul %340, %365, %cst_130 {dimension_numbers = #tpu.dot_dimension_numbers<[1], [0], [0], [1], [0, 0, 1, 1], [], []>} : vector<8x32xf32>, vector<32x128xf32>, vector<8x128xf32> -> vector<8x128xf32>
    %367 = arith.addf %16, %366 : vector<8x128xf32>
    %c0_131 = arith.constant 0 : index
    %c0_132 = arith.constant 0 : index
    %368 = vector.load %arg6[%c0_131, %c0_132] : memref<32x128xf32, #tpu.memory_space<vmem>>, vector<32x128xf32>
    %cst_133 = arith.constant dense<0.000000e+00> : vector<8x128xf32>
    %369 = tpu.matmul %318, %368, %cst_133 {dimension_numbers = #tpu.dot_dimension_numbers<[1], [0], [0], [1], [0, 0, 1, 1], [], []>} : vector<8x32xf32>, vector<32x128xf32>, vector<8x128xf32> -> vector<8x128xf32>
    %370 = arith.addf %367, %369 : vector<8x128xf32>
    %371 = math.tanh %370 : vector<8x128xf32>
    %372 = arith.negf %370 : vector<8x128xf32>
    %373 = math.exp %372 : vector<8x128xf32>
    %cst_134 = arith.constant 1.000000e+00 : f32
    %374 = vector.broadcast %cst_134 : f32 to vector<8x128xf32>
    %375 = arith.addf %374, %373 : vector<8x128xf32>
    %376 = arith.divf %374, %375 : vector<8x128xf32>
    %377 = arith.select %2, %371, %376 : vector<8x128xi1>, vector<8x128xf32>
    %378 = vector.extract_strided_slice %377 {offsets = [0, 0], sizes = [8, 32], strides = [1, 1]} : vector<8x128xf32> to vector<8x32xf32>
    %379 = vector.extract_strided_slice %377 {offsets = [0, 32], sizes = [8, 32], strides = [1, 1]} : vector<8x128xf32> to vector<8x32xf32>
    %380 = vector.extract_strided_slice %377 {offsets = [0, 64], sizes = [8, 32], strides = [1, 1]} : vector<8x128xf32> to vector<8x32xf32>
    %381 = vector.extract_strided_slice %377 {offsets = [0, 96], sizes = [8, 32], strides = [1, 1]} : vector<8x128xf32> to vector<8x32xf32>
    %382 = arith.mulf %379, %316 : vector<8x32xf32>
    %383 = arith.mulf %378, %381 : vector<8x32xf32>
    %384 = arith.addf %382, %383 : vector<8x32xf32>
    %385 = math.tanh %384 : vector<8x32xf32>
    %386 = arith.mulf %380, %385 : vector<8x32xf32>
    %c0_135 = arith.constant 0 : index
    %c0_136 = arith.constant 0 : index
    %387 = vector.load %arg2[%c0_135, %c0_136] : memref<32x128xf32, #tpu.memory_space<vmem>>, vector<32x128xf32>
    %cst_137 = arith.constant dense<0.000000e+00> : vector<8x128xf32>
    %388 = tpu.matmul %364, %387, %cst_137 {dimension_numbers = #tpu.dot_dimension_numbers<[1], [0], [0], [1], [0, 0, 1, 1], [], []>} : vector<8x32xf32>, vector<32x128xf32>, vector<8x128xf32> -> vector<8x128xf32>
    %389 = arith.addf %13, %388 : vector<8x128xf32>
    %c0_138 = arith.constant 0 : index
    %c0_139 = arith.constant 0 : index
    %390 = vector.load %arg5[%c0_138, %c0_139] : memref<32x128xf32, #tpu.memory_space<vmem>>, vector<32x128xf32>
    %cst_140 = arith.constant dense<0.000000e+00> : vector<8x128xf32>
    %391 = tpu.matmul %340, %390, %cst_140 {dimension_numbers = #tpu.dot_dimension_numbers<[1], [0], [0], [1], [0, 0, 1, 1], [], []>} : vector<8x32xf32>, vector<32x128xf32>, vector<8x128xf32> -> vector<8x128xf32>
    %392 = arith.addf %389, %391 : vector<8x128xf32>
    %393 = math.tanh %392 : vector<8x128xf32>
    %394 = arith.negf %392 : vector<8x128xf32>
    %395 = math.exp %394 : vector<8x128xf32>
    %cst_141 = arith.constant 1.000000e+00 : f32
    %396 = vector.broadcast %cst_141 : f32 to vector<8x128xf32>
    %397 = arith.addf %396, %395 : vector<8x128xf32>
    %398 = arith.divf %396, %397 : vector<8x128xf32>
    %399 = arith.select %2, %393, %398 : vector<8x128xi1>, vector<8x128xf32>
    %400 = vector.extract_strided_slice %399 {offsets = [0, 0], sizes = [8, 32], strides = [1, 1]} : vector<8x128xf32> to vector<8x32xf32>
    %401 = vector.extract_strided_slice %399 {offsets = [0, 32], sizes = [8, 32], strides = [1, 1]} : vector<8x128xf32> to vector<8x32xf32>
    %402 = vector.extract_strided_slice %399 {offsets = [0, 64], sizes = [8, 32], strides = [1, 1]} : vector<8x128xf32> to vector<8x32xf32>
    %403 = vector.extract_strided_slice %399 {offsets = [0, 96], sizes = [8, 32], strides = [1, 1]} : vector<8x128xf32> to vector<8x32xf32>
    %404 = arith.mulf %401, %338 : vector<8x32xf32>
    %405 = arith.mulf %400, %403 : vector<8x32xf32>
    %406 = arith.addf %404, %405 : vector<8x32xf32>
    %407 = math.tanh %406 : vector<8x32xf32>
    %408 = arith.mulf %402, %407 : vector<8x32xf32>
    %c6 = arith.constant 6 : index
    %c0_142 = arith.constant 0 : index
    %c0_143 = arith.constant 0 : index
    %409 = vector.load %arg0[%c6, %c0_142, %c0_143] : memref<8x8x16xf32, #tpu.memory_space<vmem>>, vector<1x8x16xf32>
    %410 = vector.shape_cast %409 : vector<1x8x16xf32> to vector<8x16xf32>
    %c0_144 = arith.constant 0 : index
    %c0_145 = arith.constant 0 : index
    %411 = vector.load %arg1[%c0_144, %c0_145] : memref<16x128xf32, #tpu.memory_space<vmem>>, vector<16x128xf32>
    %cst_146 = arith.constant dense<0.000000e+00> : vector<8x128xf32>
    %412 = tpu.matmul %410, %411, %cst_146 {dimension_numbers = #tpu.dot_dimension_numbers<[1], [0], [0], [1], [0, 0, 1, 1], [], []>} : vector<8x16xf32>, vector<16x128xf32>, vector<8x128xf32> -> vector<8x128xf32>
    %413 = arith.addf %10, %412 : vector<8x128xf32>
    %c0_147 = arith.constant 0 : index
    %c0_148 = arith.constant 0 : index
    %414 = vector.load %arg4[%c0_147, %c0_148] : memref<32x128xf32, #tpu.memory_space<vmem>>, vector<32x128xf32>
    %cst_149 = arith.constant dense<0.000000e+00> : vector<8x128xf32>
    %415 = tpu.matmul %364, %414, %cst_149 {dimension_numbers = #tpu.dot_dimension_numbers<[1], [0], [0], [1], [0, 0, 1, 1], [], []>} : vector<8x32xf32>, vector<32x128xf32>, vector<8x128xf32> -> vector<8x128xf32>
    %416 = arith.addf %413, %415 : vector<8x128xf32>
    %417 = math.tanh %416 : vector<8x128xf32>
    %418 = arith.negf %416 : vector<8x128xf32>
    %419 = math.exp %418 : vector<8x128xf32>
    %cst_150 = arith.constant 1.000000e+00 : f32
    %420 = vector.broadcast %cst_150 : f32 to vector<8x128xf32>
    %421 = arith.addf %420, %419 : vector<8x128xf32>
    %422 = arith.divf %420, %421 : vector<8x128xf32>
    %423 = arith.select %2, %417, %422 : vector<8x128xi1>, vector<8x128xf32>
    %424 = vector.extract_strided_slice %423 {offsets = [0, 0], sizes = [8, 32], strides = [1, 1]} : vector<8x128xf32> to vector<8x32xf32>
    %425 = vector.extract_strided_slice %423 {offsets = [0, 32], sizes = [8, 32], strides = [1, 1]} : vector<8x128xf32> to vector<8x32xf32>
    %426 = vector.extract_strided_slice %423 {offsets = [0, 64], sizes = [8, 32], strides = [1, 1]} : vector<8x128xf32> to vector<8x32xf32>
    %427 = vector.extract_strided_slice %423 {offsets = [0, 96], sizes = [8, 32], strides = [1, 1]} : vector<8x128xf32> to vector<8x32xf32>
    %428 = arith.mulf %425, %362 : vector<8x32xf32>
    %429 = arith.mulf %424, %427 : vector<8x32xf32>
    %430 = arith.addf %428, %429 : vector<8x32xf32>
    %431 = math.tanh %430 : vector<8x32xf32>
    %432 = arith.mulf %426, %431 : vector<8x32xf32>
    %c0_151 = arith.constant 0 : index
    %c0_152 = arith.constant 0 : index
    %433 = vector.load %arg3[%c0_151, %c0_152] : memref<32x128xf32, #tpu.memory_space<vmem>>, vector<32x128xf32>
    %cst_153 = arith.constant dense<0.000000e+00> : vector<8x128xf32>
    %434 = tpu.matmul %408, %433, %cst_153 {dimension_numbers = #tpu.dot_dimension_numbers<[1], [0], [0], [1], [0, 0, 1, 1], [], []>} : vector<8x32xf32>, vector<32x128xf32>, vector<8x128xf32> -> vector<8x128xf32>
    %435 = arith.addf %16, %434 : vector<8x128xf32>
    %c0_154 = arith.constant 0 : index
    %c0_155 = arith.constant 0 : index
    %436 = vector.load %arg6[%c0_154, %c0_155] : memref<32x128xf32, #tpu.memory_space<vmem>>, vector<32x128xf32>
    %cst_156 = arith.constant dense<0.000000e+00> : vector<8x128xf32>
    %437 = tpu.matmul %386, %436, %cst_156 {dimension_numbers = #tpu.dot_dimension_numbers<[1], [0], [0], [1], [0, 0, 1, 1], [], []>} : vector<8x32xf32>, vector<32x128xf32>, vector<8x128xf32> -> vector<8x128xf32>
    %438 = arith.addf %435, %437 : vector<8x128xf32>
    %439 = math.tanh %438 : vector<8x128xf32>
    %440 = arith.negf %438 : vector<8x128xf32>
    %441 = math.exp %440 : vector<8x128xf32>
    %cst_157 = arith.constant 1.000000e+00 : f32
    %442 = vector.broadcast %cst_157 : f32 to vector<8x128xf32>
    %443 = arith.addf %442, %441 : vector<8x128xf32>
    %444 = arith.divf %442, %443 : vector<8x128xf32>
    %445 = arith.select %2, %439, %444 : vector<8x128xi1>, vector<8x128xf32>
    %446 = vector.extract_strided_slice %445 {offsets = [0, 0], sizes = [8, 32], strides = [1, 1]} : vector<8x128xf32> to vector<8x32xf32>
    %447 = vector.extract_strided_slice %445 {offsets = [0, 32], sizes = [8, 32], strides = [1, 1]} : vector<8x128xf32> to vector<8x32xf32>
    %448 = vector.extract_strided_slice %445 {offsets = [0, 64], sizes = [8, 32], strides = [1, 1]} : vector<8x128xf32> to vector<8x32xf32>
    %449 = vector.extract_strided_slice %445 {offsets = [0, 96], sizes = [8, 32], strides = [1, 1]} : vector<8x128xf32> to vector<8x32xf32>
    %450 = arith.mulf %447, %384 : vector<8x32xf32>
    %451 = arith.mulf %446, %449 : vector<8x32xf32>
    %452 = arith.addf %450, %451 : vector<8x32xf32>
    %453 = math.tanh %452 : vector<8x32xf32>
    %454 = arith.mulf %448, %453 : vector<8x32xf32>
    %c0_158 = arith.constant 0 : index
    %c0_159 = arith.constant 0 : index
    %455 = vector.load %arg2[%c0_158, %c0_159] : memref<32x128xf32, #tpu.memory_space<vmem>>, vector<32x128xf32>
    %cst_160 = arith.constant dense<0.000000e+00> : vector<8x128xf32>
    %456 = tpu.matmul %432, %455, %cst_160 {dimension_numbers = #tpu.dot_dimension_numbers<[1], [0], [0], [1], [0, 0, 1, 1], [], []>} : vector<8x32xf32>, vector<32x128xf32>, vector<8x128xf32> -> vector<8x128xf32>
    %457 = arith.addf %13, %456 : vector<8x128xf32>
    %c0_161 = arith.constant 0 : index
    %c0_162 = arith.constant 0 : index
    %458 = vector.load %arg5[%c0_161, %c0_162] : memref<32x128xf32, #tpu.memory_space<vmem>>, vector<32x128xf32>
    %cst_163 = arith.constant dense<0.000000e+00> : vector<8x128xf32>
    %459 = tpu.matmul %408, %458, %cst_163 {dimension_numbers = #tpu.dot_dimension_numbers<[1], [0], [0], [1], [0, 0, 1, 1], [], []>} : vector<8x32xf32>, vector<32x128xf32>, vector<8x128xf32> -> vector<8x128xf32>
    %460 = arith.addf %457, %459 : vector<8x128xf32>
    %461 = math.tanh %460 : vector<8x128xf32>
    %462 = arith.negf %460 : vector<8x128xf32>
    %463 = math.exp %462 : vector<8x128xf32>
    %cst_164 = arith.constant 1.000000e+00 : f32
    %464 = vector.broadcast %cst_164 : f32 to vector<8x128xf32>
    %465 = arith.addf %464, %463 : vector<8x128xf32>
    %466 = arith.divf %464, %465 : vector<8x128xf32>
    %467 = arith.select %2, %461, %466 : vector<8x128xi1>, vector<8x128xf32>
    %468 = vector.extract_strided_slice %467 {offsets = [0, 0], sizes = [8, 32], strides = [1, 1]} : vector<8x128xf32> to vector<8x32xf32>
    %469 = vector.extract_strided_slice %467 {offsets = [0, 32], sizes = [8, 32], strides = [1, 1]} : vector<8x128xf32> to vector<8x32xf32>
    %470 = vector.extract_strided_slice %467 {offsets = [0, 64], sizes = [8, 32], strides = [1, 1]} : vector<8x128xf32> to vector<8x32xf32>
    %471 = vector.extract_strided_slice %467 {offsets = [0, 96], sizes = [8, 32], strides = [1, 1]} : vector<8x128xf32> to vector<8x32xf32>
    %472 = arith.mulf %469, %406 : vector<8x32xf32>
    %473 = arith.mulf %468, %471 : vector<8x32xf32>
    %474 = arith.addf %472, %473 : vector<8x32xf32>
    %475 = math.tanh %474 : vector<8x32xf32>
    %476 = arith.mulf %470, %475 : vector<8x32xf32>
    %c7 = arith.constant 7 : index
    %c0_165 = arith.constant 0 : index
    %c0_166 = arith.constant 0 : index
    %477 = vector.load %arg0[%c7, %c0_165, %c0_166] : memref<8x8x16xf32, #tpu.memory_space<vmem>>, vector<1x8x16xf32>
    %478 = vector.shape_cast %477 : vector<1x8x16xf32> to vector<8x16xf32>
    %c0_167 = arith.constant 0 : index
    %c0_168 = arith.constant 0 : index
    %479 = vector.load %arg1[%c0_167, %c0_168] : memref<16x128xf32, #tpu.memory_space<vmem>>, vector<16x128xf32>
    %cst_169 = arith.constant dense<0.000000e+00> : vector<8x128xf32>
    %480 = tpu.matmul %478, %479, %cst_169 {dimension_numbers = #tpu.dot_dimension_numbers<[1], [0], [0], [1], [0, 0, 1, 1], [], []>} : vector<8x16xf32>, vector<16x128xf32>, vector<8x128xf32> -> vector<8x128xf32>
    %481 = arith.addf %10, %480 : vector<8x128xf32>
    %c0_170 = arith.constant 0 : index
    %c0_171 = arith.constant 0 : index
    %482 = vector.load %arg4[%c0_170, %c0_171] : memref<32x128xf32, #tpu.memory_space<vmem>>, vector<32x128xf32>
    %cst_172 = arith.constant dense<0.000000e+00> : vector<8x128xf32>
    %483 = tpu.matmul %432, %482, %cst_172 {dimension_numbers = #tpu.dot_dimension_numbers<[1], [0], [0], [1], [0, 0, 1, 1], [], []>} : vector<8x32xf32>, vector<32x128xf32>, vector<8x128xf32> -> vector<8x128xf32>
    %484 = arith.addf %481, %483 : vector<8x128xf32>
    %485 = math.tanh %484 : vector<8x128xf32>
    %486 = arith.negf %484 : vector<8x128xf32>
    %487 = math.exp %486 : vector<8x128xf32>
    %cst_173 = arith.constant 1.000000e+00 : f32
    %488 = vector.broadcast %cst_173 : f32 to vector<8x128xf32>
    %489 = arith.addf %488, %487 : vector<8x128xf32>
    %490 = arith.divf %488, %489 : vector<8x128xf32>
    %491 = arith.select %2, %485, %490 : vector<8x128xi1>, vector<8x128xf32>
    %492 = vector.extract_strided_slice %491 {offsets = [0, 0], sizes = [8, 32], strides = [1, 1]} : vector<8x128xf32> to vector<8x32xf32>
    %493 = vector.extract_strided_slice %491 {offsets = [0, 32], sizes = [8, 32], strides = [1, 1]} : vector<8x128xf32> to vector<8x32xf32>
    %494 = vector.extract_strided_slice %491 {offsets = [0, 64], sizes = [8, 32], strides = [1, 1]} : vector<8x128xf32> to vector<8x32xf32>
    %495 = vector.extract_strided_slice %491 {offsets = [0, 96], sizes = [8, 32], strides = [1, 1]} : vector<8x128xf32> to vector<8x32xf32>
    %496 = arith.mulf %493, %430 : vector<8x32xf32>
    %497 = arith.mulf %492, %495 : vector<8x32xf32>
    %498 = arith.addf %496, %497 : vector<8x32xf32>
    %499 = math.tanh %498 : vector<8x32xf32>
    %500 = arith.mulf %494, %499 : vector<8x32xf32>
    %c0_174 = arith.constant 0 : index
    %c0_175 = arith.constant 0 : index
    %501 = vector.load %arg3[%c0_174, %c0_175] : memref<32x128xf32, #tpu.memory_space<vmem>>, vector<32x128xf32>
    %cst_176 = arith.constant dense<0.000000e+00> : vector<8x128xf32>
    %502 = tpu.matmul %476, %501, %cst_176 {dimension_numbers = #tpu.dot_dimension_numbers<[1], [0], [0], [1], [0, 0, 1, 1], [], []>} : vector<8x32xf32>, vector<32x128xf32>, vector<8x128xf32> -> vector<8x128xf32>
    %503 = arith.addf %16, %502 : vector<8x128xf32>
    %c0_177 = arith.constant 0 : index
    %c0_178 = arith.constant 0 : index
    %504 = vector.load %arg6[%c0_177, %c0_178] : memref<32x128xf32, #tpu.memory_space<vmem>>, vector<32x128xf32>
    %cst_179 = arith.constant dense<0.000000e+00> : vector<8x128xf32>
    %505 = tpu.matmul %454, %504, %cst_179 {dimension_numbers = #tpu.dot_dimension_numbers<[1], [0], [0], [1], [0, 0, 1, 1], [], []>} : vector<8x32xf32>, vector<32x128xf32>, vector<8x128xf32> -> vector<8x128xf32>
    %506 = arith.addf %503, %505 : vector<8x128xf32>
    %507 = math.tanh %506 : vector<8x128xf32>
    %508 = arith.negf %506 : vector<8x128xf32>
    %509 = math.exp %508 : vector<8x128xf32>
    %cst_180 = arith.constant 1.000000e+00 : f32
    %510 = vector.broadcast %cst_180 : f32 to vector<8x128xf32>
    %511 = arith.addf %510, %509 : vector<8x128xf32>
    %512 = arith.divf %510, %511 : vector<8x128xf32>
    %513 = arith.select %2, %507, %512 : vector<8x128xi1>, vector<8x128xf32>
    %514 = vector.extract_strided_slice %513 {offsets = [0, 0], sizes = [8, 32], strides = [1, 1]} : vector<8x128xf32> to vector<8x32xf32>
    %515 = vector.extract_strided_slice %513 {offsets = [0, 32], sizes = [8, 32], strides = [1, 1]} : vector<8x128xf32> to vector<8x32xf32>
    %516 = vector.extract_strided_slice %513 {offsets = [0, 64], sizes = [8, 32], strides = [1, 1]} : vector<8x128xf32> to vector<8x32xf32>
    %517 = vector.extract_strided_slice %513 {offsets = [0, 96], sizes = [8, 32], strides = [1, 1]} : vector<8x128xf32> to vector<8x32xf32>
    %518 = arith.mulf %515, %452 : vector<8x32xf32>
    %519 = arith.mulf %514, %517 : vector<8x32xf32>
    %520 = arith.addf %518, %519 : vector<8x32xf32>
    %521 = math.tanh %520 : vector<8x32xf32>
    %522 = arith.mulf %516, %521 : vector<8x32xf32>
    %c0_181 = arith.constant 0 : index
    %c0_182 = arith.constant 0 : index
    %523 = vector.load %arg2[%c0_181, %c0_182] : memref<32x128xf32, #tpu.memory_space<vmem>>, vector<32x128xf32>
    %cst_183 = arith.constant dense<0.000000e+00> : vector<8x128xf32>
    %524 = tpu.matmul %500, %523, %cst_183 {dimension_numbers = #tpu.dot_dimension_numbers<[1], [0], [0], [1], [0, 0, 1, 1], [], []>} : vector<8x32xf32>, vector<32x128xf32>, vector<8x128xf32> -> vector<8x128xf32>
    %525 = arith.addf %13, %524 : vector<8x128xf32>
    %c0_184 = arith.constant 0 : index
    %c0_185 = arith.constant 0 : index
    %526 = vector.load %arg5[%c0_184, %c0_185] : memref<32x128xf32, #tpu.memory_space<vmem>>, vector<32x128xf32>
    %cst_186 = arith.constant dense<0.000000e+00> : vector<8x128xf32>
    %527 = tpu.matmul %476, %526, %cst_186 {dimension_numbers = #tpu.dot_dimension_numbers<[1], [0], [0], [1], [0, 0, 1, 1], [], []>} : vector<8x32xf32>, vector<32x128xf32>, vector<8x128xf32> -> vector<8x128xf32>
    %528 = arith.addf %525, %527 : vector<8x128xf32>
    %529 = math.tanh %528 : vector<8x128xf32>
    %530 = arith.negf %528 : vector<8x128xf32>
    %531 = math.exp %530 : vector<8x128xf32>
    %cst_187 = arith.constant 1.000000e+00 : f32
    %532 = vector.broadcast %cst_187 : f32 to vector<8x128xf32>
    %533 = arith.addf %532, %531 : vector<8x128xf32>
    %534 = arith.divf %532, %533 : vector<8x128xf32>
    %535 = arith.select %2, %529, %534 : vector<8x128xi1>, vector<8x128xf32>
    %536 = vector.extract_strided_slice %535 {offsets = [0, 0], sizes = [8, 32], strides = [1, 1]} : vector<8x128xf32> to vector<8x32xf32>
    %537 = vector.extract_strided_slice %535 {offsets = [0, 32], sizes = [8, 32], strides = [1, 1]} : vector<8x128xf32> to vector<8x32xf32>
    %538 = vector.extract_strided_slice %535 {offsets = [0, 64], sizes = [8, 32], strides = [1, 1]} : vector<8x128xf32> to vector<8x32xf32>
    %539 = vector.extract_strided_slice %535 {offsets = [0, 96], sizes = [8, 32], strides = [1, 1]} : vector<8x128xf32> to vector<8x32xf32>
    %540 = arith.mulf %537, %474 : vector<8x32xf32>
    %541 = arith.mulf %536, %539 : vector<8x32xf32>
    %542 = arith.addf %540, %541 : vector<8x32xf32>
    %543 = math.tanh %542 : vector<8x32xf32>
    %544 = arith.mulf %538, %543 : vector<8x32xf32>
    %c0_188 = arith.constant 0 : index
    %c0_189 = arith.constant 0 : index
    %545 = vector.load %arg3[%c0_188, %c0_189] : memref<32x128xf32, #tpu.memory_space<vmem>>, vector<32x128xf32>
    %cst_190 = arith.constant dense<0.000000e+00> : vector<8x128xf32>
    %546 = tpu.matmul %544, %545, %cst_190 {dimension_numbers = #tpu.dot_dimension_numbers<[1], [0], [0], [1], [0, 0, 1, 1], [], []>} : vector<8x32xf32>, vector<32x128xf32>, vector<8x128xf32> -> vector<8x128xf32>
    %547 = arith.addf %16, %546 : vector<8x128xf32>
    %c0_191 = arith.constant 0 : index
    %c0_192 = arith.constant 0 : index
    %548 = vector.load %arg6[%c0_191, %c0_192] : memref<32x128xf32, #tpu.memory_space<vmem>>, vector<32x128xf32>
    %cst_193 = arith.constant dense<0.000000e+00> : vector<8x128xf32>
    %549 = tpu.matmul %522, %548, %cst_193 {dimension_numbers = #tpu.dot_dimension_numbers<[1], [0], [0], [1], [0, 0, 1, 1], [], []>} : vector<8x32xf32>, vector<32x128xf32>, vector<8x128xf32> -> vector<8x128xf32>
    %550 = arith.addf %547, %549 : vector<8x128xf32>
    %551 = math.tanh %550 : vector<8x128xf32>
    %552 = arith.negf %550 : vector<8x128xf32>
    %553 = math.exp %552 : vector<8x128xf32>
    %cst_194 = arith.constant 1.000000e+00 : f32
    %554 = vector.broadcast %cst_194 : f32 to vector<8x128xf32>
    %555 = arith.addf %554, %553 : vector<8x128xf32>
    %556 = arith.divf %554, %555 : vector<8x128xf32>
    %557 = arith.select %2, %551, %556 : vector<8x128xi1>, vector<8x128xf32>
    %558 = vector.extract_strided_slice %557 {offsets = [0, 0], sizes = [8, 32], strides = [1, 1]} : vector<8x128xf32> to vector<8x32xf32>
    %559 = vector.extract_strided_slice %557 {offsets = [0, 32], sizes = [8, 32], strides = [1, 1]} : vector<8x128xf32> to vector<8x32xf32>
    %560 = vector.extract_strided_slice %557 {offsets = [0, 64], sizes = [8, 32], strides = [1, 1]} : vector<8x128xf32> to vector<8x32xf32>
    %561 = vector.extract_strided_slice %557 {offsets = [0, 96], sizes = [8, 32], strides = [1, 1]} : vector<8x128xf32> to vector<8x32xf32>
    %562 = arith.mulf %559, %520 : vector<8x32xf32>
    %563 = arith.mulf %558, %561 : vector<8x32xf32>
    %564 = arith.addf %562, %563 : vector<8x32xf32>
    %565 = math.tanh %564 : vector<8x32xf32>
    %566 = arith.mulf %560, %565 : vector<8x32xf32>
    %c0_195 = arith.constant 0 : index
    %c0_196 = arith.constant 0 : index
    %567 = vector.load %arg10[%c0_195, %c0_196] : memref<32x32xf32, #tpu.memory_space<vmem>>, vector<32x32xf32>
    %cst_197 = arith.constant dense<0.000000e+00> : vector<8x32xf32>
    %568 = tpu.matmul %566, %567, %cst_197 {dimension_numbers = #tpu.dot_dimension_numbers<[1], [0], [0], [1], [0, 0, 1, 1], [], []>} : vector<8x32xf32>, vector<32x32xf32>, vector<8x32xf32> -> vector<8x32xf32>
    %c0_198 = arith.constant 0 : index
    %c0_199 = arith.constant 0 : index
    %569 = vector.load %arg11[%c0_198, %c0_199] : memref<1x32xf32, #tpu.memory_space<vmem>>, vector<1x32xf32>
    %570 = vector.broadcast %569 : vector<1x32xf32> to vector<8x32xf32>
    %571 = arith.addf %568, %570 : vector<8x32xf32>
    %572 = arith.mulf %571, %571 : vector<8x32xf32>
    %cst_200 = arith.constant dense<0.000000e+00> : vector<8xf32>
    %573 = vector.multi_reduction <add>, %572, %cst_200 [1] : vector<8x32xf32> to vector<8xf32>
    %574 = vector.shape_cast %573 : vector<8xf32> to vector<8x1xf32>
    %cst_201 = arith.constant 1.000000e+00 : f32
    %575 = vector.broadcast %cst_201 : f32 to vector<8x1xf32>
    %576 = arith.select %5, %574, %575 : vector<8x1xi1>, vector<8x1xf32>
    %577 = math.rsqrt %576 : vector<8x1xf32>
    %578 = vector.broadcast %577 : vector<8x1xf32> to vector<8x32xf32>
    %579 = arith.mulf %571, %578 : vector<8x32xf32>
    %580 = vector.broadcast %7 : vector<8x1xf32> to vector<8x32xf32>
    %581 = arith.mulf %579, %580 : vector<8x32xf32>
    %cst_202 = arith.constant dense<0.000000e+00> : vector<32xf32>
    %582 = vector.multi_reduction <add>, %581, %cst_202 [0] : vector<8x32xf32> to vector<32xf32>
    %583 = vector.shape_cast %582 : vector<32xf32> to vector<1x32xf32>
    %cst_203 = arith.constant 2.000000e-01 : f32
    %584 = vector.broadcast %cst_203 : f32 to vector<1x32xf32>
    %585 = arith.mulf %583, %584 : vector<1x32xf32>
    %c0_204 = arith.constant 0 : index
    %c0_205 = arith.constant 0 : index
    %586 = vector.load %arg12[%c0_204, %c0_205] : memref<1x32xf32, #tpu.memory_space<vmem>>, vector<1x32xf32>
    tpu.vector_store %arg12[%c0_204, %c0_205], %585 {strides = array<i32>} : memref<1x32xf32, #tpu.memory_space<vmem>>, vector<1x32xf32>,
    return
  }
}

</mosaic_0001>

<bundles_post_ra>
// kernel: tpu_custom_call.1
= control target key start
LH: loop header
LB: loop body
LE: loop exit
PB: predicated region body
PF: predicated region fallthrough
CT: control target
= control target key end

     0   :  { %17 = vsyncpa [#allocation3], 0  ;;  %s3667_s0 = inlined_call_operand.hbm [shape: f32[8,8,16], index: 0, kind: input, shape index: {}]   ;;  %s3668_s1 = inlined_call_operand.hbm [shape: f32[16,128], index: 1, kind: input, shape index: {}]   ;;  %s3669_s2 = inlined_call_operand.hbm [shape: f32[32,128], index: 2, kind: input, shape index: {}]   ;;  %s3670_s3 = inlined_call_operand.hbm [shape: f32[32,128], index: 3, kind: input, shape index: {}]   ;;  %s3671_s4 = inlined_call_operand.hbm [shape: f32[32,128], index: 4, kind: input, shape index: {}]   ;;  %s3672_s5 = inlined_call_operand.hbm [shape: f32[32,128], index: 5, kind: input, shape index: {}]   ;;  %s3673_s6 = inlined_call_operand.hbm [shape: f32[32,128], index: 6, kind: input, shape index: {}]   ;;  %s3674_s7 = inlined_call_operand.vmem [shape: f32[1,128], index: 7, kind: input, shape index: {}]   ;;  %s3675_s8 = inlined_call_operand.vmem [shape: f32[1,128], index: 8, kind: input, shape index: {}]   ;;  %s3676_s9 = inlined_call_operand.vmem [shape: f32[1,128], index: 9, kind: input, shape index: {}]   ;;  %s3677_s10 = inlined_call_operand.hbm [shape: f32[32,32], index: 10, kind: input, shape index: {}]   ;;  %s3678_s11 = inlined_call_operand.vmem [shape: f32[1,32], index: 11, kind: input, shape index: {}]   ;;  %s3679_s12 = inlined_call_operand.hbm [shape: f32[1,32], index: 12, kind: output, shape index: {}]  }
   0x1   :  { %18 = vsyncpa [#allocation6], 0 }
   0x2   :  { %19 = vsyncpa [#allocation9], 0 }
   0x3   :  { %20 = vsyncpa [#allocation12], 0 }
   0x4   :  { %21 = vsyncpa [#allocation15], 0 }
   0x5   :  { %22 = vsyncpa [#allocation4], 0  ;;  %s40_s23 = sshll.u32 %s3668_s1, 4  ;;  %s2905_s24 = smov [#allocation5]   ;;  %s41_s23 = int_to_ptr.hbm [resolvable:$true] %s40_s23 }
   0x6   :  { %s42_s25 = sshll.u32 %s2905_s24, 4  ;;  %s66_s28 = sshll.u32 %s3670_s3, 4  ;;  %s43_s25 = int_to_ptr.vmem [resolvable:$true] %s42_s25  ;;  %s67_s28 = int_to_ptr.hbm [resolvable:$true] %s66_s28 }
   0x7   :  { %s2906_s29 = smov 128   ;;  %s2907_s30 = smov 8  }
   0x8   :  { %48 = dma.hbm_to_vmem [thread:$0]  %s41_s23, 256, %s43_s25, [#allocation6], %s2906_s29, %s2906_s29, %s2907_s30  }
   0x9   :  { %s2908_s13 = smov [#allocation8]   ;;  %s92_s1 = sshll.u32 %s3672_s5, 4  ;;  %s93_s1 = int_to_ptr.hbm [resolvable:$true] %s92_s1 }
   0xa   :  { %s68_s14 = sshll.u32 %s2908_s13, 4  ;;  %s27_s18 = sshll.u32 %s3667_s0, 4  ;;  %s69_s14 = int_to_ptr.vmem [resolvable:$true] %s68_s14  ;;  %s28_s18 = int_to_ptr.hbm [resolvable:$true] %s27_s18 }
   0xb   :  { %74 = dma.hbm_to_vmem [thread:$0]  %s67_s28, 512, %s69_s14, [#allocation9], %s2906_s29, %s2906_s29, %s2907_s30  }
   0xc   :  { %s2909_s19 = smov [#allocation11]   ;;  %s2910_s21 = smov [#allocation2]  }
   0xd   :  { %s94_s20 = sshll.u32 %s2909_s19, 4  ;;  %s29_s5 = sshll.u32 %s2910_s21, 4  ;;  %s95_s20 = int_to_ptr.vmem [resolvable:$true] %s94_s20  ;;  %s30_s5 = int_to_ptr.vmem [resolvable:$true] %s29_s5 }
   0xe   :  { %100 = dma.hbm_to_vmem [thread:$0]  %s93_s1, 512, %s95_s20, [#allocation12], %s2906_s29, %s2906_s29, %s2907_s30  }
   0xf   :  { %s53_s24 = sshll.u32 %s3669_s2, 4  ;;  %s79_s26 = sshll.u32 %s3671_s4, 4  ;;  %s54_s24 = int_to_ptr.hbm [resolvable:$true] %s53_s24  ;;  %s80_s26 = int_to_ptr.hbm [resolvable:$true] %s79_s26 }
  0x10   :  { %35 = dma.hbm_to_vmem [thread:$0]  %s28_s18, 1024, %s30_s5, [#allocation3], %s2906_s29, %s2906_s29, %s2907_s30  }
  0x11   :  { %s2911_s27 = smov [#allocation7]   ;;  %s2912_s13 = smov [#allocation10]  }
  0x12   :  { %s55_s28 = sshll.u32 %s2911_s27, 4  ;;  %s81_s2 = sshll.u32 %s2912_s13, 4  ;;  %s56_s28 = int_to_ptr.vmem [resolvable:$true] %s55_s28  ;;  %s82_s2 = int_to_ptr.vmem [resolvable:$true] %s81_s2 }
  0x13   :  { %61 = dma.hbm_to_vmem [thread:$0]  %s54_s24, 512, %s56_s28, [#allocation6], %s2906_s29, %s2906_s29, %s2907_s30  }
  0x14   :  { %s105_s16 = sshll.u32 %s3673_s6, 4  ;;  %s124_s3 = sshll.u32 %s3677_s10, 4  ;;  %s106_s16 = int_to_ptr.hbm [resolvable:$true] %s105_s16  ;;  %s125_s3 = int_to_ptr.hbm [resolvable:$true] %s124_s3 }
  0x15   :  { %87 = dma.hbm_to_vmem [thread:$0]  %s80_s26, 512, %s82_s2, [#allocation9], %s2906_s29, %s2906_s29, %s2907_s30  }
  0x16   :  { %s2913_s17 = smov [#allocation13]   ;;  %s2914_s19 = smov [#allocation14]  }
  0x17   :  { %s107_s18 = sshll.u32 %s2913_s17, 4  ;;  %s126_s6 = sshll.u32 %s2914_s19, 4  ;;  %s108_s18 = int_to_ptr.vmem [resolvable:$true] %s107_s18  ;;  %s127_s6 = int_to_ptr.vmem [resolvable:$true] %s126_s6 }
  0x18   :  { %113 = dma.hbm_to_vmem [thread:$0]  %s106_s16, 512, %s108_s18, [#allocation12], %s2906_s29, %s2906_s29, %s2907_s30  }
  0x19   :  { %132 = dma.hbm_to_vmem [thread:$0]  %s125_s3, 512, %s127_s6, [#allocation15], %s2906_s29, %s2906_s29, %s2907_s30  }
  0x1a   :  { %2893 = dma.done.wait [#allocation3], 1024  }
  0x1b   :  { %2894 = vsyncadd [#allocation3], 4294966272 }
  0x1c   :  { %2895 = dma.done.wait [#allocation6], 768  }
  0x1d   :  { %2896 = vsyncadd [#allocation6], 4294966528 }
  0x1e   :  { %2897 = dma.done.wait [#allocation9], 1024  }
  0x1f   :  { %2898 = vsyncadd [#allocation9], 4294966272 }
  0x20   :  { %2899 = dma.done.wait [#allocation12], 1024  }
  0x21   :  { %2900 = vsyncadd [#allocation12], 4294966272 }
  0x22   :  { %2901 = dma.done.wait [#allocation15], 512  }
  0x23   :  { %2902 = vsyncadd [#allocation15], 4294966784  ;;  %v3032_v0 = vld [vmem:[#allocation10 + $0x18] sm:$0xff]  ;;  %v3036_v2 = vld [vmem:[#allocation10 + $0x10] sm:$0xff]  ;;  %vm190_vm0 = vcmask 130048   ;;  %v2915_v7 = vmov 0.0   ;;  %v167_v17 = vlaneseq }
  0x24   :  { %v3034_v1 = vld [vmem:[#allocation5 + $0x8] sm:$0xff]  ;;  %235 = vmatpush.msra.mxu1 %v3032_v0  ;;  %v3040_v3 = vld [vmem:[#allocation5] sm:$0xff]  ;;  %v3042_v5 = vld [vmem:[#allocation10 + $0x8] sm:$0xff]  ;;  %s2916_s30 = smov 32   ;;  %s2917_s20 = smov 64   ;;  %vm219_vm6 = vcmask 261120  }
  0x25   :  { %208 = vmatpush.msra.mxu0 %v3034_v1  ;;  %v187_v4 = vld [vmem:[#allocation2] sm:$0xff]  ;;  %v3047_v6 = vld [vmem:[#allocation10] sm:$0xff]  ;;  %v3065_v20 = vand.u32 127, %v167_v17  ;;  %v3076_v36 = vld [vmem:[#allocation7 + $0x18] sm:$0xff]  ;;  %s2355_s14 = sshll.u32 %s3679_s12, 4  ;;  %s2356_s14 = int_to_ptr.hbm [resolvable:$true] %s2355_s14 }
  0x26   :  { %236 = vmatpush.msra.mxu1 %v3036_v2  ;;  %v3061_v8 = vld [vmem:[%s3674_s7] ss:$0 sm:$0xff]  ;;  %v3080_v38 = vld [vmem:[#allocation11 + $0x18] sm:$0xff]  ;;  %303 = vmatpush.msra.mxu2 %v3076_v36  ;;  %v3086_v41 = vld [vmem:[#allocation7 + $0x8] sm:$0xff] }
  0x27   :  { %209 = vmatpush.msra.mxu0 %v3040_v3  ;;  %vm169_vm3 = vcmp.ge.s32.totalorder %v3065_v20, 96  ;;  %v3078_v37 = vld [vmem:[#allocation7 + $0x10] sm:$0xff]  ;;  %328 = vmatpush.msra.mxu3 %v3080_v38  ;;  %v376_v40 = vld [vmem:[#allocation2 + $0x8] sm:$0xff]  ;;  %v3089_v42 = vld [vmem:[#allocation11 + $0x8] sm:$0xff] }
  0x28   :  { %2370 = vmatmul.msk.f32.vlgmr.msra.gmra.mxu0 %vm190_vm0, %v187_v4  ;;  %237 = vmatpush.msra.mxu1 %v3042_v5  ;;  %v3084_v39 = vld [vmem:[#allocation11 + $0x10] sm:$0xff]  ;;  %v3094_v43 = vld [vmem:[#allocation7] sm:$0xff] }
  0x29   :  { %394 = vmatpush.msrb.mxu0 %v3034_v1  ;;  %304 = vmatpush.msra.mxu2 %v3078_v37  ;;  %v3106_v46 = vld [vmem:[#allocation11] sm:$0xff]  ;;  %v3117_v53 = vld [vmem:[%s3675_s8] ss:$0 sm:$0xff] }
  0x2a   :  { %238 = vmatpush.msra.mxu1 %v3047_v6  ;;  %329 = vmatpush.msra.mxu3 %v3084_v39  ;;  %v2288_v20 = vld [vmem:[#allocation14] sm:$0xff] }
  0x2b   :  { %395 = vmatpush.msrb.mxu0 %v3040_v3  ;;  %239 = vmatmul.f32.vlgmr.msra.gmra.mxu1 %v2915_v7 }
  0x2c   :  { %413 = vmatpush.msrb.mxu1 %v3032_v0  ;;  %305 = vmatpush.msra.mxu2 %v3086_v41 }
  0x2d   :  { %570 = vmatpush.msra.mxu0 %v3076_v36  ;;  %330 = vmatpush.msra.mxu3 %v3089_v42 }
  0x2e   :  { %414 = vmatpush.msrb.mxu1 %v3036_v2  ;;  %306 = vmatpush.msra.mxu2 %v3094_v43 }
  0x2f   :  { %571 = vmatpush.msra.mxu0 %v3078_v37  ;;  %331 = vmatpush.msra.mxu3 %v3106_v46 }
  0x30   :  { %415 = vmatpush.msrb.mxu1 %v3042_v5  ;;  %2374 = vmatmul.msk.f32.vlgmr.msrb.gmra.mxu0 %vm190_vm0, %v376_v40 }
  0x31   :  { %572 = vmatpush.msra.mxu0 %v3086_v41  ;;  %332 = vmatmul.f32.vlgmr.msra.gmra.mxu3 %v2915_v7 }
  0x32   :  { %416 = vmatpush.msrb.mxu1 %v3047_v6 }
  0x33   :  { %573 = vmatpush.msra.mxu0 %v3094_v43 }
  0x34   :  { %591 = vmatpush.msra.mxu1 %v3080_v38 }
  0x36   :  { %592 = vmatpush.msra.mxu1 %v3084_v39 }
  0x38   :  { %593 = vmatpush.msra.mxu1 %v3089_v42 }
  0x3a   :  { %594 = vmatpush.msra.mxu1 %v3106_v46 }
  0xa5   :  { %v211_v9 = vpop.f32.mrf.mxu0 }
  0xa6   :  { %v214_v10 = vadd.f32 %v3061_v8, %v211_v9 }
  0xa8   :  { %v240_v11 = vpop.f32.mrf.mxu1 }
  0xa9   :  { %v243_v12 = vadd.f32 %v240_v11, %v214_v10 }
  0xab   :  { %v2371_v13 = vmul.f32 -1.442695, %v243_v12 }
  0xad   :  { %2458 = vpow2.f32 %v2371_v13  ;;  %v397_v48 = vpop.f32.mrf.mxu0 }
  0xae   :  { %v400_v49 = vadd.f32 %v3061_v8, %v397_v48 }
  0xb3   :  { %v2459_v14 = vpop.eup %2458 }
  0xb4   :  { %v248_v15 = vadd.f32 1.0, %v2459_v14  ;;  %v333_v55 = vpop.f32.mrf.mxu3 }
  0xb6   :  { %2460 = vrcp.f32 %v248_v15  ;;  %v260_v21 = vand.u32 2147483648, %v248_v15  ;;  %v258_v23 = vand.u32 2147483647, %v248_v15  ;;  %vm254_vm2 = vweird.f32 %v248_v15 }
  0xb7   :  { %2462 = vtanh.f32 %v243_v12 }
  0xb8   :  { %v261_v25 = vor.u32 1.1754944e-38, %v260_v21  ;;  %vm259_vm5 = vcmp.eq.f32.partialorder %v258_v23, 8.507059e+37 }
  0xbc   :  { %v2461_v16 = vpop.eup %2460 }
  0xbd   :  { %v250_v18 = vmul.f32 %v2461_v16, %v248_v15  ;;  %vm255_vm1 = vweird.f32 %v2461_v16  ;;  %v2463_v27 = vpop.eup %2462 }
  0xbe   :  { %vm256_vm4 = vmor %vm254_vm2, %vm255_vm1 }
  0xbf   :  { %v251_v19 = vsub.f32 1.0, %v250_v18 }
  0xc1   :  { %v252_v22 = vmul.f32 %v2461_v16, %v251_v19 }
  0xc3   :  { %v253_v24 = vadd.f32 %v2461_v16, %v252_v22 }
  0xc5   :  { %v257_v26 = vsel %vm256_vm4, %v2461_v16, %v253_v24 }
  0xc6   :  { %v262_v28 = vsel %vm259_vm5, %v261_v25, %v257_v26 }
  0xc7   :  { %v264_v29 = vsel %vm169_vm3, %v2463_v27, %v262_v28 }
  0xc8   :  { %267 = vrot.lane.b32.xlu0 %v264_v29, %s2916_s30  ;;  %v265_v32 = vmul.f32 0.0, %v264_v29 }
 0x13a   :  { %v268_v30 = vpop.permute.xlu0 %267 }
 0x13b   :  { %v270_v31 = vmul.f32 %v268_v30, %v264_v29 }
 0x13d   :  { %272 = vrot.lane.b32.xlu0 %v270_v31, %s2916_s30 }
 0x1af   :  { %v273_v33 = vpop.permute.xlu0 %272 }
 0x1b0   :  { %v3072_v34 = vadd.f32 %v273_v33, %v265_v32 }
 0x1b2   :  { %2464 = vtanh.f32 %v3072_v34 }
 0x1b8   :  { %v2465_v35 = vpop.eup %2464 }
 0x1b9   :  { %278 = vrot.lane.b32.xlu1 %v2465_v35, %s2916_s30 }
 0x22b   :  { %v279_v44 = vpop.permute.xlu1 %278 }
 0x22c   :  { %v281_v45 = vmul.f32 %v279_v44, %v264_v29 }
 0x22e   :  { %287 = vrot.lane.b32.xlu1 %v281_v45, %s2917_s20 }
 0x2a0   :  { %v288_v47 = vpop.permute.xlu1 %287 }
 0x2a1   :  { %2372 = vmatmul.msk.f32.vlgmr.msra.gmra.mxu2 %vm219_vm6, %v288_v47  ;;  %2375 = vmatmul.msk.f32.vlgmr.msrb.gmra.mxu1 %vm219_vm6, %v288_v47 }
 0x31e   :  { %v418_v50 = vpop.f32.mrf.mxu1 }
 0x31f   :  { %v421_v51 = vadd.f32 %v418_v50, %v400_v49 }
 0x321   :  { %v2376_v52 = vmul.f32 -1.442695, %v421_v51 }
 0x323   :  { %2466 = vpow2.f32 %v2376_v52 }
 0x324   :  { %v308_v54 = vpop.f32.mrf.mxu2 }
 0x325   :  { %v311_v56 = vadd.f32 %v3117_v53, %v308_v54 }
 0x327   :  { %v336_v57 = vadd.f32 %v333_v55, %v311_v56 }
 0x329   :  { %v2467_v58 = vpop.eup %2466  ;;  %v2373_v59 = vmul.f32 -1.442695, %v336_v57 }
 0x32a   :  { %v426_v60 = vadd.f32 1.0, %v2467_v58  ;;  %v3140_v58 = vld [vmem:[#allocation13 + $0x18] sm:$0xff] }
 0x32b   :  { %2468 = vpow2.f32 %v2373_v59  ;;  %506 = vmatpush.msrb.mxu3 %v3140_v58  ;;  %v3146_v59 = vld [vmem:[#allocation13 + $0x10] sm:$0xff]  ;;  %766 = vmatpush.msrb.mxu1 %v3140_v58 }
 0x32c   :  { %2470 = vrcp.f32 %v426_v60  ;;  %v438_v25 = vand.u32 2147483648, %v426_v60  ;;  %vm432_vm12 = vweird.f32 %v426_v60  ;;  %v436_v27 = vand.u32 2147483647, %v426_v60 }
 0x32d   :  { %507 = vmatpush.msrb.mxu3 %v3146_v59  ;;  %767 = vmatpush.msrb.mxu1 %v3146_v59 }
 0x32e   :  { %v439_v29 = vor.u32 1.1754944e-38, %v438_v25  ;;  %vm437_vm14 = vcmp.eq.f32.partialorder %v436_v27, 8.507059e+37 }
 0x331   :  { %v2469_v61 = vpop.eup %2468 }
 0x332   :  { %v341_v62 = vadd.f32 1.0, %v2469_v61  ;;  %v2471_v63 = vpop.eup %2470  ;;  %v3150_v61 = vld [vmem:[#allocation13 + $0x8] sm:$0xff] }
 0x333   :  { %v428_v4 = vmul.f32 %v2471_v63, %v426_v60  ;;  %vm433_vm11 = vweird.f32 %v2471_v63  ;;  %v3148_v60 = vld [vmem:[#allocation8 + $0x8] sm:$0xff]  ;;  %508 = vmatpush.msrb.mxu3 %v3150_v61  ;;  %768 = vmatpush.msrb.mxu1 %v3150_v61 }
 0x334   :  { %2472 = vrcp.f32 %v341_v62  ;;  %v353_v13 = vand.u32 2147483648, %v341_v62  ;;  %v351_v15 = vand.u32 2147483647, %v341_v62  ;;  %vm347_vm8 = vweird.f32 %v341_v62  ;;  %vm434_vm13 = vmor %vm432_vm12, %vm433_vm11 }
 0x335   :  { %v429_v11 = vsub.f32 1.0, %v428_v4  ;;  %2474 = vtanh.f32 %v336_v57  ;;  %v3138_v57 = vld [vmem:[#allocation8 + $0x18] sm:$0xff] }
 0x336   :  { %v354_v19 = vor.u32 1.1754944e-38, %v353_v13  ;;  %vm352_vm10 = vcmp.eq.f32.partialorder %v351_v15, 8.507059e+37  ;;  %2476 = vtanh.f32 %v421_v51  ;;  %481 = vmatpush.msrb.mxu2 %v3138_v57  ;;  %740 = vmatpush.msrb.mxu0 %v3138_v57  ;;  %v3208_v13 = vld [vmem:[%s3676_s9] ss:$0 sm:$0xff] }
 0x337   :  { %v430_v16 = vmul.f32 %v2471_v63, %v429_v11  ;;  %v639_v11 = vld [vmem:[#allocation2 + $0x10] sm:$0xff] }
 0x339   :  { %v431_v22 = vadd.f32 %v2471_v63, %v430_v16 }
 0x33a   :  { %v2473_v9 = vpop.eup %2472 }
 0x33b   :  { %v343_v10 = vmul.f32 %v2473_v9, %v341_v62  ;;  %vm348_vm7 = vweird.f32 %v2473_v9  ;;  %v2475_v23 = vpop.eup %2474  ;;  %v435_v28 = vsel %vm434_vm13, %v2471_v63, %v431_v22  ;;  %v3156_v62 = vld [vmem:[#allocation8] sm:$0xff] }
 0x33c   :  { %vm349_vm9 = vmor %vm347_vm8, %vm348_vm7  ;;  %v440_v30 = vsel %vm437_vm14, %v439_v29, %v435_v28  ;;  %v2477_v31 = vpop.eup %2476  ;;  %v3158_v63 = vld [vmem:[#allocation13] sm:$0xff] }
 0x33d   :  { %v344_v12 = vsub.f32 1.0, %v343_v10  ;;  %v442_v32 = vsel %vm169_vm3, %v2477_v31, %v440_v30  ;;  %509 = vmatpush.msrb.mxu3 %v3158_v63  ;;  %769 = vmatpush.msrb.mxu1 %v3158_v63 }
 0x33e   :  { %v443_v49 = vmul.f32 %v442_v32, %v3072_v34  ;;  %v3142_v34 = vld [vmem:[#allocation8 + $0x10] sm:$0xff]  ;;  %510 = vmatmul.f32.vlgmr.msrb.gmra.mxu3 %v2915_v7 }
 0x33f   :  { %v345_v14 = vmul.f32 %v2473_v9, %v344_v12  ;;  %482 = vmatpush.msrb.mxu2 %v3142_v34  ;;  %741 = vmatpush.msrb.mxu0 %v3142_v34 }
 0x340   :  { %676 = vmatpush.msra.mxu3 %v3032_v0 }
 0x341   :  { %v346_v18 = vadd.f32 %v2473_v9, %v345_v14  ;;  %483 = vmatpush.msrb.mxu2 %v3148_v60  ;;  %742 = vmatpush.msrb.mxu0 %v3148_v60 }
 0x342   :  { %677 = vmatpush.msra.mxu3 %v3036_v2 }
 0x343   :  { %v350_v21 = vsel %vm349_vm9, %v2473_v9, %v346_v18  ;;  %484 = vmatpush.msrb.mxu2 %v3156_v62  ;;  %743 = vmatpush.msrb.mxu0 %v3156_v62 }
 0x344   :  { %v355_v24 = vsel %vm352_vm10, %v354_v19, %v350_v21  ;;  %678 = vmatpush.msra.mxu3 %v3042_v5 }
 0x345   :  { %v357_v26 = vsel %vm169_vm3, %v2475_v23, %v355_v24  ;;  %657 = vmatpush.msra.mxu2 %v3034_v1 }
 0x346   :  { %360 = vrot.lane.b32.xlu2 %v357_v26, %s2916_s30  ;;  %v358_v45 = vmul.f32 0.0, %v357_v26  ;;  %679 = vmatpush.msra.mxu3 %v3047_v6 }
 0x347   :  { %658 = vmatpush.msra.mxu2 %v3040_v3 }
 0x348   :  { %851 = vmatpush.msrb.mxu3 %v3080_v38 }
 0x34a   :  { %852 = vmatpush.msrb.mxu3 %v3084_v39 }
 0x34c   :  { %853 = vmatpush.msrb.mxu3 %v3089_v42 }
 0x34e   :  { %445 = vrot.lane.b32.xlu2 %v442_v32, %s2916_s30  ;;  %854 = vmatpush.msrb.mxu3 %v3106_v46 }
 0x3a0   :  { %v361_v33 = vpop.permute.xlu2 %360 }
 0x3a1   :  { %v363_v35 = vmul.f32 %v361_v33, %v357_v26 }
 0x3a3   :  { %365 = vrot.lane.b32.xlu0 %v363_v35, %s2916_s30 }
 0x3a8   :  { %v446_v40 = vpop.permute.xlu2 %445 }
 0x3a9   :  { %v448_v44 = vmul.f32 %v446_v40, %v442_v32 }
 0x3ab   :  { %450 = vrot.lane.b32.xlu1 %v448_v44, %s2916_s30 }
 0x3c1   :  { %v511_v15 = vpop.f32.mrf.mxu3 }
 0x415   :  { %v366_v47 = vpop.permute.xlu0 %365 }
 0x416   :  { %v3128_v48 = vadd.f32 %v366_v47, %v358_v45 }
 0x418   :  { %2478 = vtanh.f32 %v3128_v48 }
 0x41d   :  { %v451_v50 = vpop.permute.xlu1 %450 }
 0x41e   :  { %v2479_v51 = vpop.eup %2478  ;;  %v3132_v52 = vadd.f32 %v451_v50, %v443_v49 }
 0x41f   :  { %371 = vrot.lane.b32.xlu2 %v2479_v51, %s2916_s30 }
 0x420   :  { %2480 = vtanh.f32 %v3132_v52 }
 0x426   :  { %v2481_v54 = vpop.eup %2480 }
 0x427   :  { %456 = vrot.lane.b32.xlu0 %v2481_v54, %s2916_s30 }
 0x479   :  { %v372_v55 = vpop.permute.xlu2 %371 }
 0x47a   :  { %v374_v56 = vmul.f32 %v372_v55, %v357_v26 }
 0x47c   :  { %465 = vrot.lane.b32.xlu1 %v374_v56, %s2917_s20 }
 0x499   :  { %v457_v4 = vpop.permute.xlu0 %456 }
 0x49a   :  { %v459_v9 = vmul.f32 %v457_v4, %v442_v32 }
 0x49c   :  { %554 = vrot.lane.b32.xlu2 %v459_v9, %s2917_s20 }
 0x4ee   :  { %v466_v10 = vpop.permute.xlu1 %465 }
 0x4ef   :  { %2377 = vmatmul.msk.f32.vlgmr.msrb.gmra.mxu2 %vm219_vm6, %v466_v10  ;;  %2380 = vmatmul.msk.f32.vlgmr.msra.gmra.mxu1 %vm219_vm6, %v466_v10 }
 0x4f0   :  { %830 = vmatpush.msrb.mxu2 %v3076_v36  ;;  %936 = vmatpush.msra.mxu1 %v3032_v0 }
 0x4f2   :  { %831 = vmatpush.msrb.mxu2 %v3078_v37  ;;  %937 = vmatpush.msra.mxu1 %v3036_v2 }
 0x4f4   :  { %832 = vmatpush.msrb.mxu2 %v3086_v41  ;;  %938 = vmatpush.msra.mxu1 %v3042_v5 }
 0x4f6   :  { %v555_v12 = vpop.permute.xlu2 %554  ;;  %833 = vmatpush.msrb.mxu2 %v3094_v43  ;;  %939 = vmatpush.msra.mxu1 %v3047_v6 }
 0x4f7   :  { %2379 = vmatmul.msk.f32.vlgmr.msra.gmra.mxu0 %vm219_vm6, %v555_v12  ;;  %2382 = vmatmul.msk.f32.vlgmr.msra.gmra.mxu2 %vm190_vm0, %v639_v11 }
 0x4f8   :  { %2383 = vmatmul.msk.f32.vlgmr.msra.gmra.mxu3 %vm219_vm6, %v555_v12  ;;  %917 = vmatpush.msra.mxu0 %v3034_v1 }
 0x4f9   :  { %1026 = vmatpush.msra.mxu3 %v3140_v58  ;;  %1000 = vmatpush.msra.mxu2 %v3138_v57 }
 0x4fa   :  { %918 = vmatpush.msra.mxu0 %v3040_v3 }
 0x4fb   :  { %1027 = vmatpush.msra.mxu3 %v3146_v59  ;;  %1001 = vmatpush.msra.mxu2 %v3142_v34 }
 0x4fd   :  { %1028 = vmatpush.msra.mxu3 %v3150_v61  ;;  %1002 = vmatpush.msra.mxu2 %v3148_v60 }
 0x4ff   :  { %1029 = vmatpush.msra.mxu3 %v3158_v63  ;;  %1003 = vmatpush.msra.mxu2 %v3156_v62 }
 0x56c   :  { %v596_v22 = vpop.f32.mrf.mxu1 }
 0x572   :  { %v486_v14 = vpop.f32.mrf.mxu2 }
 0x573   :  { %v489_v16 = vadd.f32 %v3208_v13, %v486_v14 }
 0x574   :  { %v575_v18 = vpop.f32.mrf.mxu0 }
 0x575   :  { %v514_v19 = vadd.f32 %v511_v15, %v489_v16  ;;  %v578_v21 = vadd.f32 %v3117_v53, %v575_v18 }
 0x577   :  { %v2378_v23 = vmul.f32 -1.442695, %v514_v19  ;;  %v599_v24 = vadd.f32 %v596_v22, %v578_v21 }
 0x579   :  { %2482 = vpow2.f32 %v2378_v23  ;;  %v2381_v25 = vmul.f32 -1.442695, %v599_v24 }
 0x57a   :  { %v660_v26 = vpop.f32.mrf.mxu2 }
 0x57b   :  { %2484 = vpow2.f32 %v2381_v25  ;;  %v663_v27 = vadd.f32 %v3061_v8, %v660_v26  ;;  %v681_v28 = vpop.f32.mrf.mxu3 }
 0x57d   :  { %v684_v29 = vadd.f32 %v681_v28, %v663_v27 }
 0x57f   :  { %v2483_v30 = vpop.eup %2482  ;;  %v2384_v31 = vmul.f32 -1.442695, %v684_v29 }
 0x580   :  { %v519_v32 = vadd.f32 1.0, %v2483_v30 }
 0x581   :  { %v2485_v33 = vpop.eup %2484  ;;  %2486 = vpow2.f32 %v2384_v31 }
 0x582   :  { %2488 = vrcp.f32 %v519_v32  ;;  %v604_v35 = vadd.f32 1.0, %v2485_v33  ;;  %v529_v54 = vand.u32 2147483647, %v519_v32  ;;  %v531_v55 = vand.u32 2147483648, %v519_v32 }
 0x583   :  { %vm525_vm1 = vweird.f32 %v519_v32 }
 0x584   :  { %2490 = vrcp.f32 %v604_v35  ;;  %v616_v9 = vand.u32 2147483648, %v604_v35  ;;  %v614_v12 = vand.u32 2147483647, %v604_v35  ;;  %vm530_vm5 = vcmp.eq.f32.partialorder %v529_v54, 8.507059e+37 }
 0x585   :  { %v532_v15 = vor.u32 1.1754944e-38, %v531_v55  ;;  %vm610_vm7 = vweird.f32 %v604_v35 }
 0x586   :  { %v617_v23 = vor.u32 1.1754944e-38, %v616_v9  ;;  %vm615_vm9 = vcmp.eq.f32.partialorder %v614_v12, 8.507059e+37 }
 0x587   :  { %v2487_v40 = vpop.eup %2486 }
 0x588   :  { %v2489_v44 = vpop.eup %2488  ;;  %v689_v45 = vadd.f32 1.0, %v2487_v40 }
 0x589   :  { %v521_v47 = vmul.f32 %v2489_v44, %v519_v32  ;;  %vm526_vm15 = vweird.f32 %v2489_v44 }
 0x58a   :  { %v2491_v49 = vpop.eup %2490  ;;  %2492 = vrcp.f32 %v689_v45  ;;  %vm527_vm4 = vmor %vm525_vm1, %vm526_vm15  ;;  %v701_v30 = vand.u32 2147483648, %v689_v45  ;;  %v699_v33 = vand.u32 2147483647, %v689_v45  ;;  %vm695_vm11 = vweird.f32 %v689_v45 }
 0x58b   :  { %v522_v50 = vsub.f32 1.0, %v521_v47  ;;  %v606_v51 = vmul.f32 %v2491_v49, %v604_v35  ;;  %2494 = vtanh.f32 %v514_v19  ;;  %vm611_vm2 = vweird.f32 %v2491_v49 }
 0x58c   :  { %2496 = vtanh.f32 %v599_v24  ;;  %vm612_vm8 = vmor %vm610_vm7, %vm611_vm2  ;;  %v702_v40 = vor.u32 1.1754944e-38, %v701_v30  ;;  %vm700_vm13 = vcmp.eq.f32.partialorder %v699_v33, 8.507059e+37 }
 0x58d   :  { %v523_v56 = vmul.f32 %v2489_v44, %v522_v50  ;;  %v607_v4 = vsub.f32 1.0, %v606_v51  ;;  %2498 = vtanh.f32 %v684_v29 }
 0x58f   :  { %v524_v10 = vadd.f32 %v2489_v44, %v523_v56  ;;  %v608_v11 = vmul.f32 %v2491_v49, %v607_v4 }
 0x590   :  { %v2493_v14 = vpop.eup %2492 }
 0x591   :  { %v528_v16 = vsel %vm527_vm4, %v2489_v44, %v524_v10  ;;  %v609_v18 = vadd.f32 %v2491_v49, %v608_v11  ;;  %v691_v19 = vmul.f32 %v2493_v14, %v689_v45  ;;  %v2495_v21 = vpop.eup %2494  ;;  %vm696_vm10 = vweird.f32 %v2493_v14 }
 0x592   :  { %v533_v22 = vsel %vm530_vm5, %v532_v15, %v528_v16  ;;  %v2497_v27 = vpop.eup %2496  ;;  %vm697_vm12 = vmor %vm695_vm11, %vm696_vm10 }
 0x593   :  { %v535_v24 = vsel %vm169_vm3, %v2495_v21, %v533_v22  ;;  %v613_v25 = vsel %vm612_vm8, %v2491_v49, %v609_v18  ;;  %v692_v26 = vsub.f32 1.0, %v691_v19  ;;  %v2499_v47 = vpop.eup %2498 }
 0x594   :  { %538 = vrot.lane.b32.xlu2 %v535_v24, %s2916_s30  ;;  %v618_v28 = vsel %vm615_vm9, %v617_v23, %v613_v25  ;;  %v536_v4 = vmul.f32 0.0, %v535_v24 }
 0x595   :  { %v620_v31 = vsel %vm169_vm3, %v2497_v27, %v618_v28  ;;  %v693_v32 = vmul.f32 %v2493_v14, %v692_v26 }
 0x596   :  { %623 = vrot.lane.b32.xlu1 %v620_v31, %s2916_s30  ;;  %v621_v12 = vmul.f32 %v620_v31, %v3128_v48 }
 0x597   :  { %v694_v35 = vadd.f32 %v2493_v14, %v693_v32 }
 0x599   :  { %v698_v44 = vsel %vm697_vm12, %v2493_v14, %v694_v35 }
 0x59a   :  { %v703_v29 = vsel %vm700_vm13, %v702_v40, %v698_v44 }
 0x59b   :  { %v705_v49 = vsel %vm169_vm3, %v2499_v47, %v703_v29 }
 0x59c   :  { %708 = vrot.lane.b32.xlu0 %v705_v49, %s2916_s30  ;;  %v706_v16 = vmul.f32 %v705_v49, %v3132_v52 }
 0x5ee   :  { %v539_v50 = vpop.permute.xlu2 %538 }
 0x5ef   :  { %v541_v51 = vmul.f32 %v539_v50, %v535_v24 }
 0x5f1   :  { %543 = vrot.lane.b32.xlu2 %v541_v51, %s2916_s30 }
 0x608   :  { %v624_v54 = vpop.permute.xlu1 %623 }
 0x609   :  { %v626_v55 = vmul.f32 %v624_v54, %v620_v31 }
 0x60b   :  { %628 = vrot.lane.b32.xlu1 %v626_v55, %s2916_s30 }
 0x60e   :  { %v709_v45 = vpop.permute.xlu0 %708 }
 0x60f   :  { %v711_v56 = vmul.f32 %v709_v45, %v705_v49 }
 0x611   :  { %713 = vrot.lane.b32.xlu0 %v711_v56, %s2916_s30 }
 0x64b   :  { %v544_v9 = vpop.permute.xlu2 %543 }
 0x64c   :  { %v3225_v10 = vadd.f32 %v544_v9, %v536_v4 }
 0x64e   :  { %2500 = vtanh.f32 %v3225_v10 }
 0x654   :  { %v2501_v11 = vpop.eup %2500 }
 0x655   :  { %549 = vrot.lane.b32.xlu2 %v2501_v11, %s2916_s30 }
 0x67d   :  { %v629_v14 = vpop.permute.xlu1 %628 }
 0x67e   :  { %v3230_v15 = vadd.f32 %v629_v14, %v621_v12 }
 0x680   :  { %2502 = vtanh.f32 %v3230_v15 }
 0x683   :  { %v714_v18 = vpop.permute.xlu0 %713 }
 0x684   :  { %v3234_v19 = vadd.f32 %v714_v18, %v706_v16 }
 0x686   :  { %v2503_v21 = vpop.eup %2502  ;;  %2504 = vtanh.f32 %v3234_v19 }
 0x687   :  { %634 = vrot.lane.b32.xlu1 %v2503_v21, %s2916_s30 }
 0x68c   :  { %v2505_v22 = vpop.eup %2504 }
 0x68d   :  { %719 = vrot.lane.b32.xlu0 %v2505_v22, %s2916_s30 }
 0x6af   :  { %v550_v23 = vpop.permute.xlu2 %549 }
 0x6b0   :  { %v552_v48 = vmul.f32 %v550_v23, %v535_v24 }
 0x6b2   :  { %750 = vrot.lane.b32.xlu2 %v552_v48, %s2917_s20 }
 0x6f9   :  { %v635_v25 = vpop.permute.xlu1 %634 }
 0x6fa   :  { %v637_v26 = vmul.f32 %v635_v25, %v620_v31  ;;  %v899_v31 = vld [vmem:[#allocation2 + $0x18] sm:$0xff] }
 0x6fc   :  { %724 = vrot.lane.b32.xlu1 %v637_v26, %s2917_s20 }
 0x6ff   :  { %v720_v52 = vpop.permute.xlu0 %719 }
 0x700   :  { %v722_v27 = vmul.f32 %v720_v52, %v705_v49 }
 0x702   :  { %814 = vrot.lane.b32.xlu0 %v722_v27, %s2917_s20 }
 0x70c   :  { %v751_v28 = vpop.permute.xlu2 %750 }
 0x70d   :  { %2386 = vmatmul.msk.f32.vlgmr.msrb.gmra.mxu1 %vm219_vm6, %v751_v28 }
 0x70e   :  { %1111 = vmatpush.msrb.mxu1 %v3080_v38 }
 0x710   :  { %1112 = vmatpush.msrb.mxu1 %v3084_v39 }
 0x712   :  { %1113 = vmatpush.msrb.mxu1 %v3089_v42 }
 0x714   :  { %1114 = vmatpush.msrb.mxu1 %v3106_v46 }
 0x76e   :  { %v725_v24 = vpop.permute.xlu1 %724 }
 0x76f   :  { %2385 = vmatmul.msk.f32.vlgmr.msrb.gmra.mxu0 %vm219_vm6, %v725_v24  ;;  %2389 = vmatmul.msk.f32.vlgmr.msrb.gmra.mxu3 %vm219_vm6, %v725_v24 }
 0x770   :  { %1090 = vmatpush.msrb.mxu0 %v3076_v36  ;;  %1196 = vmatpush.msrb.mxu3 %v3032_v0 }
 0x772   :  { %1091 = vmatpush.msrb.mxu0 %v3078_v37  ;;  %1197 = vmatpush.msrb.mxu3 %v3036_v2 }
 0x774   :  { %v815_v30 = vpop.permute.xlu0 %814  ;;  %1092 = vmatpush.msrb.mxu0 %v3086_v41  ;;  %1198 = vmatpush.msrb.mxu3 %v3042_v5 }
 0x775   :  { %2388 = vmatmul.msk.f32.vlgmr.msrb.gmra.mxu2 %vm219_vm6, %v815_v30  ;;  %2392 = vmatmul.msk.f32.vlgmr.msra.gmra.mxu1 %vm219_vm6, %v815_v30 }
 0x776   :  { %1093 = vmatpush.msrb.mxu0 %v3094_v43  ;;  %1199 = vmatpush.msrb.mxu3 %v3047_v6 }
 0x777   :  { %2391 = vmatmul.msk.f32.vlgmr.msra.gmra.mxu0 %vm190_vm0, %v899_v31  ;;  %1177 = vmatpush.msrb.mxu2 %v3034_v1 }
 0x778   :  { %1286 = vmatpush.msra.mxu1 %v3140_v58  ;;  %1260 = vmatpush.msra.mxu0 %v3138_v57 }
 0x779   :  { %1178 = vmatpush.msrb.mxu2 %v3040_v3 }
 0x77a   :  { %1287 = vmatpush.msra.mxu1 %v3146_v59  ;;  %1261 = vmatpush.msra.mxu0 %v3142_v34 }
 0x77c   :  { %1288 = vmatpush.msra.mxu1 %v3150_v61  ;;  %1262 = vmatpush.msra.mxu0 %v3148_v60 }
 0x77e   :  { %1289 = vmatpush.msra.mxu1 %v3158_v63  ;;  %1263 = vmatpush.msra.mxu0 %v3156_v62 }
 0x78a   :  { %v771_v5 = vpop.f32.mrf.mxu1 }
 0x7ec   :  { %v745_v0 = vpop.f32.mrf.mxu0 }
 0x7ed   :  { %v748_v2 = vadd.f32 %v3208_v13, %v745_v0 }
 0x7ef   :  { %v774_v6 = vadd.f32 %v771_v5, %v748_v2 }
 0x7f1   :  { %v2387_v32 = vmul.f32 -1.442695, %v774_v6 }
 0x7f2   :  { %v941_v40 = vpop.f32.mrf.mxu1  ;;  %v856_v54 = vpop.f32.mrf.mxu3 }
 0x7f3   :  { %2506 = vpow2.f32 %v2387_v32 }
 0x7f4   :  { %v920_v33 = vpop.f32.mrf.mxu0 }
 0x7f5   :  { %v923_v35 = vadd.f32 %v3061_v8, %v920_v33 }
 0x7f7   :  { %v944_v44 = vadd.f32 %v941_v40, %v923_v35 }
 0x7f8   :  { %v835_v47 = vpop.f32.mrf.mxu2 }
 0x7f9   :  { %v2507_v29 = vpop.eup %2506  ;;  %v2393_v49 = vmul.f32 -1.442695, %v944_v44  ;;  %v838_v50 = vadd.f32 %v3117_v53, %v835_v47 }
 0x7fa   :  { %v779_v51 = vadd.f32 1.0, %v2507_v29 }
 0x7fb   :  { %2508 = vpow2.f32 %v2393_v49  ;;  %v859_v55 = vadd.f32 %v856_v54, %v838_v50 }
 0x7fc   :  { %2510 = vrcp.f32 %v779_v51  ;;  %v791_v16 = vand.u32 2147483648, %v779_v51  ;;  %v789_v21 = vand.u32 2147483647, %v779_v51  ;;  %vm785_vm15 = vweird.f32 %v779_v51 }
 0x7fd   :  { %v2390_v45 = vmul.f32 -1.442695, %v859_v55 }
 0x7fe   :  { %v792_v48 = vor.u32 1.1754944e-38, %v791_v16  ;;  %vm790_vm2 = vcmp.eq.f32.partialorder %v789_v21, 8.507059e+37 }
 0x7ff   :  { %2512 = vpow2.f32 %v2390_v45 }
 0x801   :  { %v2509_v56 = vpop.eup %2508 }
 0x802   :  { %v2511_v4 = vpop.eup %2510  ;;  %v949_v9 = vadd.f32 1.0, %v2509_v56 }
 0x803   :  { %v781_v11 = vmul.f32 %v2511_v4, %v779_v51  ;;  %vm786_vm14 = vweird.f32 %v2511_v4 }
 0x804   :  { %2514 = vrcp.f32 %v949_v9  ;;  %vm787_vm1 = vmor %vm785_vm15, %vm786_vm14  ;;  %v959_v31 = vand.u32 2147483647, %v949_v9  ;;  %v961_v0 = vand.u32 2147483648, %v949_v9  ;;  %vm955_vm5 = vweird.f32 %v949_v9 }
 0x805   :  { %v2513_v8 = vpop.eup %2512  ;;  %v782_v12 = vsub.f32 1.0, %v781_v11  ;;  %2516 = vtanh.f32 %v774_v6 }
 0x806   :  { %v864_v14 = vadd.f32 1.0, %v2513_v8  ;;  %vm960_vm8 = vcmp.eq.f32.partialorder %v959_v31, 8.507059e+37  ;;  %v962_v33 = vor.u32 1.1754944e-38, %v961_v0 }
 0x807   :  { %v783_v18 = vmul.f32 %v2511_v4, %v782_v12 }
 0x808   :  { %2518 = vrcp.f32 %v864_v14  ;;  %v876_v35 = vand.u32 2147483648, %v864_v14  ;;  %vm870_vm10 = vweird.f32 %v864_v14 }
 0x809   :  { %v784_v22 = vadd.f32 %v2511_v4, %v783_v18  ;;  %2520 = vtanh.f32 %v944_v44  ;;  %v874_v44 = vand.u32 2147483647, %v864_v14 }
 0x80a   :  { %v2515_v23 = vpop.eup %2514  ;;  %2522 = vtanh.f32 %v859_v55  ;;  %v877_v54 = vor.u32 1.1754944e-38, %v876_v35 }
 0x80b   :  { %v788_v25 = vsel %vm787_vm1, %v2511_v4, %v784_v22  ;;  %v951_v26 = vmul.f32 %v2515_v23, %v949_v9  ;;  %v2517_v52 = vpop.eup %2516  ;;  %vm956_vm4 = vweird.f32 %v2515_v23  ;;  %vm875_vm12 = vcmp.eq.f32.partialorder %v874_v44, 8.507059e+37 }
 0x80c   :  { %v793_v27 = vsel %vm790_vm2, %v792_v48, %v788_v25  ;;  %vm957_vm7 = vmor %vm955_vm5, %vm956_vm4 }
 0x80d   :  { %v3275_v28 = vsel %vm169_vm3, %v2517_v52, %v793_v27  ;;  %v952_v24 = vsub.f32 1.0, %v951_v26 }
 0x80e   :  { %v2519_v30 = vpop.eup %2518  ;;  %798 = vrot.lane.b32.xlu1 %v3275_v28, %s2916_s30  ;;  %v796_v48 = vmul.f32 %v3275_v28, %v3225_v10 }
 0x80f   :  { %v953_v2 = vmul.f32 %v2515_v23, %v952_v24  ;;  %v866_v5 = vmul.f32 %v2519_v30, %v864_v14  ;;  %vm871_vm9 = vweird.f32 %v2519_v30  ;;  %v2521_v29 = vpop.eup %2520 }
 0x810   :  { %vm872_vm11 = vmor %vm870_vm10, %vm871_vm9  ;;  %v2523_v45 = vpop.eup %2522 }
 0x811   :  { %v954_v6 = vadd.f32 %v2515_v23, %v953_v2  ;;  %v867_v32 = vsub.f32 1.0, %v866_v5 }
 0x813   :  { %v958_v40 = vsel %vm957_vm7, %v2515_v23, %v954_v6  ;;  %v868_v47 = vmul.f32 %v2519_v30, %v867_v32 }
 0x814   :  { %v963_v49 = vsel %vm960_vm8, %v962_v33, %v958_v40 }
 0x815   :  { %v965_v50 = vsel %vm169_vm3, %v2521_v29, %v963_v49  ;;  %v869_v51 = vadd.f32 %v2519_v30, %v868_v47 }
 0x816   :  { %968 = vrot.lane.b32.xlu2 %v965_v50, %s2916_s30  ;;  %v966_v18 = vmul.f32 %v965_v50, %v3234_v19 }
 0x817   :  { %v873_v55 = vsel %vm872_vm11, %v2519_v30, %v869_v51  ;;  %v3350_v51 = vld [vmem:[%s3674_s7] ss:$0 sm:$0xff] }
 0x818   :  { %v878_v56 = vsel %vm875_vm12, %v877_v54, %v873_v55 }
 0x819   :  { %v880_v4 = vsel %vm169_vm3, %v2523_v45, %v878_v56 }
 0x81a   :  { %883 = vrot.lane.b32.xlu0 %v880_v4, %s2916_s30  ;;  %v881_v19 = vmul.f32 %v880_v4, %v3230_v15 }
 0x870   :  { %v969_v9 = vpop.permute.xlu2 %968 }
 0x871   :  { %v971_v11 = vmul.f32 %v969_v9, %v965_v50 }
 0x873   :  { %973 = vrot.lane.b32.xlu2 %v971_v11, %s2916_s30 }
 0x880   :  { %v799_v8 = vpop.permute.xlu1 %798 }
 0x881   :  { %v801_v12 = vmul.f32 %v799_v8, %v3275_v28 }
 0x883   :  { %803 = vrot.lane.b32.xlu1 %v801_v12, %s2916_s30 }
 0x88c   :  { %v884_v14 = vpop.permute.xlu0 %883 }
 0x88d   :  { %v886_v16 = vmul.f32 %v884_v14, %v880_v4 }
 0x88f   :  { %888 = vrot.lane.b32.xlu0 %v886_v16, %s2916_s30 }
 0x8cd   :  { %v974_v21 = vpop.permute.xlu2 %973 }
 0x8ce   :  { %v3290_v22 = vadd.f32 %v974_v21, %v966_v18 }
 0x8d0   :  { %2524 = vtanh.f32 %v3290_v22 }
 0x8d6   :  { %v2525_v23 = vpop.eup %2524 }
 0x8d7   :  { %979 = vrot.lane.b32.xlu2 %v2525_v23, %s2916_s30 }
 0x8f5   :  { %v804_v25 = vpop.permute.xlu1 %803 }
 0x8f6   :  { %v3296_v26 = vadd.f32 %v804_v25, %v796_v48 }
 0x8f8   :  { %2526 = vtanh.f32 %v3296_v26 }
 0x8fe   :  { %v2527_v52 = vpop.eup %2526 }
 0x8ff   :  { %809 = vrot.lane.b32.xlu1 %v2527_v52, %s2916_s30 }
 0x901   :  { %v889_v27 = vpop.permute.xlu0 %888 }
 0x902   :  { %v3301_v24 = vadd.f32 %v889_v27, %v881_v19 }
 0x904   :  { %2528 = vtanh.f32 %v3301_v24 }
 0x90a   :  { %v2529_v30 = vpop.eup %2528 }
 0x90b   :  { %894 = vrot.lane.b32.xlu0 %v2529_v30, %s2916_s30 }
 0x931   :  { %v980_v31 = vpop.permute.xlu2 %979 }
 0x932   :  { %v982_v10 = vmul.f32 %v980_v31, %v965_v50 }
 0x934   :  { %1074 = vrot.lane.b32.xlu2 %v982_v10, %s2917_s20 }
 0x971   :  { %v810_v0 = vpop.permute.xlu1 %809 }
 0x972   :  { %v812_v2 = vmul.f32 %v810_v0, %v3275_v28 }
 0x974   :  { %1010 = vrot.lane.b32.xlu1 %v812_v2, %s2917_s20 }
 0x97d   :  { %v895_v5 = vpop.permute.xlu0 %894 }
 0x97e   :  { %v897_v6 = vmul.f32 %v895_v5, %v880_v4 }
 0x980   :  { %984 = vrot.lane.b32.xlu0 %v897_v6, %s2917_s20 }
 0x98e   :  { %v1075_v15 = vpop.permute.xlu2 %1074 }
 0x98f   :  { %2397 = vmatmul.msk.f32.vlgmr.msrb.gmra.mxu0 %vm219_vm6, %v1075_v15 }
 0x990   :  { %1437 = vmatpush.msrb.mxu0 %v3034_v1  ;;  %v3323_v1 = vld [vmem:[#allocation10 + $0x18] sm:$0xff] }
 0x992   :  { %1438 = vmatpush.msrb.mxu0 %v3040_v3  ;;  %v3328_v3 = vld [vmem:[#allocation10 + $0x10] sm:$0xff] }
 0x9e6   :  { %v1011_v32 = vpop.permute.xlu1 %1010 }
 0x9e7   :  { %2395 = vmatmul.msk.f32.vlgmr.msra.gmra.mxu3 %vm219_vm6, %v1011_v32 }
 0x9e8   :  { %1371 = vmatpush.msra.mxu3 %v3080_v38  ;;  %v1159_v38 = vld [vmem:[#allocation2 + $0x20] sm:$0xff] }
 0x9ea   :  { %1372 = vmatpush.msra.mxu3 %v3084_v39  ;;  %v3333_v39 = vld [vmem:[#allocation10 + $0x8] sm:$0xff] }
 0x9ec   :  { %1373 = vmatpush.msra.mxu3 %v3089_v42 }
 0x9ee   :  { %1374 = vmatpush.msra.mxu3 %v3106_v46 }
 0x9ef   :  { %2401 = vmatmul.msk.f32.vlgmr.msrb.gmra.mxu3 %vm219_vm6, %v1075_v15 }
 0x9f0   :  { %1546 = vmatpush.msrb.mxu3 %v3140_v58 }
 0x9f2   :  { %v985_v28 = vpop.permute.xlu0 %984  ;;  %1547 = vmatpush.msrb.mxu3 %v3146_v59 }
 0x9f3   :  { %2394 = vmatmul.msk.f32.vlgmr.msra.gmra.mxu2 %vm219_vm6, %v985_v28  ;;  %2398 = vmatmul.msk.f32.vlgmr.msrb.gmra.mxu1 %vm219_vm6, %v985_v28 }
 0x9f4   :  { %1350 = vmatpush.msra.mxu2 %v3076_v36  ;;  %1456 = vmatpush.msrb.mxu1 %v3323_v1  ;;  %v3337_v36 = vld [vmem:[#allocation10] sm:$0xff] }
 0x9f5   :  { %1548 = vmatpush.msrb.mxu3 %v3150_v61 }
 0x9f6   :  { %1351 = vmatpush.msra.mxu2 %v3078_v37  ;;  %1457 = vmatpush.msrb.mxu1 %v3328_v3 }
 0x9f7   :  { %1549 = vmatpush.msrb.mxu3 %v3158_v63 }
 0x9f8   :  { %1352 = vmatpush.msra.mxu2 %v3086_v41  ;;  %1458 = vmatpush.msrb.mxu1 %v3333_v39 }
 0x9fa   :  { %1353 = vmatpush.msra.mxu2 %v3094_v43  ;;  %1459 = vmatpush.msrb.mxu1 %v3337_v36 }
 0x9fb   :  { %2400 = vmatmul.msk.f32.vlgmr.msrb.gmra.mxu2 %vm190_vm0, %v1159_v38 }
 0x9fc   :  { %1520 = vmatpush.msrb.mxu2 %v3138_v57 }
 0x9fe   :  { %1521 = vmatpush.msrb.mxu2 %v3142_v34 }
 0xa00   :  { %1522 = vmatpush.msrb.mxu2 %v3148_v60 }
 0xa02   :  { %1523 = vmatpush.msrb.mxu2 %v3156_v62 }
 0xa0c   :  { %v1095_v37 = vpop.f32.mrf.mxu0 }
 0xa0d   :  { %v1098_v41 = vadd.f32 %v3117_v53, %v1095_v37 }
 0xa6a   :  { %v1031_v33 = vpop.f32.mrf.mxu3 }
 0xa70   :  { %v1116_v42 = vpop.f32.mrf.mxu1 }
 0xa71   :  { %v1119_v46 = vadd.f32 %v1116_v42, %v1098_v41 }
 0xa72   :  { %v1201_v54 = vpop.f32.mrf.mxu3 }
 0xa73   :  { %v2399_v43 = vmul.f32 -1.442695, %v1119_v46 }
 0xa75   :  { %2530 = vpow2.f32 %v2399_v43 }
 0xa76   :  { %v1005_v35 = vpop.f32.mrf.mxu2 }
 0xa77   :  { %v1008_v40 = vadd.f32 %v3208_v13, %v1005_v35 }
 0xa79   :  { %v1034_v47 = vadd.f32 %v1031_v33, %v1008_v40 }
 0xa7b   :  { %v2531_v44 = vpop.eup %2530  ;;  %v2396_v29 = vmul.f32 -1.442695, %v1034_v47 }
 0xa7c   :  { %v1124_v49 = vadd.f32 1.0, %v2531_v44 }
 0xa7d   :  { %2532 = vpow2.f32 %v2396_v29 }
 0xa7e   :  { %2534 = vrcp.f32 %v1124_v49  ;;  %v1180_v50 = vpop.f32.mrf.mxu2  ;;  %v1136_v12 = vand.u32 2147483648, %v1124_v49  ;;  %v1134_v16 = vand.u32 2147483647, %v1124_v49  ;;  %vm1130_vm14 = vweird.f32 %v1124_v49 }
 0xa7f   :  { %v1183_v53 = vadd.f32 %v3350_v51, %v1180_v50 }
 0xa80   :  { %v1137_v25 = vor.u32 1.1754944e-38, %v1136_v12  ;;  %vm1135_vm1 = vcmp.eq.f32.partialorder %v1134_v16, 8.507059e+37 }
 0xa81   :  { %v1204_v55 = vadd.f32 %v1201_v54, %v1183_v53 }
 0xa83   :  { %v2533_v45 = vpop.eup %2532  ;;  %v2402_v56 = vmul.f32 -1.442695, %v1204_v55 }
 0xa84   :  { %v2535_v4 = vpop.eup %2534  ;;  %v1039_v9 = vadd.f32 1.0, %v2533_v45 }
 0xa85   :  { %2536 = vpow2.f32 %v2402_v56  ;;  %v1126_v11 = vmul.f32 %v2535_v4, %v1124_v49  ;;  %vm1131_vm13 = vweird.f32 %v2535_v4 }
 0xa86   :  { %2538 = vrcp.f32 %v1039_v9  ;;  %vm1132_vm15 = vmor %vm1130_vm14, %vm1131_vm13  ;;  %v1051_v0 = vand.u32 2147483648, %v1039_v9  ;;  %v1049_v5 = vand.u32 2147483647, %v1039_v9  ;;  %vm1045_vm4 = vweird.f32 %v1039_v9 }
 0xa87   :  { %v1127_v8 = vsub.f32 1.0, %v1126_v11  ;;  %2540 = vtanh.f32 %v1119_v46 }
 0xa88   :  { %v1052_v32 = vor.u32 1.1754944e-38, %v1051_v0  ;;  %vm1050_vm7 = vcmp.eq.f32.partialorder %v1049_v5, 8.507059e+37  ;;  %v3390_v0 = vld [vmem:[#allocation11 + $0x18] sm:$0xff]  ;;  %v3396_v5 = vld [vmem:[#allocation11 + $0x8] sm:$0xff] }
 0xa89   :  { %v1128_v14 = vmul.f32 %v2535_v4, %v1127_v8 }
 0xa8b   :  { %v2537_v18 = vpop.eup %2536  ;;  %v1129_v21 = vadd.f32 %v2535_v4, %v1128_v14 }
 0xa8c   :  { %v2539_v23 = vpop.eup %2538  ;;  %v1209_v48 = vadd.f32 1.0, %v2537_v18 }
 0xa8d   :  { %v1133_v52 = vsel %vm1132_vm15, %v2535_v4, %v1129_v21  ;;  %v1041_v19 = vmul.f32 %v2539_v23, %v1039_v9  ;;  %v2541_v27 = vpop.eup %2540  ;;  %vm1046_vm2 = vweird.f32 %v2539_v23 }
 0xa8e   :  { %2542 = vrcp.f32 %v1209_v48  ;;  %v1138_v30 = vsel %vm1135_vm1, %v1137_v25, %v1133_v52  ;;  %vm1047_vm5 = vmor %vm1045_vm4, %vm1046_vm2  ;;  %v1221_v43 = vand.u32 2147483648, %v1209_v48  ;;  %v1219_v35 = vand.u32 2147483647, %v1209_v48 }
 0xa8f   :  { %v3355_v31 = vsel %vm169_vm3, %v2541_v27, %v1138_v30  ;;  %v1042_v10 = vsub.f32 1.0, %v1041_v19  ;;  %2544 = vtanh.f32 %v1034_v47  ;;  %vm1215_vm9 = vweird.f32 %v1209_v48 }
 0xa90   :  { %1143 = vrot.lane.b32.xlu1 %v3355_v31, %s2916_s30  ;;  %2546 = vtanh.f32 %v1204_v55  ;;  %v1222_v47 = vor.u32 1.1754944e-38, %v1221_v43  ;;  %vm1220_vm11 = vcmp.eq.f32.partialorder %v1219_v35, 8.507059e+37  ;;  %v1141_v14 = vmul.f32 %v3355_v31, %v3301_v24 }
 0xa91   :  { %v1043_v2 = vmul.f32 %v2539_v23, %v1042_v10 }
 0xa93   :  { %v1044_v6 = vadd.f32 %v2539_v23, %v1043_v2  ;;  %v3393_v2 = vld [vmem:[#allocation11 + $0x10] sm:$0xff] }
 0xa94   :  { %v2543_v15 = vpop.eup %2542 }
 0xa95   :  { %v1048_v28 = vsel %vm1047_vm5, %v2539_v23, %v1044_v6  ;;  %v1211_v38 = vmul.f32 %v2543_v15, %v1209_v48  ;;  %v2545_v37 = vpop.eup %2544  ;;  %vm1216_vm8 = vweird.f32 %v2543_v15 }
 0xa96   :  { %v1053_v41 = vsel %vm1050_vm7, %v1052_v32, %v1048_v28  ;;  %vm1217_vm10 = vmor %vm1215_vm9, %vm1216_vm8  ;;  %v2547_v29 = vpop.eup %2546  ;;  %v3408_v32 = vld [vmem:[#allocation7 + $0x10] sm:$0xff]  ;;  %v1419_v28 = vld [vmem:[#allocation2 + $0x28] sm:$0xff] }
 0xa97   :  { %v1055_v42 = vsel %vm169_vm3, %v2545_v37, %v1053_v41  ;;  %v1212_v46 = vsub.f32 1.0, %v1211_v38  ;;  %v3412_v38 = vld [vmem:[#allocation7 + $0x8] sm:$0xff]  ;;  %v3416_v37 = vld [vmem:[#allocation7] sm:$0xff] }
 0xa98   :  { %1058 = vrot.lane.b32.xlu2 %v1055_v42, %s2916_s30  ;;  %v1056_v9 = vmul.f32 %v1055_v42, %v3296_v26 }
 0xa99   :  { %v1213_v33 = vmul.f32 %v2543_v15, %v1212_v46  ;;  %v3431_v46 = vld [vmem:[#allocation5] sm:$0xff] }
 0xa9b   :  { %v1214_v40 = vadd.f32 %v2543_v15, %v1213_v33 }
 0xa9d   :  { %v1218_v44 = vsel %vm1217_vm10, %v2543_v15, %v1214_v40  ;;  %v3404_v15 = vld [vmem:[#allocation7 + $0x18] sm:$0xff] }
 0xa9e   :  { %v1223_v49 = vsel %vm1220_vm11, %v1222_v47, %v1218_v44 }
 0xa9f   :  { %v1225_v50 = vsel %vm169_vm3, %v2547_v29, %v1223_v49 }
 0xaa0   :  { %1228 = vrot.lane.b32.xlu0 %v1225_v50, %s2916_s30  ;;  %v1226_v26 = vmul.f32 %v1225_v50, %v3290_v22 }
 0xaf2   :  { %v1059_v53 = vpop.permute.xlu2 %1058 }
 0xaf3   :  { %v1061_v54 = vmul.f32 %v1059_v53, %v1055_v42 }
 0xaf5   :  { %1063 = vrot.lane.b32.xlu2 %v1061_v54, %s2916_s30 }
 0xb02   :  { %v1144_v55 = vpop.permute.xlu1 %1143 }
 0xb03   :  { %v1146_v45 = vmul.f32 %v1144_v55, %v3355_v31 }
 0xb05   :  { %1148 = vrot.lane.b32.xlu1 %v1146_v45, %s2916_s30 }
 0xb12   :  { %v1229_v56 = vpop.permute.xlu0 %1228 }
 0xb13   :  { %v1231_v4 = vmul.f32 %v1229_v56, %v1225_v50 }
 0xb15   :  { %1233 = vrot.lane.b32.xlu0 %v1231_v4, %s2916_s30 }
 0xb4f   :  { %v1064_v11 = vpop.permute.xlu2 %1063 }
 0xb50   :  { %v3370_v8 = vadd.f32 %v1064_v11, %v1056_v9 }
 0xb52   :  { %2548 = vtanh.f32 %v3370_v8 }
 0xb58   :  { %v2549_v12 = vpop.eup %2548 }
 0xb59   :  { %1069 = vrot.lane.b32.xlu2 %v2549_v12, %s2916_s30 }
 0xb77   :  { %v1149_v16 = vpop.permute.xlu1 %1148 }
 0xb78   :  { %v3376_v18 = vadd.f32 %v1149_v16, %v1141_v14 }
 0xb7a   :  { %2550 = vtanh.f32 %v3376_v18 }
 0xb80   :  { %v2551_v21 = vpop.eup %2550 }
 0xb81   :  { %1154 = vrot.lane.b32.xlu1 %v2551_v21, %s2916_s30 }
 0xb87   :  { %v1234_v23 = vpop.permute.xlu0 %1233 }
 0xb88   :  { %v3381_v48 = vadd.f32 %v1234_v23, %v1226_v26 }
 0xb8a   :  { %2552 = vtanh.f32 %v3381_v48 }
 0xb90   :  { %v2553_v25 = vpop.eup %2552 }
 0xb91   :  { %1239 = vrot.lane.b32.xlu0 %v2553_v25, %s2916_s30 }
 0xbb3   :  { %v1070_v52 = vpop.permute.xlu2 %1069 }
 0xbb4   :  { %v1072_v24 = vmul.f32 %v1070_v52, %v1055_v42  ;;  %v3427_v42 = vld [vmem:[#allocation5 + $0x8] sm:$0xff] }
 0xbb6   :  { %1270 = vrot.lane.b32.xlu2 %v1072_v24, %s2917_s20 }
 0xbf3   :  { %v1155_v19 = vpop.permute.xlu1 %1154 }
 0xbf4   :  { %v1157_v27 = vmul.f32 %v1155_v19, %v3355_v31  ;;  %v3399_v31 = vld [vmem:[#allocation11] sm:$0xff] }
 0xbf6   :  { %1244 = vrot.lane.b32.xlu1 %v1157_v27, %s2917_s20 }
 0xc03   :  { %v1240_v30 = vpop.permute.xlu0 %1239 }
 0xc04   :  { %v1242_v10 = vmul.f32 %v1240_v30, %v1225_v50 }
 0xc06   :  { %1334 = vrot.lane.b32.xlu0 %v1242_v10, %s2917_s20 }
 0xc10   :  { %v1271_v22 = vpop.permute.xlu2 %1270 }
 0xc11   :  { %2404 = vmatmul.msk.f32.vlgmr.msra.gmra.mxu1 %vm219_vm6, %v1271_v22 }
 0xc12   :  { %1631 = vmatpush.msra.mxu1 %v3390_v0 }
 0xc14   :  { %1632 = vmatpush.msra.mxu1 %v3393_v2 }
 0xc16   :  { %1633 = vmatpush.msra.mxu1 %v3396_v5 }
 0xc18   :  { %1634 = vmatpush.msra.mxu1 %v3399_v31 }
 0xc68   :  { %v1245_v6 = vpop.permute.xlu1 %1244 }
 0xc69   :  { %2403 = vmatmul.msk.f32.vlgmr.msra.gmra.mxu0 %vm219_vm6, %v1245_v6  ;;  %2407 = vmatmul.msk.f32.vlgmr.msra.gmra.mxu3 %vm219_vm6, %v1245_v6 }
 0xc6a   :  { %1610 = vmatpush.msra.mxu0 %v3404_v15  ;;  %1716 = vmatpush.msra.mxu3 %v3323_v1 }
 0xc6c   :  { %1611 = vmatpush.msra.mxu0 %v3408_v32  ;;  %1717 = vmatpush.msra.mxu3 %v3328_v3 }
 0xc6e   :  { %1612 = vmatpush.msra.mxu0 %v3412_v38  ;;  %1718 = vmatpush.msra.mxu3 %v3333_v39 }
 0xc70   :  { %1613 = vmatpush.msra.mxu0 %v3416_v37  ;;  %1719 = vmatpush.msra.mxu3 %v3337_v36 }
 0xc71   :  { %2409 = vmatmul.msk.f32.vlgmr.msrb.gmra.mxu0 %vm190_vm0, %v1419_v28 }
 0xc72   :  { %1780 = vmatpush.msrb.mxu0 %v3138_v57 }
 0xc74   :  { %1781 = vmatpush.msrb.mxu0 %v3142_v34 }
 0xc76   :  { %1782 = vmatpush.msrb.mxu0 %v3148_v60 }
 0xc78   :  { %v1335_v41 = vpop.permute.xlu0 %1334  ;;  %1783 = vmatpush.msrb.mxu0 %v3156_v62 }
 0xc79   :  { %2406 = vmatmul.msk.f32.vlgmr.msra.gmra.mxu2 %vm219_vm6, %v1335_v41  ;;  %2410 = vmatmul.msk.f32.vlgmr.msrb.gmra.mxu1 %vm219_vm6, %v1335_v41 }
 0xc7a   :  { %1697 = vmatpush.msra.mxu2 %v3427_v42  ;;  %1806 = vmatpush.msrb.mxu1 %v3140_v58 }
 0xc7c   :  { %1698 = vmatpush.msra.mxu2 %v3431_v46  ;;  %1807 = vmatpush.msrb.mxu1 %v3146_v59 }
 0xc7e   :  { %1808 = vmatpush.msrb.mxu1 %v3150_v61 }
 0xc80   :  { %1809 = vmatpush.msrb.mxu1 %v3158_v63  ;;  %v3442_v63 = vld [vmem:[%s3675_s8] ss:$0 sm:$0xff] }
 0xc8e   :  { %v1291_v60 = vpop.f32.mrf.mxu1 }
 0xce6   :  { %v1265_v57 = vpop.f32.mrf.mxu0 }
 0xce7   :  { %v1268_v34 = vadd.f32 %v3208_v13, %v1265_v57 }
 0xce9   :  { %v1294_v62 = vadd.f32 %v1291_v60, %v1268_v34 }
 0xceb   :  { %v2405_v43 = vmul.f32 -1.442695, %v1294_v62 }
 0xcec   :  { %v1376_v50 = vpop.f32.mrf.mxu3 }
 0xced   :  { %2554 = vpow2.f32 %v2405_v43 }
 0xcee   :  { %v1440_v33 = vpop.f32.mrf.mxu0 }
 0xcef   :  { %v1443_v58 = vadd.f32 %v3350_v51, %v1440_v33 }
 0xcf3   :  { %v2555_v35 = vpop.eup %2554 }
 0xcf4   :  { %v1299_v40 = vadd.f32 1.0, %v2555_v35 }
 0xcf6   :  { %2556 = vrcp.f32 %v1299_v40  ;;  %v1461_v47 = vpop.f32.mrf.mxu1  ;;  %v1311_v55 = vand.u32 2147483648, %v1299_v40  ;;  %v1309_v9 = vand.u32 2147483647, %v1299_v40  ;;  %vm1305_vm13 = vweird.f32 %v1299_v40 }
 0xcf7   :  { %v1464_v44 = vadd.f32 %v1461_v47, %v1443_v58 }
 0xcf8   :  { %v1312_v14 = vor.u32 1.1754944e-38, %v1311_v55  ;;  %vm1310_vm15 = vcmp.eq.f32.partialorder %v1309_v9, 8.507059e+37 }
 0xcf9   :  { %v2411_v59 = vmul.f32 -1.442695, %v1464_v44 }
 0xcfb   :  { %2558 = vpow2.f32 %v2411_v59 }
 0xcfc   :  { %v2557_v61 = vpop.eup %2556  ;;  %v1355_v29 = vpop.f32.mrf.mxu2  ;;  %2560 = vtanh.f32 %v1294_v62 }
 0xcfd   :  { %v1358_v13 = vadd.f32 %v3442_v63, %v1355_v29  ;;  %v1301_v49 = vmul.f32 %v2557_v61, %v1299_v40  ;;  %vm1306_vm12 = vweird.f32 %v2557_v61 }
 0xcfe   :  { %vm1307_vm14 = vmor %vm1305_vm13, %vm1306_vm12 }
 0xcff   :  { %v1379_v53 = vadd.f32 %v1376_v50, %v1358_v13  ;;  %v1302_v54 = vsub.f32 1.0, %v1301_v49 }
 0xd01   :  { %v2559_v45 = vpop.eup %2558  ;;  %v2408_v56 = vmul.f32 -1.442695, %v1379_v53  ;;  %v1303_v4 = vmul.f32 %v2557_v61, %v1302_v54 }
 0xd02   :  { %v1469_v11 = vadd.f32 1.0, %v2559_v45  ;;  %v2561_v21 = vpop.eup %2560 }
 0xd03   :  { %2562 = vpow2.f32 %v2408_v56  ;;  %v1304_v12 = vadd.f32 %v2557_v61, %v1303_v4 }
 0xd04   :  { %2564 = vrcp.f32 %v1469_v11  ;;  %v1481_v30 = vand.u32 2147483648, %v1469_v11  ;;  %v1479_v22 = vand.u32 2147483647, %v1469_v11  ;;  %vm1475_vm2 = vweird.f32 %v1469_v11 }
 0xd05   :  { %v1308_v16 = vsel %vm1307_vm14, %v2557_v61, %v1304_v12 }
 0xd06   :  { %v1313_v26 = vsel %vm1310_vm15, %v1312_v14, %v1308_v16  ;;  %v1482_v41 = vor.u32 1.1754944e-38, %v1481_v30  ;;  %vm1480_vm5 = vcmp.eq.f32.partialorder %v1479_v22, 8.507059e+37 }
 0xd07   :  { %v3447_v23 = vsel %vm169_vm3, %v2561_v21, %v1313_v26 }
 0xd08   :  { %1318 = vrot.lane.b32.xlu1 %v3447_v23, %s2916_s30  ;;  %v1316_v12 = vmul.f32 %v3447_v23, %v3370_v8 }
 0xd09   :  { %v2563_v25 = vpop.eup %2562 }
 0xd0a   :  { %v2565_v52 = vpop.eup %2564  ;;  %v1384_v24 = vadd.f32 1.0, %v2563_v25 }
 0xd0b   :  { %v1471_v19 = vmul.f32 %v2565_v52, %v1469_v11  ;;  %vm1476_vm1 = vweird.f32 %v2565_v52 }
 0xd0c   :  { %2566 = vrcp.f32 %v1384_v24  ;;  %vm1477_vm4 = vmor %vm1475_vm2, %vm1476_vm1  ;;  %v1396_v35 = vand.u32 2147483648, %v1384_v24  ;;  %v1394_v40 = vand.u32 2147483647, %v1384_v24  ;;  %vm1390_vm8 = vweird.f32 %v1384_v24 }
 0xd0d   :  { %v1472_v27 = vsub.f32 1.0, %v1471_v19  ;;  %2568 = vtanh.f32 %v1464_v44 }
 0xd0e   :  { %2570 = vtanh.f32 %v1379_v53  ;;  %v1397_v44 = vor.u32 1.1754944e-38, %v1396_v35  ;;  %vm1395_vm10 = vcmp.eq.f32.partialorder %v1394_v40, 8.507059e+37 }
 0xd0f   :  { %v1473_v10 = vmul.f32 %v2565_v52, %v1472_v27 }
 0xd11   :  { %v1474_v6 = vadd.f32 %v2565_v52, %v1473_v10 }
 0xd12   :  { %v2567_v28 = vpop.eup %2566 }
 0xd13   :  { %v1478_v57 = vsel %vm1477_vm4, %v2565_v52, %v1474_v6  ;;  %v1386_v34 = vmul.f32 %v2567_v28, %v1384_v24  ;;  %v2569_v60 = vpop.eup %2568  ;;  %vm1391_vm7 = vweird.f32 %v2567_v28  ;;  %v3499_v6 = vld [vmem:[#allocation13] sm:$0xff] }
 0xd14   :  { %v1483_v62 = vsel %vm1480_vm5, %v1482_v41, %v1478_v57  ;;  %vm1392_vm9 = vmor %vm1390_vm8, %vm1391_vm7  ;;  %v2571_v61 = vpop.eup %2570  ;;  %v1679_v41 = vld [vmem:[#allocation2 + $0x30] sm:$0xff]  ;;  %v3513_v57 = vld [vmem:[#allocation8 + $0x18] sm:$0xff] }
 0xd15   :  { %v1485_v43 = vsel %vm169_vm3, %v2569_v60, %v1483_v62  ;;  %v1387_v33 = vsub.f32 1.0, %v1386_v34  ;;  %v3522_v34 = vld [vmem:[#allocation8] sm:$0xff] }
 0xd16   :  { %1488 = vrot.lane.b32.xlu2 %v1485_v43, %s2916_s30  ;;  %v1486_v56 = vmul.f32 %v1485_v43, %v3381_v48 }
 0xd17   :  { %v1388_v58 = vmul.f32 %v2567_v28, %v1387_v33 }
 0xd19   :  { %v1389_v47 = vadd.f32 %v2567_v28, %v1388_v58  ;;  %v3529_v58 = vld [vmem:[%s3676_s9] ss:$0 sm:$0xff] }
 0xd1b   :  { %v1393_v59 = vsel %vm1392_vm9, %v2567_v28, %v1389_v47 }
 0xd1c   :  { %v1398_v29 = vsel %vm1395_vm10, %v1397_v44, %v1393_v59 }
 0xd1d   :  { %v1400_v13 = vsel %vm169_vm3, %v2571_v61, %v1398_v29 }
 0xd1e   :  { %1403 = vrot.lane.b32.xlu0 %v1400_v13, %s2916_s30  ;;  %v1401_v48 = vmul.f32 %v1400_v13, %v3376_v18 }
 0xd70   :  { %v1489_v49 = vpop.permute.xlu2 %1488 }
 0xd71   :  { %v1491_v50 = vmul.f32 %v1489_v49, %v1485_v43 }
 0xd73   :  { %1493 = vrot.lane.b32.xlu2 %v1491_v50, %s2916_s30 }
 0xd7a   :  { %v1319_v53 = vpop.permute.xlu1 %1318 }
 0xd7b   :  { %v1321_v54 = vmul.f32 %v1319_v53, %v3447_v23 }
 0xd7d   :  { %1323 = vrot.lane.b32.xlu1 %v1321_v54, %s2916_s30 }
 0xd90   :  { %v1404_v55 = vpop.permute.xlu0 %1403 }
 0xd91   :  { %v1406_v45 = vmul.f32 %v1404_v55, %v1400_v13 }
 0xd93   :  { %1408 = vrot.lane.b32.xlu0 %v1406_v45, %s2916_s30 }
 0xdcd   :  { %v1494_v4 = vpop.permute.xlu2 %1493 }
 0xdce   :  { %v3462_v9 = vadd.f32 %v1494_v4, %v1486_v56 }
 0xdd0   :  { %2572 = vtanh.f32 %v3462_v9 }
 0xdd6   :  { %v2573_v11 = vpop.eup %2572 }
 0xdd7   :  { %1499 = vrot.lane.b32.xlu2 %v2573_v11, %s2916_s30 }
 0xdef   :  { %v1324_v14 = vpop.permute.xlu1 %1323 }
 0xdf0   :  { %v3468_v16 = vadd.f32 %v1324_v14, %v1316_v12 }
 0xdf2   :  { %2574 = vtanh.f32 %v3468_v16 }
 0xdf8   :  { %v2575_v21 = vpop.eup %2574 }
 0xdf9   :  { %1329 = vrot.lane.b32.xlu1 %v2575_v21, %s2916_s30 }
 0xe05   :  { %v1409_v26 = vpop.permute.xlu0 %1408 }
 0xe06   :  { %v3473_v25 = vadd.f32 %v1409_v26, %v1401_v48 }
 0xe08   :  { %2576 = vtanh.f32 %v3473_v25 }
 0xe0e   :  { %v2577_v52 = vpop.eup %2576 }
 0xe0f   :  { %1414 = vrot.lane.b32.xlu0 %v2577_v52, %s2916_s30 }
 0xe31   :  { %v1500_v24 = vpop.permute.xlu2 %1499 }
 0xe32   :  { %v1502_v8 = vmul.f32 %v1500_v24, %v1485_v43 }
 0xe34   :  { %1594 = vrot.lane.b32.xlu2 %v1502_v8, %s2917_s20 }
 0xe6b   :  { %v1330_v19 = vpop.permute.xlu1 %1329 }
 0xe6c   :  { %v1332_v27 = vmul.f32 %v1330_v19, %v3447_v23  ;;  %v3490_v23 = vld [vmem:[#allocation13 + $0x18] sm:$0xff] }
 0xe6e   :  { %1530 = vrot.lane.b32.xlu1 %v1332_v27, %s2917_s20 }
 0xe81   :  { %v1415_v30 = vpop.permute.xlu0 %1414 }
 0xe82   :  { %v1417_v10 = vmul.f32 %v1415_v30, %v1400_v13 }
 0xe84   :  { %1504 = vrot.lane.b32.xlu0 %v1417_v10, %s2917_s20 }
 0xe8e   :  { %v1595_v18 = vpop.permute.xlu2 %1594 }
 0xe8f   :  { %2415 = vmatmul.msk.f32.vlgmr.msra.gmra.mxu0 %vm219_vm6, %v1595_v18 }
 0xe90   :  { %1957 = vmatpush.msra.mxu0 %v3427_v42  ;;  %v3493_v42 = vld [vmem:[#allocation13 + $0x10] sm:$0xff] }
 0xe92   :  { %1958 = vmatpush.msra.mxu0 %v3431_v46  ;;  %v3496_v46 = vld [vmem:[#allocation13 + $0x8] sm:$0xff] }
 0xee0   :  { %v1531_v22 = vpop.permute.xlu1 %1530 }
 0xee1   :  { %2413 = vmatmul.msk.f32.vlgmr.msrb.gmra.mxu3 %vm219_vm6, %v1531_v22 }
 0xee2   :  { %1891 = vmatpush.msrb.mxu3 %v3390_v0 }
 0xee4   :  { %1892 = vmatpush.msrb.mxu3 %v3393_v2 }
 0xee6   :  { %1893 = vmatpush.msrb.mxu3 %v3396_v5 }
 0xee8   :  { %1894 = vmatpush.msrb.mxu3 %v3399_v31 }
 0xee9   :  { %2419 = vmatmul.msk.f32.vlgmr.msra.gmra.mxu3 %vm219_vm6, %v1595_v18 }
 0xeea   :  { %2066 = vmatpush.msra.mxu3 %v3490_v23 }
 0xeec   :  { %2067 = vmatpush.msra.mxu3 %v3493_v42 }
 0xeee   :  { %2068 = vmatpush.msra.mxu3 %v3496_v46 }
 0xef0   :  { %2069 = vmatpush.msra.mxu3 %v3499_v6 }
 0xef6   :  { %v1505_v28 = vpop.permute.xlu0 %1504 }
 0xef7   :  { %2412 = vmatmul.msk.f32.vlgmr.msrb.gmra.mxu2 %vm219_vm6, %v1505_v28  ;;  %2416 = vmatmul.msk.f32.vlgmr.msra.gmra.mxu1 %vm219_vm6, %v1505_v28 }
 0xef8   :  { %1870 = vmatpush.msrb.mxu2 %v3404_v15  ;;  %1976 = vmatpush.msra.mxu1 %v3323_v1  ;;  %v3516_v1 = vld [vmem:[#allocation8 + $0x10] sm:$0xff] }
 0xefa   :  { %1871 = vmatpush.msrb.mxu2 %v3408_v32  ;;  %1977 = vmatpush.msra.mxu1 %v3328_v3  ;;  %v3519_v3 = vld [vmem:[#allocation8 + $0x8] sm:$0xff] }
 0xefc   :  { %1872 = vmatpush.msrb.mxu2 %v3412_v38  ;;  %1978 = vmatpush.msra.mxu1 %v3333_v39 }
 0xefe   :  { %1873 = vmatpush.msrb.mxu2 %v3416_v37  ;;  %1979 = vmatpush.msra.mxu1 %v3337_v36 }
 0xeff   :  { %2418 = vmatmul.msk.f32.vlgmr.msra.gmra.mxu2 %vm190_vm0, %v1679_v41 }
 0xf00   :  { %2040 = vmatpush.msra.mxu2 %v3513_v57 }
 0xf02   :  { %2041 = vmatpush.msra.mxu2 %v3516_v1 }
 0xf04   :  { %2042 = vmatpush.msra.mxu2 %v3519_v3 }
 0xf06   :  { %2043 = vmatpush.msra.mxu2 %v3522_v34 }
 0xf0c   :  { %v1615_v39 = vpop.f32.mrf.mxu0 }
 0xf0d   :  { %v1618_v36 = vadd.f32 %v3442_v63, %v1615_v39 }
 0xf64   :  { %v1551_v33 = vpop.f32.mrf.mxu3 }
 0xf6c   :  { %v1721_v49 = vpop.f32.mrf.mxu3 }
 0xf74   :  { %v1636_v60 = vpop.f32.mrf.mxu1 }
 0xf75   :  { %v1639_v62 = vadd.f32 %v1636_v60, %v1618_v36 }
 0xf77   :  { %v2417_v43 = vmul.f32 -1.442695, %v1639_v62 }
 0xf79   :  { %2578 = vpow2.f32 %v2417_v43 }
 0xf7a   :  { %v1525_v35 = vpop.f32.mrf.mxu2 }
 0xf7b   :  { %v1528_v40 = vadd.f32 %v3529_v58, %v1525_v35 }
 0xf7d   :  { %v1554_v47 = vadd.f32 %v1551_v33, %v1528_v40 }
 0xf7f   :  { %v2579_v44 = vpop.eup %2578  ;;  %v2414_v59 = vmul.f32 -1.442695, %v1554_v47 }
 0xf80   :  { %v1644_v61 = vadd.f32 1.0, %v2579_v44 }
 0xf81   :  { %2580 = vpow2.f32 %v2414_v59 }
 0xf82   :  { %2582 = vrcp.f32 %v1644_v61  ;;  %v1700_v29 = vpop.f32.mrf.mxu2  ;;  %v1656_v11 = vand.u32 2147483648, %v1644_v61  ;;  %v1654_v14 = vand.u32 2147483647, %v1644_v61  ;;  %vm1650_vm12 = vweird.f32 %v1644_v61 }
 0xf83   :  { %v1703_v13 = vadd.f32 %v3350_v51, %v1700_v29 }
 0xf84   :  { %v1657_v24 = vor.u32 1.1754944e-38, %v1656_v11  ;;  %vm1655_vm14 = vcmp.eq.f32.partialorder %v1654_v14, 8.507059e+37 }
 0xf85   :  { %v1724_v50 = vadd.f32 %v1721_v49, %v1703_v13 }
 0xf87   :  { %v2581_v53 = vpop.eup %2580  ;;  %v2420_v54 = vmul.f32 -1.442695, %v1724_v50 }
 0xf88   :  { %v2583_v55 = vpop.eup %2582  ;;  %v1559_v45 = vadd.f32 1.0, %v2581_v53 }
 0xf89   :  { %2584 = vpow2.f32 %v2420_v54  ;;  %v1646_v56 = vmul.f32 %v2583_v55, %v1644_v61  ;;  %vm1651_vm11 = vweird.f32 %v2583_v55 }
 0xf8a   :  { %2586 = vrcp.f32 %v1559_v45  ;;  %vm1652_vm13 = vmor %vm1650_vm12, %vm1651_vm11  ;;  %v1571_v22 = vand.u32 2147483648, %v1559_v45  ;;  %v1569_v41 = vand.u32 2147483647, %v1559_v45  ;;  %vm1565_vm1 = vweird.f32 %v1559_v45 }
 0xf8b   :  { %v1647_v4 = vsub.f32 1.0, %v1646_v56  ;;  %2588 = vtanh.f32 %v1639_v62 }
 0xf8c   :  { %v1572_v60 = vor.u32 1.1754944e-38, %v1571_v22  ;;  %vm1570_vm4 = vcmp.eq.f32.partialorder %v1569_v41, 8.507059e+37 }
 0xf8d   :  { %v1648_v12 = vmul.f32 %v2583_v55, %v1647_v4 }
 0xf8f   :  { %v2585_v21 = vpop.eup %2584  ;;  %v1649_v48 = vadd.f32 %v2583_v55, %v1648_v12 }
 0xf90   :  { %v2587_v26 = vpop.eup %2586  ;;  %v1729_v52 = vadd.f32 1.0, %v2585_v21 }
 0xf91   :  { %v1653_v8 = vsel %vm1652_vm13, %v2583_v55, %v1649_v48  ;;  %v1561_v19 = vmul.f32 %v2587_v26, %v1559_v45  ;;  %v2589_v27 = vpop.eup %2588  ;;  %vm1566_vm15 = vweird.f32 %v2587_v26 }
 0xf92   :  { %2590 = vrcp.f32 %v1729_v52  ;;  %v1658_v30 = vsel %vm1655_vm14, %v1657_v24, %v1653_v8  ;;  %vm1567_vm2 = vmor %vm1565_vm1, %vm1566_vm15  ;;  %v1741_v44 = vand.u32 2147483648, %v1729_v52  ;;  %v1739_v61 = vand.u32 2147483647, %v1729_v52 }
 0xf93   :  { %v3535_v10 = vsel %vm169_vm3, %v2589_v27, %v1658_v30  ;;  %v1562_v18 = vsub.f32 1.0, %v1561_v19  ;;  %2592 = vtanh.f32 %v1554_v47  ;;  %vm1735_vm7 = vweird.f32 %v1729_v52 }
 0xf94   :  { %1663 = vrot.lane.b32.xlu1 %v3535_v10, %s2916_s30  ;;  %2594 = vtanh.f32 %v1724_v50  ;;  %v1742_v13 = vor.u32 1.1754944e-38, %v1741_v44  ;;  %vm1740_vm9 = vcmp.eq.f32.partialorder %v1739_v61, 8.507059e+37 }
 0xf95   :  { %v1563_v28 = vmul.f32 %v2587_v26, %v1562_v18 }
 0xf97   :  { %v1564_v39 = vadd.f32 %v2587_v26, %v1563_v28 }
 0xf98   :  { %v2591_v36 = vpop.eup %2590 }
 0xf99   :  { %v1568_v62 = vsel %vm1567_vm2, %v2587_v26, %v1564_v39  ;;  %v1731_v43 = vmul.f32 %v2591_v36, %v1729_v52  ;;  %v2593_v33 = vpop.eup %2592  ;;  %vm1736_vm5 = vweird.f32 %v2591_v36  ;;  %v1661_v52 = vmul.f32 %v3535_v10, %v3473_v25 }
 0xf9a   :  { %v1573_v35 = vsel %vm1570_vm4, %v1572_v60, %v1568_v62  ;;  %vm1737_vm8 = vmor %vm1735_vm7, %vm1736_vm5  ;;  %v2595_v53 = vpop.eup %2594 }
 0xf9b   :  { %v1575_v40 = vsel %vm169_vm3, %v2593_v33, %v1573_v35  ;;  %v1732_v47 = vsub.f32 1.0, %v1731_v43 }
 0xf9c   :  { %1578 = vrot.lane.b32.xlu2 %v1575_v40, %s2916_s30  ;;  %v1576_v14 = vmul.f32 %v1575_v40, %v3468_v16 }
 0xf9d   :  { %v1733_v59 = vmul.f32 %v2591_v36, %v1732_v47 }
 0xf9f   :  { %v1734_v29 = vadd.f32 %v2591_v36, %v1733_v59 }
 0xfa1   :  { %v1738_v49 = vsel %vm1737_vm8, %v2591_v36, %v1734_v29 }
 0xfa2   :  { %v1743_v54 = vsel %vm1740_vm9, %v1742_v13, %v1738_v49 }
 0xfa3   :  { %v1745_v55 = vsel %vm169_vm3, %v2595_v53, %v1743_v54 }
 0xfa4   :  { %1748 = vrot.lane.b32.xlu0 %v1745_v55, %s2916_s30  ;;  %v1746_v16 = vmul.f32 %v1745_v55, %v3462_v9 }
 0xff6   :  { %v1579_v50 = vpop.permute.xlu2 %1578 }
 0xff7   :  { %v1581_v45 = vmul.f32 %v1579_v50, %v1575_v40 }
 0xff9   :  { %1583 = vrot.lane.b32.xlu2 %v1581_v45, %s2916_s30 }
0x1006   :  { %v1664_v56 = vpop.permute.xlu1 %1663 }
0x1007   :  { %v1666_v4 = vmul.f32 %v1664_v56, %v3535_v10 }
0x1009   :  { %1668 = vrot.lane.b32.xlu1 %v1666_v4, %s2916_s30 }
0x1016   :  { %v1749_v11 = vpop.permute.xlu0 %1748 }
0x1017   :  { %v1751_v12 = vmul.f32 %v1749_v11, %v1745_v55 }
0x1019   :  { %1753 = vrot.lane.b32.xlu0 %v1751_v12, %s2916_s30 }
0x1053   :  { %v1584_v21 = vpop.permute.xlu2 %1583 }
0x1054   :  { %v3550_v48 = vadd.f32 %v1584_v21, %v1576_v14 }
0x1056   :  { %2596 = vtanh.f32 %v3550_v48 }
0x105c   :  { %v2597_v26 = vpop.eup %2596 }
0x105d   :  { %1589 = vrot.lane.b32.xlu2 %v2597_v26, %s2916_s30 }
0x107b   :  { %v1669_v24 = vpop.permute.xlu1 %1668 }
0x107c   :  { %v3556_v8 = vadd.f32 %v1669_v24, %v1661_v52 }
0x107e   :  { %2598 = vtanh.f32 %v3556_v8 }
0x1084   :  { %v2599_v19 = vpop.eup %2598 }
0x1085   :  { %1674 = vrot.lane.b32.xlu1 %v2599_v19, %s2916_s30 }
0x108b   :  { %v1754_v27 = vpop.permute.xlu0 %1753 }
0x108c   :  { %v3561_v30 = vadd.f32 %v1754_v27, %v1746_v16 }
0x108e   :  { %2600 = vtanh.f32 %v3561_v30 }
0x1094   :  { %v2601_v18 = vpop.eup %2600 }
0x1095   :  { %1759 = vrot.lane.b32.xlu0 %v2601_v18, %s2916_s30 }
0x10b7   :  { %v1590_v22 = vpop.permute.xlu2 %1589 }
0x10b8   :  { %v1592_v25 = vmul.f32 %v1590_v22, %v1575_v40 }
0x10ba   :  { %1790 = vrot.lane.b32.xlu2 %v1592_v25, %s2917_s20 }
0x10f7   :  { %v1675_v28 = vpop.permute.xlu1 %1674 }
0x10f8   :  { %v1677_v41 = vmul.f32 %v1675_v28, %v3535_v10 }
0x10fa   :  { %1764 = vrot.lane.b32.xlu1 %v1677_v41, %s2917_s20 }
0x1107   :  { %v1760_v39 = vpop.permute.xlu0 %1759 }
0x1108   :  { %v1762_v36 = vmul.f32 %v1760_v39, %v1745_v55 }
0x110a   :  { %1854 = vrot.lane.b32.xlu0 %v1762_v36, %s2917_s20 }
0x1114   :  { %v1791_v9 = vpop.permute.xlu2 %1790 }
0x1115   :  { %2422 = vmatmul.msk.f32.vlgmr.msrb.gmra.mxu1 %vm219_vm6, %v1791_v9 }
0x1116   :  { %2151 = vmatpush.msrb.mxu1 %v3390_v0  ;;  %v1939_v0 = vld [vmem:[#allocation2 + $0x38] sm:$0xff] }
0x1118   :  { %2152 = vmatpush.msrb.mxu1 %v3393_v2 }
0x111a   :  { %2153 = vmatpush.msrb.mxu1 %v3396_v5 }
0x111c   :  { %2154 = vmatpush.msrb.mxu1 %v3399_v31 }
0x116c   :  { %v1765_v60 = vpop.permute.xlu1 %1764 }
0x116d   :  { %2421 = vmatmul.msk.f32.vlgmr.msrb.gmra.mxu0 %vm219_vm6, %v1765_v60  ;;  %2425 = vmatmul.msk.f32.vlgmr.msrb.gmra.mxu3 %vm219_vm6, %v1765_v60 }
0x116e   :  { %2130 = vmatpush.msrb.mxu0 %v3404_v15  ;;  %2241 = vmatpush.msrb.mxu3 %v3490_v23 }
0x1170   :  { %2131 = vmatpush.msrb.mxu0 %v3408_v32  ;;  %2242 = vmatpush.msrb.mxu3 %v3493_v42 }
0x1172   :  { %2132 = vmatpush.msrb.mxu0 %v3412_v38  ;;  %2243 = vmatpush.msrb.mxu3 %v3496_v46 }
0x1174   :  { %2133 = vmatpush.msrb.mxu0 %v3416_v37  ;;  %2244 = vmatpush.msrb.mxu3 %v3499_v6 }
0x1175   :  { %2427 = vmatmul.msk.f32.vlgmr.msra.gmra.mxu0 %vm190_vm0, %v1939_v0 }
0x117c   :  { %v1855_v2 = vpop.permute.xlu0 %1854 }
0x117d   :  { %2424 = vmatmul.msk.f32.vlgmr.msrb.gmra.mxu2 %vm219_vm6, %v1855_v2  ;;  %2428 = vmatmul.msk.f32.vlgmr.msra.gmra.mxu1 %vm219_vm6, %v1855_v2 }
0x117e   :  { %2215 = vmatpush.msrb.mxu2 %v3513_v57 }
0x1180   :  { %2216 = vmatpush.msrb.mxu2 %v3516_v1 }
0x1182   :  { %2217 = vmatpush.msrb.mxu2 %v3519_v3 }
0x1184   :  { %2218 = vmatpush.msrb.mxu2 %v3522_v34 }
0x1192   :  { %v1811_v15 = vpop.f32.mrf.mxu1 }
0x11ea   :  { %v1785_v5 = vpop.f32.mrf.mxu0 }
0x11eb   :  { %v1788_v31 = vadd.f32 %v3529_v58, %v1785_v5 }
0x11ed   :  { %v1814_v32 = vadd.f32 %v1811_v15, %v1788_v31 }
0x11ef   :  { %v2423_v38 = vmul.f32 -1.442695, %v1814_v32 }
0x11f0   :  { %v1896_v43 = vpop.f32.mrf.mxu3 }
0x11f1   :  { %2602 = vpow2.f32 %v2423_v38 }
0x11f2   :  { %v1960_v37 = vpop.f32.mrf.mxu0 }
0x11f3   :  { %v1963_v42 = vadd.f32 %v3350_v51, %v1960_v37 }
0x11f7   :  { %v2603_v23 = vpop.eup %2602 }
0x11f8   :  { %v1819_v46 = vadd.f32 1.0, %v2603_v23 }
0x11fa   :  { %2604 = vrcp.f32 %v1819_v46  ;;  %v1981_v6 = vpop.f32.mrf.mxu1  ;;  %v1831_v40 = vand.u32 2147483648, %v1819_v46  ;;  %v1829_v51 = vand.u32 2147483647, %v1819_v46  ;;  %vm1825_vm10 = vweird.f32 %v1819_v46 }
0x11fb   :  { %v1984_v57 = vadd.f32 %v1981_v6, %v1963_v42 }
0x11fc   :  { %v1832_v13 = vor.u32 1.1754944e-38, %v1831_v40  ;;  %vm1830_vm12 = vcmp.eq.f32.partialorder %v1829_v51, 8.507059e+37 }
0x11fd   :  { %v2429_v1 = vmul.f32 -1.442695, %v1984_v57 }
0x11ff   :  { %2606 = vpow2.f32 %v2429_v1 }
0x1200   :  { %v2605_v3 = vpop.eup %2604  ;;  %v1875_v10 = vpop.f32.mrf.mxu2  ;;  %2608 = vtanh.f32 %v1814_v32 }
0x1201   :  { %v1878_v34 = vadd.f32 %v3442_v63, %v1875_v10  ;;  %v1821_v62 = vmul.f32 %v2605_v3, %v1819_v46  ;;  %vm1826_vm0 = vweird.f32 %v2605_v3 }
0x1202   :  { %vm1827_vm11 = vmor %vm1825_vm10, %vm1826_vm0 }
0x1203   :  { %v1899_v33 = vadd.f32 %v1896_v43, %v1878_v34  ;;  %v1822_v35 = vsub.f32 1.0, %v1821_v62 }
0x1205   :  { %v2607_v47 = vpop.eup %2606  ;;  %v2426_v44 = vmul.f32 -1.442695, %v1899_v33  ;;  %v1823_v59 = vmul.f32 %v2605_v3, %v1822_v35 }
0x1206   :  { %v1989_v61 = vadd.f32 1.0, %v2607_v47  ;;  %v2609_v53 = vpop.eup %2608 }
0x1207   :  { %2610 = vpow2.f32 %v2426_v44  ;;  %v1824_v29 = vadd.f32 %v2605_v3, %v1823_v59 }
0x1208   :  { %2612 = vrcp.f32 %v1989_v61  ;;  %v2001_v12 = vand.u32 2147483648, %v1989_v61  ;;  %v1999_v21 = vand.u32 2147483647, %v1989_v61  ;;  %vm1995_vm14 = vweird.f32 %v1989_v61 }
0x1209   :  { %v1828_v49 = vsel %vm1827_vm11, %v2605_v3, %v1824_v29 }
0x120a   :  { %v1833_v54 = vsel %vm1830_vm12, %v1832_v13, %v1828_v49  ;;  %v2002_v24 = vor.u32 1.1754944e-38, %v2001_v12  ;;  %vm2000_vm1 = vcmp.eq.f32.partialorder %v1999_v21, 8.507059e+37 }
0x120b   :  { %v3596_v55 = vsel %vm169_vm3, %v2609_v53, %v1833_v54 }
0x120c   :  { %1838 = vrot.lane.b32.xlu1 %v3596_v55, %s2916_s30  ;;  %v1836_v1 = vmul.f32 %v3596_v55, %v3550_v48 }
0x120d   :  { %v2611_v50 = vpop.eup %2610 }
0x120e   :  { %v2613_v45 = vpop.eup %2612  ;;  %v1904_v56 = vadd.f32 1.0, %v2611_v50 }
0x120f   :  { %v1991_v4 = vmul.f32 %v2613_v45, %v1989_v61  ;;  %vm1996_vm13 = vweird.f32 %v2613_v45 }
0x1210   :  { %2614 = vrcp.f32 %v1904_v56  ;;  %vm1997_vm15 = vmor %vm1995_vm14, %vm1996_vm13  ;;  %v1916_v28 = vand.u32 2147483648, %v1904_v56  ;;  %v1914_v39 = vand.u32 2147483647, %v1904_v56  ;;  %vm1910_vm4 = vweird.f32 %v1904_v56 }
0x1211   :  { %v1992_v11 = vsub.f32 1.0, %v1991_v4  ;;  %2616 = vtanh.f32 %v1984_v57 }
0x1212   :  { %2618 = vtanh.f32 %v1899_v33  ;;  %v1917_v9 = vor.u32 1.1754944e-38, %v1916_v28  ;;  %vm1915_vm7 = vcmp.eq.f32.partialorder %v1914_v39, 8.507059e+37 }
0x1213   :  { %v1993_v14 = vmul.f32 %v2613_v45, %v1992_v11 }
0x1215   :  { %v1994_v26 = vadd.f32 %v2613_v45, %v1993_v14 }
0x1216   :  { %v2615_v52 = vpop.eup %2614 }
0x1217   :  { %v1998_v19 = vsel %vm1997_vm15, %v2613_v45, %v1994_v26  ;;  %v1906_v16 = vmul.f32 %v2615_v52, %v1904_v56  ;;  %v2617_v27 = vpop.eup %2616  ;;  %vm1911_vm2 = vweird.f32 %v2615_v52 }
0x1218   :  { %v2003_v18 = vsel %vm2000_vm1, %v2002_v24, %v1998_v19  ;;  %vm1912_vm5 = vmor %vm1910_vm4, %vm1911_vm2  ;;  %v2619_v0 = vpop.eup %2618 }
0x1219   :  { %v2005_v22 = vsel %vm169_vm3, %v2617_v27, %v2003_v18  ;;  %v1907_v25 = vsub.f32 1.0, %v1906_v16 }
0x121a   :  { %2008 = vrot.lane.b32.xlu2 %v2005_v22, %s2916_s30  ;;  %v2006_v42 = vmul.f32 %v2005_v22, %v3561_v30 }
0x121b   :  { %v1908_v41 = vmul.f32 %v2615_v52, %v1907_v25 }
0x121d   :  { %v1909_v36 = vadd.f32 %v2615_v52, %v1908_v41 }
0x121f   :  { %v1913_v60 = vsel %vm1912_vm5, %v2615_v52, %v1909_v36 }
0x1220   :  { %v1918_v2 = vsel %vm1915_vm7, %v1917_v9, %v1913_v60 }
0x1221   :  { %v1920_v5 = vsel %vm169_vm3, %v2619_v0, %v1918_v2 }
0x1222   :  { %1923 = vrot.lane.b32.xlu0 %v1920_v5, %s2916_s30  ;;  %v1921_v62 = vmul.f32 %v1920_v5, %v3556_v8 }
0x1274   :  { %v2009_v31 = vpop.permute.xlu2 %2008 }
0x1275   :  { %v2011_v15 = vmul.f32 %v2009_v31, %v2005_v22 }
0x1277   :  { %2013 = vrot.lane.b32.xlu2 %v2011_v15, %s2916_s30 }
0x127e   :  { %v1839_v32 = vpop.permute.xlu1 %1838 }
0x127f   :  { %v1841_v38 = vmul.f32 %v1839_v32, %v3596_v55 }
0x1281   :  { %1843 = vrot.lane.b32.xlu1 %v1841_v38, %s2916_s30 }
0x1294   :  { %v1924_v37 = vpop.permute.xlu0 %1923 }
0x1295   :  { %v1926_v23 = vmul.f32 %v1924_v37, %v1920_v5 }
0x1297   :  { %1928 = vrot.lane.b32.xlu0 %v1926_v23, %s2916_s30 }
0x12d1   :  { %v2014_v46 = vpop.permute.xlu2 %2013 }
0x12d2   :  { %v2016_v6 = vadd.f32 %v2014_v46, %v2006_v42 }
0x12d4   :  { %2620 = vtanh.f32 %v2016_v6 }
0x12da   :  { %v2621_v57 = vpop.eup %2620 }
0x12db   :  { %2019 = vrot.lane.b32.xlu2 %v2621_v57, %s2916_s30 }
0x12f3   :  { %v1844_v3 = vpop.permute.xlu1 %1843 }
0x12f4   :  { %v3614_v10 = vadd.f32 %v1844_v3, %v1836_v1 }
0x12f6   :  { %2622 = vtanh.f32 %v3614_v10 }
0x12fc   :  { %v2623_v34 = vpop.eup %2622 }
0x12fd   :  { %1849 = vrot.lane.b32.xlu1 %v2623_v34, %s2916_s30 }
0x1309   :  { %v1929_v30 = vpop.permute.xlu0 %1928 }
0x130a   :  { %v3619_v43 = vadd.f32 %v1929_v30, %v1921_v62 }
0x130c   :  { %2624 = vtanh.f32 %v3619_v43 }
0x1312   :  { %v2625_v33 = vpop.eup %2624 }
0x1313   :  { %1934 = vrot.lane.b32.xlu0 %v2625_v33, %s2916_s30 }
0x1335   :  { %v2020_v35 = vpop.permute.xlu2 %2019 }
0x1336   :  { %v2022_v48 = vmul.f32 %v2020_v35, %v2005_v22 }
0x1338   :  { %2114 = vrot.lane.b32.xlu2 %v2022_v48, %s2917_s20 }
0x136f   :  { %v1850_v40 = vpop.permute.xlu1 %1849 }
0x1370   :  { %v1852_v47 = vmul.f32 %v1850_v40, %v3596_v55 }
0x1372   :  { %2050 = vrot.lane.b32.xlu1 %v1852_v47, %s2917_s20 }
0x1385   :  { %v1935_v44 = vpop.permute.xlu0 %1934 }
0x1386   :  { %v1937_v59 = vmul.f32 %v1935_v44, %v1920_v5 }
0x1388   :  { %2024 = vrot.lane.b32.xlu0 %v1937_v59, %s2917_s20 }
0x1392   :  { %v2115_v8 = vpop.permute.xlu2 %2114 }
0x1393   :  { %2433 = vmatmul.msk.f32.vlgmr.msrb.gmra.mxu0 %vm219_vm6, %v2115_v8 }
0x13e4   :  { %v2051_v51 = vpop.permute.xlu1 %2050 }
0x13e5   :  { %2431 = vmatmul.msk.f32.vlgmr.msra.gmra.mxu3 %vm219_vm6, %v2051_v51 }
0x13fa   :  { %v2025_v61 = vpop.permute.xlu0 %2024 }
0x13fb   :  { %2430 = vmatmul.msk.f32.vlgmr.msra.gmra.mxu2 %vm219_vm6, %v2025_v61  ;;  %2434 = vmatmul.msk.f32.vlgmr.msrb.gmra.mxu1 %vm219_vm6, %v2025_v61 }
0x1410   :  { %v2135_v29 = vpop.f32.mrf.mxu0 }
0x1411   :  { %v2138_v13 = vadd.f32 %v3442_v63, %v2135_v29 }
0x1468   :  { %v2071_v45 = vpop.f32.mrf.mxu3 }
0x1478   :  { %v2156_v49 = vpop.f32.mrf.mxu1 }
0x1479   :  { %v2159_v53 = vadd.f32 %v2156_v49, %v2138_v13 }
0x147b   :  { %v2435_v54 = vmul.f32 -1.442695, %v2159_v53 }
0x147d   :  { %2626 = vpow2.f32 %v2435_v54 }
0x147e   :  { %v2045_v55 = vpop.f32.mrf.mxu2 }
0x147f   :  { %v2048_v50 = vadd.f32 %v3529_v58, %v2045_v55 }
0x1481   :  { %v2074_v56 = vadd.f32 %v2071_v45, %v2048_v50 }
0x1483   :  { %v2627_v4 = vpop.eup %2626  ;;  %v2432_v11 = vmul.f32 -1.442695, %v2074_v56 }
0x1484   :  { %v2164_v12 = vadd.f32 1.0, %v2627_v4 }
0x1485   :  { %2628 = vpow2.f32 %v2432_v11 }
0x1486   :  { %2630 = vrcp.f32 %v2164_v12  ;;  %v2176_v24 = vand.u32 2147483648, %v2164_v12  ;;  %v2174_v16 = vand.u32 2147483647, %v2164_v12  ;;  %vm2170_vm9 = vweird.f32 %v2164_v12 }
0x1488   :  { %v2177_v22 = vor.u32 1.1754944e-38, %v2176_v24  ;;  %vm2175_vm10 = vcmp.eq.f32.partialorder %v2174_v16, 8.507059e+37 }
0x148b   :  { %v2629_v14 = vpop.eup %2628 }
0x148c   :  { %v2631_v21 = vpop.eup %2630  ;;  %v2079_v26 = vadd.f32 1.0, %v2629_v14 }
0x148d   :  { %v2166_v52 = vmul.f32 %v2631_v21, %v2164_v12  ;;  %vm2171_vm8 = vweird.f32 %v2631_v21 }
0x148e   :  { %2632 = vrcp.f32 %v2079_v26  ;;  %vm2172_vm0 = vmor %vm2170_vm9, %vm2171_vm8  ;;  %v2091_v60 = vand.u32 2147483648, %v2079_v26  ;;  %v2089_v2 = vand.u32 2147483647, %v2079_v26  ;;  %vm2085_vm12 = vweird.f32 %v2079_v26 }
0x148f   :  { %v2167_v63 = vsub.f32 1.0, %v2166_v52  ;;  %2634 = vtanh.f32 %v2159_v53  ;;  %vm2346_vm9 = vcmask 253952  }
0x1490   :  { %2636 = vtanh.f32 %v2074_v56  ;;  %v2092_v31 = vor.u32 1.1754944e-38, %v2091_v60  ;;  %vm2090_vm14 = vcmp.eq.f32.partialorder %v2089_v2, 8.507059e+37  ;;  %v171_v2 = vshrl.u32 %v167_v17, 7 }
0x1491   :  { %v2168_v19 = vmul.f32 %v2631_v21, %v2167_v63 }
0x1493   :  { %v2169_v27 = vadd.f32 %v2631_v21, %v2168_v19 }
0x1494   :  { %v2633_v18 = vpop.eup %2632 }
0x1495   :  { %v2173_v25 = vsel %vm2172_vm0, %v2631_v21, %v2169_v27  ;;  %v2081_v28 = vmul.f32 %v2633_v18, %v2079_v26  ;;  %v2635_v41 = vpop.eup %2634  ;;  %vm2086_vm11 = vweird.f32 %v2633_v18  ;;  %v2291_v27 = vld [vmem:[#allocation14 + $0x18] sm:$0xff] }
0x1496   :  { %v2178_v39 = vsel %vm2175_vm10, %v2177_v22, %v2173_v25  ;;  %vm2087_vm13 = vmor %vm2085_vm12, %vm2086_vm11  ;;  %v2637_v32 = vpop.eup %2636  ;;  %2313 = vmatpush.msra.mxu0 %v2291_v27  ;;  %v2289_v22 = vld [vmem:[#allocation14 + $0x8] sm:$0xff] }
0x1497   :  { %v2180_v36 = vsel %vm169_vm3, %v2635_v41, %v2178_v39  ;;  %v2082_v9 = vsub.f32 1.0, %v2081_v28  ;;  %v2457_v39 = vld [vmem:[%s3678_s11] ss:$0 sm:$0xff]  ;;  %s2918_s11 = smov [#allocation16]  }
0x1498   :  { %2183 = vrot.lane.b32.xlu0 %v2180_v36, %s2916_s30  ;;  %v2181_v57 = vmul.f32 %v2180_v36, %v3619_v43  ;;  %s2353_s28 = sshll.u32 %s2918_s11, 4  ;;  %s2354_s28 = int_to_ptr.vmem [resolvable:$true] %s2353_s28 }
0x1499   :  { %v2083_v0 = vmul.f32 %v2633_v18, %v2082_v9 }
0x149b   :  { %v2084_v5 = vadd.f32 %v2633_v18, %v2083_v0 }
0x149d   :  { %v2088_v15 = vsel %vm2087_vm13, %v2633_v18, %v2084_v5  ;;  %v2290_v18 = vld [vmem:[#allocation14 + $0x10] sm:$0xff] }
0x149e   :  { %v2093_v38 = vsel %vm2090_vm14, %v2092_v31, %v2088_v15  ;;  %2314 = vmatpush.msra.mxu0 %v2290_v18 }
0x149f   :  { %v2095_v37 = vsel %vm169_vm3, %v2637_v32, %v2093_v38 }
0x14a0   :  { %2098 = vrot.lane.b32.xlu1 %v2095_v37, %s2916_s30  ;;  %v2096_v62 = vmul.f32 %v2095_v37, %v3614_v10  ;;  %2315 = vmatpush.msra.mxu0 %v2289_v22 }
0x14a2   :  { %2316 = vmatpush.msra.mxu0 %v2288_v20 }
0x150a   :  { %v2184_v23 = vpop.permute.xlu0 %2183 }
0x150b   :  { %v2186_v42 = vmul.f32 %v2184_v23, %v2180_v36 }
0x150d   :  { %2188 = vrot.lane.b32.xlu2 %v2186_v42, %s2916_s30 }
0x1512   :  { %v2099_v46 = vpop.permute.xlu1 %2098 }
0x1513   :  { %v2101_v6 = vmul.f32 %v2099_v46, %v2095_v37 }
0x1515   :  { %2103 = vrot.lane.b32.xlu0 %v2101_v6, %s2916_s30 }
0x1567   :  { %v2189_v1 = vpop.permute.xlu2 %2188 }
0x1568   :  { %v2191_v3 = vadd.f32 %v2189_v1, %v2181_v57 }
0x156a   :  { %2638 = vtanh.f32 %v2191_v3 }
0x1570   :  { %v2639_v34 = vpop.eup %2638 }
0x1571   :  { %2194 = vrot.lane.b32.xlu1 %v2639_v34, %s2916_s30 }
0x1587   :  { %v2104_v30 = vpop.permute.xlu0 %2103 }
0x1588   :  { %v2106_v33 = vadd.f32 %v2104_v30, %v2096_v62 }
0x158a   :  { %2640 = vtanh.f32 %v2106_v33 }
0x1590   :  { %v2641_v35 = vpop.eup %2640 }
0x1591   :  { %2109 = vrot.lane.b32.xlu2 %v2641_v35, %s2916_s30 }
0x15e3   :  { %v2195_v48 = vpop.permute.xlu1 %2194 }
0x15e4   :  { %v2197_v40 = vmul.f32 %v2195_v48, %v2180_v36 }
0x15e6   :  { %2199 = vrot.lane.b32.xlu0 %v2197_v40, %s2917_s20 }
0x15eb   :  { %v2110_v47 = vpop.permute.xlu2 %2109 }
0x15ec   :  { %v2112_v43 = vmul.f32 %v2110_v47, %v2095_v37 }
0x15ee   :  { %2225 = vrot.lane.b32.xlu1 %v2112_v43, %s2917_s20 }
0x1658   :  { %v2200_v44 = vpop.permute.xlu0 %2199 }
0x1659   :  { %2436 = vmatmul.msk.f32.vlgmr.msrb.gmra.mxu2 %vm219_vm6, %v2200_v44 }
0x1660   :  { %v2226_v59 = vpop.permute.xlu1 %2225 }
0x1661   :  { %2437 = vmatmul.msk.f32.vlgmr.msrb.gmra.mxu3 %vm219_vm6, %v2226_v59 }
0x16dc   :  { %v2220_v10 = vpop.f32.mrf.mxu2 }
0x16dd   :  { %v2223_v8 = vadd.f32 %v3529_v58, %v2220_v10 }
0x16e4   :  { %v2246_v51 = vpop.f32.mrf.mxu3 }
0x16e5   :  { %v2249_v61 = vadd.f32 %v2246_v51, %v2223_v8 }
0x16e7   :  { %v2438_v29 = vmul.f32 -1.442695, %v2249_v61 }
0x16e9   :  { %2642 = vpow2.f32 %v2438_v29 }
0x16ef   :  { %v2643_v13 = vpop.eup %2642 }
0x16f0   :  { %v2254_v49 = vadd.f32 1.0, %v2643_v13 }
0x16f2   :  { %2644 = vrcp.f32 %v2254_v49  ;;  %v2266_v50 = vand.u32 2147483648, %v2254_v49  ;;  %v2264_v56 = vand.u32 2147483647, %v2254_v49  ;;  %vm2260_vm1 = vweird.f32 %v2254_v49 }
0x16f3   :  { %2646 = vtanh.f32 %v2249_v61 }
0x16f4   :  { %v2267_v11 = vor.u32 1.1754944e-38, %v2266_v50  ;;  %vm2265_vm4 = vcmp.eq.f32.partialorder %v2264_v56, 8.507059e+37 }
0x16f8   :  { %v2645_v53 = vpop.eup %2644 }
0x16f9   :  { %v2256_v54 = vmul.f32 %v2645_v53, %v2254_v49  ;;  %vm2261_vm15 = vweird.f32 %v2645_v53  ;;  %v2647_v12 = vpop.eup %2646 }
0x16fa   :  { %vm2262_vm2 = vmor %vm2260_vm1, %vm2261_vm15 }
0x16fb   :  { %v2257_v55 = vsub.f32 1.0, %v2256_v54 }
0x16fd   :  { %v2258_v45 = vmul.f32 %v2645_v53, %v2257_v55 }
0x16ff   :  { %v2259_v4 = vadd.f32 %v2645_v53, %v2258_v45 }
0x1701   :  { %v2263_v58 = vsel %vm2262_vm2, %v2645_v53, %v2259_v4 }
0x1702   :  { %v2268_v14 = vsel %vm2265_vm4, %v2267_v11, %v2263_v58 }
0x1703   :  { %v2270_v21 = vsel %vm169_vm3, %v2647_v12, %v2268_v14  ;;  %vm172_vm3 = vcmp.lt.s32.totalorder %v171_v2, 5 }
0x1704   :  { %2273 = vrot.lane.b32.xlu2 %v2270_v21, %s2916_s30  ;;  %v2271_v63 = vmul.f32 %v2270_v21, %v2106_v33  ;;  %v2369_v46 = vsel %vm172_vm3, 1.0, %v2915_v7 }
0x175e   :  { %v2274_v26 = vpop.permute.xlu2 %2273 }
0x175f   :  { %v2276_v52 = vmul.f32 %v2274_v26, %v2270_v21 }
0x1761   :  { %2278 = vrot.lane.b32.xlu0 %v2276_v52, %s2916_s30 }
0x17d3   :  { %v2279_v24 = vpop.permute.xlu0 %2278 }
0x17d4   :  { %v2281_v19 = vadd.f32 %v2279_v24, %v2271_v63 }
0x17d6   :  { %2648 = vtanh.f32 %v2281_v19 }
0x17dc   :  { %v2649_v16 = vpop.eup %2648 }
0x17dd   :  { %2284 = vrot.lane.b32.xlu1 %v2649_v16, %s2916_s30 }
0x184f   :  { %v2285_v25 = vpop.permute.xlu1 %2284 }
0x1850   :  { %v2287_v28 = vmul.f32 %v2285_v25, %v2270_v21 }
0x1852   :  { %2297 = vrot.lane.b32.xlu2 %v2287_v28, %s2917_s20 }
0x18ac   :  { %v2298_v41 = vpop.permute.xlu2 %2297 }
0x18ad   :  { %2439 = vmatmul.msk.f32.vlgmr.msra.gmra.mxu0 %vm219_vm6, %v2298_v41 }
0x192a   :  { %v2318_v36 = vpop.f32.mrf.mxu0 }
0x192b   :  { %v2319_v9 = vadd.f32 %v2457_v39, %v2318_v36 }
0x192d   :  { %v2321_v60 = vmul.f32 %v2319_v9, %v2319_v9 }
0x192f   :  { %v2322_v0 = vsel %vm219_vm6, %v2321_v60, 0.0 }
0x1930   :  { %2323 = vadd.xlane.f32.xlu0 %v2322_v0 }
0x19a3   :  { %v2324_v5 = vpop.xlane.xlu0 %2323 }
0x19a4   :  { %v2325_v31 = vsel %vm172_vm3, %v2324_v5, 1.0 }
0x19a5   :  { %2650 = vrsqrt.f32 %v2325_v31  ;;  %vm2332_vm7 = vweird.f32 %v2325_v31 }
0x19ab   :  { %v2651_v15 = vpop.eup %2650 }
0x19ac   :  { %v2327_v32 = vmul.f32 %v2651_v15, %v2325_v31  ;;  %vm2333_vm5 = vweird.f32 %v2651_v15 }
0x19ad   :  { %vm2334_vm8 = vmor %vm2332_vm7, %vm2333_vm5 }
0x19ae   :  { %v2328_v38 = vmul.f32 %v2651_v15, %v2327_v32 }
0x19b0   :  { %v2329_v37 = vmul.f32 0.5, %v2328_v38 }
0x19b2   :  { %v2330_v23 = vsub.f32 1.5, %v2329_v37 }
0x19b4   :  { %v2331_v42 = vmul.f32 %v2651_v15, %v2330_v23 }
0x19b6   :  { %v2335_v6 = vsel %vm2334_vm8, %v2651_v15, %v2331_v42 }
0x19b7   :  { %v2336_v57 = vmul.f32 %v2335_v6, %v2319_v9 }
0x19b9   :  { %v2337_v1 = vmul.f32 %v2369_v46, %v2336_v57 }
0x19bb   :  { %v2338_v17 = vsel %vm219_vm6, %v2337_v1, 0.0 }
0x19bc   :  { %v2339_v3 = vrot.slane %v2338_v17, 4 }
0x19be   :  { %v2340_v34 = vadd.f32 %v2339_v3, %v2338_v17 }
0x19c0   :  { %v2341_v62 = vrot.slane %v2340_v34, 2 }
0x19c2   :  { %v2342_v30 = vadd.f32 %v2341_v62, %v2340_v34 }
0x19c4   :  { %v2343_v33 = vrot.slane %v2342_v30, 1 }
0x19c6   :  { %v2344_v35 = vadd.f32 %v2343_v33, %v2342_v30 }
0x19c8   :  { %v2345_v48 = vmul.f32 0.2, %v2344_v35 }
0x19ca   :  { %2347 = vst.msk [vmem:[#allocation16] sm:$0x1] %vm2346_vm9, %v2345_v48 }
0x19cb   :  { %2358 = dma.vmem_to_hbm [thread:$0]  %s2354_s28, 16, %s2356_s14, [#allocation4]  }
0x19cc   :  { %2903 = dma.done.wait [#allocation4], 16  }
0x19cd   :  { %2904 = vsyncadd [#allocation4], 4294967280 }
0x19ce   :  { %2363 = vsyncpa [#allocation3], 1 }
0x19cf   :  { %2364 = vsyncpa [#allocation6], 1 }
0x19d0   :  { %2365 = vsyncpa [#allocation9], 1 }
0x19d1   :  { %2366 = vsyncpa [#allocation12], 1 }
0x19d2   :  { %2367 = vsyncpa [#allocation15], 1 }
0x19d3   :  { %2368 = vsyncpa [#allocation4], 1 }

</bundles_post_ra>
